<compile_context>
chip_gen: v6e
topology: v6e:2x2x1
jax: 0.10.0
libtpu: 0.0.40
codegen_flags: <defaults>
</compile_context>

<pallas_src>
import jax
import jax.numpy as jnp
from jax.experimental import pallas as pl
from jax.experimental.pallas import tpu as pltpu


# ---------------------------------------------------------------------------
# Kernel 1: fused conv / relu / maxpool / batchnorm stack (one sample / step)
# ---------------------------------------------------------------------------
def conv_stack_kernel(x_ref, w1_ref, b1_ref, w2_ref, b2_ref, s1_ref, t1_ref,
                      w3_ref, b3_ref, w4_ref, b4_ref, s2_ref, t2_ref, o_ref):
    # x_ref: (1, 1, L); conv weights are im2col-packed (C_out, K*C_in) with
    # contraction index k*C_in + c; biases / BN scale/shift are (C, 1).

    def conv_relu(h, w, b):
        # h: (C_in, L) -> (C_out, L-2); single MXU matmul, contraction K*C_in.
        l_out = h.shape[1] - 2
        h3 = jnp.concatenate(
            [h[:, 0:l_out], h[:, 1:1 + l_out], h[:, 2:2 + l_out]], axis=0)
        y = jnp.dot(w, h3, preferred_element_type=jnp.float32) + b
        return jnp.maximum(y, 0.0)

    def pool_bn(h, scale, shift):
        # MaxPool1d(kernel=2, stride=1) then inference-mode BatchNorm affine.
        l_out = h.shape[1] - 1
        pooled = jnp.maximum(h[:, 0:l_out], h[:, 1:1 + l_out])
        return pooled * scale + shift

    h = x_ref[0].astype(jnp.float32)                 # (1,   L)
    h = conv_relu(h, w1_ref[...], b1_ref[...])       # (16,  L-2)
    h = conv_relu(h, w2_ref[...], b2_ref[...])       # (32,  L-4)
    h = pool_bn(h, s1_ref[...], t1_ref[...])         # (32,  L-5)
    h = conv_relu(h, w3_ref[...], b3_ref[...])       # (64,  L-7)
    h = conv_relu(h, w4_ref[...], b4_ref[...])       # (128, L-9)
    h = pool_bn(h, s2_ref[...], t2_ref[...])         # (128, L-10)
    o_ref[0] = h.astype(o_ref.dtype)


def conv_stack(x, p):
    # x: (B, 1, L) -> (B, 128, L-10)
    B, c_in, L = x.shape
    L_out = L - 10
    idx_b = lambda i: (i, 0, 0)
    idx_c = lambda i: (0, 0)
    return pl.pallas_call(
        conv_stack_kernel,
        out_shape=jax.ShapeDtypeStruct((B, 128, L_out), x.dtype),
        grid=(B,),
        in_specs=[
            pl.BlockSpec((1, c_in, L), idx_b),
            pl.BlockSpec((16, 3), idx_c),    pl.BlockSpec((16, 1), idx_c),
            pl.BlockSpec((32, 48), idx_c),   pl.BlockSpec((32, 1), idx_c),
            pl.BlockSpec((32, 1), idx_c),    pl.BlockSpec((32, 1), idx_c),
            pl.BlockSpec((64, 96), idx_c),   pl.BlockSpec((64, 1), idx_c),
            pl.BlockSpec((128, 192), idx_c), pl.BlockSpec((128, 1), idx_c),
            pl.BlockSpec((128, 1), idx_c),   pl.BlockSpec((128, 1), idx_c),
        ],
        out_specs=pl.BlockSpec((1, 128, L_out), idx_b),
        compiler_params=pltpu.CompilerParams(
            dimension_semantics=("parallel",)),
    )(x, p['conv1_w'], p['conv1_b'], p['conv2_w'], p['conv2_b'],
      p['bn1_scale'], p['bn1_shift'],
      p['conv3_w'], p['conv3_b'], p['conv4_w'], p['conv4_b'],
      p['bn2_scale'], p['bn2_shift'])


# ---------------------------------------------------------------------------
# Kernel 2: fused FC head with K-tiled streaming fc1 weight
# ---------------------------------------------------------------------------
def fc_head_kernel(x_ref, w1_ref, b1_ref, w2_ref, b2_ref, w3_ref, b3_ref,
                   o_ref, acc_ref):
    k = pl.program_id(0)

    @pl.when(k == 0)
    def _():
        acc_ref[...] = jnp.zeros_like(acc_ref)

    # Partial fc1: (B, tk)f32 -> bf16 against streamed bf16 weight tile,
    # accumulate in f32.
    acc_ref[...] += jnp.dot(x_ref[...].astype(jnp.bfloat16), w1_ref[...],
                            preferred_element_type=jnp.float32)

    @pl.when(k == pl.num_programs(0) - 1)
    def _():
        h1 = jnp.maximum(acc_ref[...] + b1_ref[...], 0.0)              # fc1+ReLU
        # Dropout(p=0.5): identity in inference mode
        h2 = jnp.dot(h1, w2_ref[...],
                     preferred_element_type=jnp.float32) + b2_ref[...]
        h2 = jnp.maximum(h2, 0.0)                                      # fc2+ReLU
        # Dropout(p=0.5): identity in inference mode
        out = jnp.dot(h2, w3_ref[...],
                      preferred_element_type=jnp.float32) + b3_ref[...]
        o_ref[...] = out.astype(o_ref.dtype)


def _pick_tk(n_in, max_tk=4096):
    """Largest multiple of 128 that divides n_in and is <= max_tk."""
    best = None
    for d in range(128, min(n_in, max_tk) + 1, 128):
        if n_in % d == 0:
            best = d
    return best if best is not None else n_in


def fc_head(x, p):
    # x: (B, n_in) -> (B, n_out)
    B, n_in = x.shape
    n_h1 = p['fc1_b'].shape[1]
    n_h2 = p['fc2_b'].shape[1]
    n_out = p['fc3_b'].shape[1]
    tk = _pick_tk(n_in)
    kt = n_in // tk
    return pl.pallas_call(
        fc_head_kernel,
        out_shape=jax.ShapeDtypeStruct((B, n_out), x.dtype),
        grid=(kt,),
        in_specs=[
            pl.BlockSpec((B, tk), lambda k: (0, k)),
            pl.BlockSpec((tk, n_h1), lambda k: (k, 0)),
            pl.BlockSpec((1, n_h1), lambda k: (0, 0)),
            pl.BlockSpec((n_h1, n_h2), lambda k: (0, 0)),
            pl.BlockSpec((1, n_h2), lambda k: (0, 0)),
            pl.BlockSpec((n_h2, n_out), lambda k: (0, 0)),
            pl.BlockSpec((1, n_out), lambda k: (0, 0)),
        ],
        out_specs=pl.BlockSpec((B, n_out), lambda k: (0, 0)),
        scratch_shapes=[pltpu.VMEM((B, n_h1), jnp.float32)],
        compiler_params=pltpu.CompilerParams(
            dimension_semantics=("arbitrary",)),
    )(x, p['fc1_w'], p['fc1_b'], p['fc2_w'], p['fc2_b'],
      p['fc3_w'], p['fc3_b'])


# ---------------------------------------------------------------------------
# Parameter prep (done ONCE at init — no per-call transposes)
# ---------------------------------------------------------------------------
def prepare_params(r, eps=1e-5):
    def im2col_w(w):
        # (C_out, C_in, K) -> (C_out, K*C_in), index = k*C_in + c
        c_out, c_in, k = w.shape
        return jnp.transpose(w, (0, 2, 1)).reshape(c_out, k * c_in)

    def bn_fold(gamma, beta, mean, var):
        scale = gamma / jnp.sqrt(var + eps)
        shift = beta - mean * scale
        return scale[:, None], shift[:, None]

    p = {}
    p['conv1_w'] = im2col_w(r['conv1_w']); p['conv1_b'] = r['conv1_b'][:, None]
    p['conv2_w'] = im2col_w(r['conv2_w']); p['conv2_b'] = r['conv2_b'][:, None]
    p['conv3_w'] = im2col_w(r['conv3_w']); p['conv3_b'] = r['conv3_b'][:, None]
    p['conv4_w'] = im2col_w(r['conv4_w']); p['conv4_b'] = r['conv4_b'][:, None]
    p['bn1_scale'], p['bn1_shift'] = bn_fold(
        r['bn1_gamma'], r['bn1_beta'], r['bn1_mean'], r['bn1_var'])
    p['bn2_scale'], p['bn2_shift'] = bn_fold(
        r['bn2_gamma'], r['bn2_beta'], r['bn2_mean'], r['bn2_var'])
    # fc1 weight is the HBM-bandwidth dominant term: store transposed + bf16.
    p['fc1_w'] = jnp.transpose(r['fc1_w']).astype(jnp.bfloat16)
    p['fc1_b'] = r['fc1_b'][None, :]
    p['fc2_w'] = jnp.transpose(r['fc2_w']); p['fc2_b'] = r['fc2_b'][None, :]
    p['fc3_w'] = jnp.transpose(r['fc3_w']); p['fc3_b'] = r['fc3_b'][None, :]
    return p


def init_params(key):
    """Deterministic PyTorch-default-style init, then kernel-ready layout."""
    def u(k, shape, fan_in):
        bound = 1.0 / (fan_in ** 0.5)
        return jax.random.uniform(k, shape, jnp.float32, -bound, bound)

    ks = jax.random.split(key, 14)
    r = {}
    r['conv1_w'] = u(ks[0], (16, 1, 3), 1 * 3)
    r['conv1_b'] = u(ks[1], (16,), 1 * 3)
    r['conv2_w'] = u(ks[2], (32, 16, 3), 16 * 3)
    r['conv2_b'] = u(ks[3], (32,), 16 * 3)
    r['bn1_gamma'] = jnp.ones((32,), jnp.float32)
    r['bn1_beta'] = jnp.zeros((32,), jnp.float32)
    r['bn1_mean'] = jnp.zeros((32,), jnp.float32)
    r['bn1_var'] = jnp.ones((32,), jnp.float32)
    r['conv3_w'] = u(ks[4], (64, 32, 3), 32 * 3)
    r['conv3_b'] = u(ks[5], (64,), 32 * 3)
    r['conv4_w'] = u(ks[6], (128, 64, 3), 64 * 3)
    r['conv4_b'] = u(ks[7], (128,), 64 * 3)
    r['bn2_gamma'] = jnp.ones((128,), jnp.float32)
    r['bn2_beta'] = jnp.zeros((128,), jnp.float32)
    r['bn2_mean'] = jnp.zeros((128,), jnp.float32)
    r['bn2_var'] = jnp.ones((128,), jnp.float32)
    n_in = 128 * 190
    r['fc1_w'] = u(ks[8], (100, n_in), n_in)
    r['fc1_b'] = u(ks[9], (100,), n_in)
    r['fc2_w'] = u(ks[10], (50, 100), 100)
    r['fc2_b'] = u(ks[11], (50,), 100)
    r['fc3_w'] = u(ks[12], (5, 50), 50)
    r['fc3_b'] = u(ks[13], (5,), 50)
    return prepare_params(r)


# ---------------------------------------------------------------------------
# Model forward (2 Pallas dispatches total)
# ---------------------------------------------------------------------------
def ecg_cnn_forward(x, p):
    # x: (B, 1, 200) -> (B, 5)
    B = x.shape[0]
    feat = conv_stack(x, p)                    # (B, 128, 190), fully fused
    flat = feat.reshape(B, -1)                 # Flatten (contiguous, free)
    return fc_head(flat, p)                    # fused fc1/fc2/fc3


if __name__ == "__main__":
    key = jax.random.PRNGKey(0)
    pkey, xkey = jax.random.split(key)
    params = init_params(pkey)
    # Input length must be 200 (input_dim=200) so that Flatten yields 128*190.
    x = jax.random.normal(xkey, (2, 1, 200), jnp.float32)
    fwd = jax.jit(ecg_cnn_forward)
    out = fwd(x, params)
    out = jax.block_until_ready(out)
    assert out.shape == (2, 5), out.shape
    assert out.dtype == jnp.float32
    assert bool(jnp.all(jnp.isfinite(out)))
    print("KERNEL_OK")
</pallas_src>

<mosaic_0001>
module attributes {stable_mosaic.version = 11 : i64} {
  func.func @conv_stack_kernel(%arg0: i32, %arg1: memref<1x1x200xf32, #tpu.memory_space<vmem>>, %arg2: memref<16x3xf32, #tpu.memory_space<vmem>>, %arg3: memref<16x1xf32, #tpu.memory_space<vmem>>, %arg4: memref<32x48xf32, #tpu.memory_space<vmem>>, %arg5: memref<32x1xf32, #tpu.memory_space<vmem>>, %arg6: memref<32x1xf32, #tpu.memory_space<vmem>>, %arg7: memref<32x1xf32, #tpu.memory_space<vmem>>, %arg8: memref<64x96xf32, #tpu.memory_space<vmem>>, %arg9: memref<64x1xf32, #tpu.memory_space<vmem>>, %arg10: memref<128x192xf32, #tpu.memory_space<vmem>>, %arg11: memref<128x1xf32, #tpu.memory_space<vmem>>, %arg12: memref<128x1xf32, #tpu.memory_space<vmem>>, %arg13: memref<128x1xf32, #tpu.memory_space<vmem>>, %arg14: memref<1x128x190xf32, #tpu.memory_space<vmem>>) attributes {dimension_semantics = [#tpu.dimension_semantics<parallel>], iteration_bounds = array<i64: 2>, scalar_prefetch = 0 : i64, scratch_operands = 0 : i64, tpu.core_type = #tpu.core_type<tc>, window_params = [{transform_indices = @transform_0, window_bounds = array<i64: 1, 1, 200>}, {pipeline_mode = #tpu.pipeline_mode<synchronous>, transform_indices = @transform_1, window_bounds = array<i64: 16, 3>}, {pipeline_mode = #tpu.pipeline_mode<synchronous>, transform_indices = @transform_2, window_bounds = array<i64: 16, 1>}, {pipeline_mode = #tpu.pipeline_mode<synchronous>, transform_indices = @transform_3, window_bounds = array<i64: 32, 48>}, {pipeline_mode = #tpu.pipeline_mode<synchronous>, transform_indices = @transform_4, window_bounds = array<i64: 32, 1>}, {pipeline_mode = #tpu.pipeline_mode<synchronous>, transform_indices = @transform_5, window_bounds = array<i64: 32, 1>}, {pipeline_mode = #tpu.pipeline_mode<synchronous>, transform_indices = @transform_6, window_bounds = array<i64: 32, 1>}, {pipeline_mode = #tpu.pipeline_mode<synchronous>, transform_indices = @transform_7, window_bounds = array<i64: 64, 96>}, {pipeline_mode = #tpu.pipeline_mode<synchronous>, transform_indices = @transform_8, window_bounds = array<i64: 64, 1>}, {pipeline_mode = #tpu.pipeline_mode<synchronous>, transform_indices = @transform_9, window_bounds = array<i64: 128, 192>}, {pipeline_mode = #tpu.pipeline_mode<synchronous>, transform_indices = @transform_10, window_bounds = array<i64: 128, 1>}, {pipeline_mode = #tpu.pipeline_mode<synchronous>, transform_indices = @transform_11, window_bounds = array<i64: 128, 1>}, {pipeline_mode = #tpu.pipeline_mode<synchronous>, transform_indices = @transform_12, window_bounds = array<i64: 128, 1>}, {transform_indices = @transform_13, window_bounds = array<i64: 1, 128, 190>}]} {
    %c0 = arith.constant 0 : index
    %c0_0 = arith.constant 0 : index
    %c0_1 = arith.constant 0 : index
    %0 = vector.load %arg1[%c0, %c0_0, %c0_1] : memref<1x1x200xf32, #tpu.memory_space<vmem>>, vector<1x1x200xf32>
    %1 = vector.shape_cast %0 : vector<1x1x200xf32> to vector<1x200xf32>
    %c0_2 = arith.constant 0 : index
    %c0_3 = arith.constant 0 : index
    %2 = vector.load %arg2[%c0_2, %c0_3] : memref<16x3xf32, #tpu.memory_space<vmem>>, vector<16x3xf32>
    %c0_4 = arith.constant 0 : index
    %c0_5 = arith.constant 0 : index
    %3 = vector.load %arg3[%c0_4, %c0_5] : memref<16x1xf32, #tpu.memory_space<vmem>>, vector<16x1xf32>
    %4 = vector.extract_strided_slice %1 {offsets = [0, 0], sizes = [1, 198], strides = [1, 1]} : vector<1x200xf32> to vector<1x198xf32>
    %5 = vector.extract_strided_slice %1 {offsets = [0, 1], sizes = [1, 198], strides = [1, 1]} : vector<1x200xf32> to vector<1x198xf32>
    %6 = vector.extract_strided_slice %1 {offsets = [0, 2], sizes = [1, 198], strides = [1, 1]} : vector<1x200xf32> to vector<1x198xf32>
    %7 = tpu.concatenate %4, %5, %6 in 0 : vector<1x198xf32>, vector<1x198xf32>, vector<1x198xf32> -> vector<3x198xf32>
    %cst = arith.constant dense<0.000000e+00> : vector<16x198xf32>
    %8 = tpu.matmul %2, %7, %cst {dimension_numbers = #tpu.dot_dimension_numbers<[1], [0], [0], [1], [0, 0, 1, 1], [], []>} : vector<16x3xf32>, vector<3x198xf32>, vector<16x198xf32> -> vector<16x198xf32>
    %9 = vector.broadcast %3 : vector<16x1xf32> to vector<16x198xf32>
    %10 = arith.addf %8, %9 : vector<16x198xf32>
    %cst_6 = arith.constant 0.000000e+00 : f32
    %11 = vector.broadcast %cst_6 : f32 to vector<16x198xf32>
    %12 = arith.maximumf %10, %11 : vector<16x198xf32>
    %c0_7 = arith.constant 0 : index
    %c0_8 = arith.constant 0 : index
    %13 = vector.load %arg4[%c0_7, %c0_8] : memref<32x48xf32, #tpu.memory_space<vmem>>, vector<32x48xf32>
    %c0_9 = arith.constant 0 : index
    %c0_10 = arith.constant 0 : index
    %14 = vector.load %arg5[%c0_9, %c0_10] : memref<32x1xf32, #tpu.memory_space<vmem>>, vector<32x1xf32>
    %15 = vector.extract_strided_slice %12 {offsets = [0, 0], sizes = [16, 196], strides = [1, 1]} : vector<16x198xf32> to vector<16x196xf32>
    %16 = vector.extract_strided_slice %12 {offsets = [0, 1], sizes = [16, 196], strides = [1, 1]} : vector<16x198xf32> to vector<16x196xf32>
    %17 = vector.extract_strided_slice %12 {offsets = [0, 2], sizes = [16, 196], strides = [1, 1]} : vector<16x198xf32> to vector<16x196xf32>
    %18 = tpu.concatenate %15, %16, %17 in 0 : vector<16x196xf32>, vector<16x196xf32>, vector<16x196xf32> -> vector<48x196xf32>
    %cst_11 = arith.constant dense<0.000000e+00> : vector<32x196xf32>
    %19 = tpu.matmul %13, %18, %cst_11 {dimension_numbers = #tpu.dot_dimension_numbers<[1], [0], [0], [1], [0, 0, 1, 1], [], []>} : vector<32x48xf32>, vector<48x196xf32>, vector<32x196xf32> -> vector<32x196xf32>
    %20 = vector.broadcast %14 : vector<32x1xf32> to vector<32x196xf32>
    %21 = arith.addf %19, %20 : vector<32x196xf32>
    %cst_12 = arith.constant 0.000000e+00 : f32
    %22 = vector.broadcast %cst_12 : f32 to vector<32x196xf32>
    %23 = arith.maximumf %21, %22 : vector<32x196xf32>
    %c0_13 = arith.constant 0 : index
    %c0_14 = arith.constant 0 : index
    %24 = vector.load %arg6[%c0_13, %c0_14] : memref<32x1xf32, #tpu.memory_space<vmem>>, vector<32x1xf32>
    %c0_15 = arith.constant 0 : index
    %c0_16 = arith.constant 0 : index
    %25 = vector.load %arg7[%c0_15, %c0_16] : memref<32x1xf32, #tpu.memory_space<vmem>>, vector<32x1xf32>
    %26 = vector.extract_strided_slice %23 {offsets = [0, 0], sizes = [32, 195], strides = [1, 1]} : vector<32x196xf32> to vector<32x195xf32>
    %27 = vector.extract_strided_slice %23 {offsets = [0, 1], sizes = [32, 195], strides = [1, 1]} : vector<32x196xf32> to vector<32x195xf32>
    %28 = arith.maximumf %26, %27 : vector<32x195xf32>
    %29 = vector.broadcast %24 : vector<32x1xf32> to vector<32x195xf32>
    %30 = arith.mulf %28, %29 : vector<32x195xf32>
    %31 = vector.broadcast %25 : vector<32x1xf32> to vector<32x195xf32>
    %32 = arith.addf %30, %31 : vector<32x195xf32>
    %c0_17 = arith.constant 0 : index
    %c0_18 = arith.constant 0 : index
    %33 = vector.load %arg8[%c0_17, %c0_18] : memref<64x96xf32, #tpu.memory_space<vmem>>, vector<64x96xf32>
    %c0_19 = arith.constant 0 : index
    %c0_20 = arith.constant 0 : index
    %34 = vector.load %arg9[%c0_19, %c0_20] : memref<64x1xf32, #tpu.memory_space<vmem>>, vector<64x1xf32>
    %35 = vector.extract_strided_slice %32 {offsets = [0, 0], sizes = [32, 193], strides = [1, 1]} : vector<32x195xf32> to vector<32x193xf32>
    %36 = vector.extract_strided_slice %32 {offsets = [0, 1], sizes = [32, 193], strides = [1, 1]} : vector<32x195xf32> to vector<32x193xf32>
    %37 = vector.extract_strided_slice %32 {offsets = [0, 2], sizes = [32, 193], strides = [1, 1]} : vector<32x195xf32> to vector<32x193xf32>
    %38 = tpu.concatenate %35, %36, %37 in 0 : vector<32x193xf32>, vector<32x193xf32>, vector<32x193xf32> -> vector<96x193xf32>
    %cst_21 = arith.constant dense<0.000000e+00> : vector<64x193xf32>
    %39 = tpu.matmul %33, %38, %cst_21 {dimension_numbers = #tpu.dot_dimension_numbers<[1], [0], [0], [1], [0, 0, 1, 1], [], []>} : vector<64x96xf32>, vector<96x193xf32>, vector<64x193xf32> -> vector<64x193xf32>
    %40 = vector.broadcast %34 : vector<64x1xf32> to vector<64x193xf32>
    %41 = arith.addf %39, %40 : vector<64x193xf32>
    %cst_22 = arith.constant 0.000000e+00 : f32
    %42 = vector.broadcast %cst_22 : f32 to vector<64x193xf32>
    %43 = arith.maximumf %41, %42 : vector<64x193xf32>
    %c0_23 = arith.constant 0 : index
    %c0_24 = arith.constant 0 : index
    %44 = vector.load %arg10[%c0_23, %c0_24] : memref<128x192xf32, #tpu.memory_space<vmem>>, vector<128x192xf32>
    %c0_25 = arith.constant 0 : index
    %c0_26 = arith.constant 0 : index
    %45 = vector.load %arg11[%c0_25, %c0_26] : memref<128x1xf32, #tpu.memory_space<vmem>>, vector<128x1xf32>
    %46 = vector.extract_strided_slice %43 {offsets = [0, 0], sizes = [64, 191], strides = [1, 1]} : vector<64x193xf32> to vector<64x191xf32>
    %47 = vector.extract_strided_slice %43 {offsets = [0, 1], sizes = [64, 191], strides = [1, 1]} : vector<64x193xf32> to vector<64x191xf32>
    %48 = vector.extract_strided_slice %43 {offsets = [0, 2], sizes = [64, 191], strides = [1, 1]} : vector<64x193xf32> to vector<64x191xf32>
    %49 = tpu.concatenate %46, %47, %48 in 0 : vector<64x191xf32>, vector<64x191xf32>, vector<64x191xf32> -> vector<192x191xf32>
    %cst_27 = arith.constant dense<0.000000e+00> : vector<128x191xf32>
    %50 = tpu.matmul %44, %49, %cst_27 {dimension_numbers = #tpu.dot_dimension_numbers<[1], [0], [0], [1], [0, 0, 1, 1], [], []>} : vector<128x192xf32>, vector<192x191xf32>, vector<128x191xf32> -> vector<128x191xf32>
    %51 = vector.broadcast %45 : vector<128x1xf32> to vector<128x191xf32>
    %52 = arith.addf %50, %51 : vector<128x191xf32>
    %cst_28 = arith.constant 0.000000e+00 : f32
    %53 = vector.broadcast %cst_28 : f32 to vector<128x191xf32>
    %54 = arith.maximumf %52, %53 : vector<128x191xf32>
    %c0_29 = arith.constant 0 : index
    %c0_30 = arith.constant 0 : index
    %55 = vector.load %arg12[%c0_29, %c0_30] : memref<128x1xf32, #tpu.memory_space<vmem>>, vector<128x1xf32>
    %c0_31 = arith.constant 0 : index
    %c0_32 = arith.constant 0 : index
    %56 = vector.load %arg13[%c0_31, %c0_32] : memref<128x1xf32, #tpu.memory_space<vmem>>, vector<128x1xf32>
    %57 = vector.extract_strided_slice %54 {offsets = [0, 0], sizes = [128, 190], strides = [1, 1]} : vector<128x191xf32> to vector<128x190xf32>
    %58 = vector.extract_strided_slice %54 {offsets = [0, 1], sizes = [128, 190], strides = [1, 1]} : vector<128x191xf32> to vector<128x190xf32>
    %59 = arith.maximumf %57, %58 : vector<128x190xf32>
    %60 = vector.broadcast %55 : vector<128x1xf32> to vector<128x190xf32>
    %61 = arith.mulf %59, %60 : vector<128x190xf32>
    %62 = vector.broadcast %56 : vector<128x1xf32> to vector<128x190xf32>
    %63 = arith.addf %61, %62 : vector<128x190xf32>
    %c0_33 = arith.constant 0 : index
    %c0_34 = arith.constant 0 : index
    %c0_35 = arith.constant 0 : index
    %64 = vector.load %arg14[%c0_33, %c0_34, %c0_35] : memref<1x128x190xf32, #tpu.memory_space<vmem>>, vector<1x128x190xf32>
    %65 = vector.shape_cast %64 : vector<1x128x190xf32> to vector<128x190xf32>
    %66 = vector.shape_cast %63 : vector<128x190xf32> to vector<1x128x190xf32>
    tpu.vector_store %arg14[%c0_33, %c0_34, %c0_35], %66 {strides = array<i32>} : memref<1x128x190xf32, #tpu.memory_space<vmem>>, vector<1x128x190xf32>,
    return
  }
  func.func @transform_0(%arg0: i32) -> (i32, i32, i32) {
    %c0_i32 = arith.constant 0 : i32
    %c0_i32_0 = arith.constant 0 : i32
    %c0_i32_1 = arith.constant 0 : i32
    return %arg0, %c0_i32, %c0_i32_0 : i32, i32, i32
  }
  func.func @transform_1(%arg0: i32) -> (i32, i32) {
    %c0_i32 = arith.constant 0 : i32
    %c0_i32_0 = arith.constant 0 : i32
    %c0_i32_1 = arith.constant 0 : i32
    return %c0_i32, %c0_i32_0 : i32, i32
  }
  func.func @transform_2(%arg0: i32) -> (i32, i32) {
    %c0_i32 = arith.constant 0 : i32
    %c0_i32_0 = arith.constant 0 : i32
    %c0_i32_1 = arith.constant 0 : i32
    return %c0_i32, %c0_i32_0 : i32, i32
  }
  func.func @transform_3(%arg0: i32) -> (i32, i32) {
    %c0_i32 = arith.constant 0 : i32
    %c0_i32_0 = arith.constant 0 : i32
    %c0_i32_1 = arith.constant 0 : i32
    return %c0_i32, %c0_i32_0 : i32, i32
  }
  func.func @transform_4(%arg0: i32) -> (i32, i32) {
    %c0_i32 = arith.constant 0 : i32
    %c0_i32_0 = arith.constant 0 : i32
    %c0_i32_1 = arith.constant 0 : i32
    return %c0_i32, %c0_i32_0 : i32, i32
  }
  func.func @transform_5(%arg0: i32) -> (i32, i32) {
    %c0_i32 = arith.constant 0 : i32
    %c0_i32_0 = arith.constant 0 : i32
    %c0_i32_1 = arith.constant 0 : i32
    return %c0_i32, %c0_i32_0 : i32, i32
  }
  func.func @transform_6(%arg0: i32) -> (i32, i32) {
    %c0_i32 = arith.constant 0 : i32
    %c0_i32_0 = arith.constant 0 : i32
    %c0_i32_1 = arith.constant 0 : i32
    return %c0_i32, %c0_i32_0 : i32, i32
  }
  func.func @transform_7(%arg0: i32) -> (i32, i32) {
    %c0_i32 = arith.constant 0 : i32
    %c0_i32_0 = arith.constant 0 : i32
    %c0_i32_1 = arith.constant 0 : i32
    return %c0_i32, %c0_i32_0 : i32, i32
  }
  func.func @transform_8(%arg0: i32) -> (i32, i32) {
    %c0_i32 = arith.constant 0 : i32
    %c0_i32_0 = arith.constant 0 : i32
    %c0_i32_1 = arith.constant 0 : i32
    return %c0_i32, %c0_i32_0 : i32, i32
  }
  func.func @transform_9(%arg0: i32) -> (i32, i32) {
    %c0_i32 = arith.constant 0 : i32
    %c0_i32_0 = arith.constant 0 : i32
    %c0_i32_1 = arith.constant 0 : i32
    return %c0_i32, %c0_i32_0 : i32, i32
  }
  func.func @transform_10(%arg0: i32) -> (i32, i32) {
    %c0_i32 = arith.constant 0 : i32
    %c0_i32_0 = arith.constant 0 : i32
    %c0_i32_1 = arith.constant 0 : i32
    return %c0_i32, %c0_i32_0 : i32, i32
  }
  func.func @transform_11(%arg0: i32) -> (i32, i32) {
    %c0_i32 = arith.constant 0 : i32
    %c0_i32_0 = arith.constant 0 : i32
    %c0_i32_1 = arith.constant 0 : i32
    return %c0_i32, %c0_i32_0 : i32, i32
  }
  func.func @transform_12(%arg0: i32) -> (i32, i32) {
    %c0_i32 = arith.constant 0 : i32
    %c0_i32_0 = arith.constant 0 : i32
    %c0_i32_1 = arith.constant 0 : i32
    return %c0_i32, %c0_i32_0 : i32, i32
  }
  func.func @transform_13(%arg0: i32) -> (i32, i32, i32) {
    %c0_i32 = arith.constant 0 : i32
    %c0_i32_0 = arith.constant 0 : i32
    %c0_i32_1 = arith.constant 0 : i32
    return %arg0, %c0_i32, %c0_i32_0 : i32, i32, i32
  }
}

module attributes {stable_mosaic.version = 11 : i64} {
  func.func @fc_head_kernel(%arg0: i32, %arg1: memref<2x2432xf32, #tpu.memory_space<vmem>>, %arg2: memref<2432x100xbf16, #tpu.memory_space<vmem>>, %arg3: memref<1x100xf32, #tpu.memory_space<vmem>>, %arg4: memref<100x50xf32, #tpu.memory_space<vmem>>, %arg5: memref<1x50xf32, #tpu.memory_space<vmem>>, %arg6: memref<50x5xf32, #tpu.memory_space<vmem>>, %arg7: memref<1x5xf32, #tpu.memory_space<vmem>>, %arg8: memref<2x5xf32, #tpu.memory_space<vmem>>, %arg9: memref<2x100xf32, #tpu.memory_space<vmem>>) attributes {dimension_semantics = [#tpu.dimension_semantics<arbitrary>], iteration_bounds = array<i64: 10>, scalar_prefetch = 0 : i64, scratch_operands = 1 : i64, tpu.core_type = #tpu.core_type<tc>, window_params = [{transform_indices = @transform_0, window_bounds = array<i64: 2, 2432>}, {transform_indices = @transform_1, window_bounds = array<i64: 2432, 100>}, {pipeline_mode = #tpu.pipeline_mode<synchronous>, transform_indices = @transform_2, window_bounds = array<i64: 1, 100>}, {pipeline_mode = #tpu.pipeline_mode<synchronous>, transform_indices = @transform_3, window_bounds = array<i64: 100, 50>}, {pipeline_mode = #tpu.pipeline_mode<synchronous>, transform_indices = @transform_4, window_bounds = array<i64: 1, 50>}, {pipeline_mode = #tpu.pipeline_mode<synchronous>, transform_indices = @transform_5, window_bounds = array<i64: 50, 5>}, {pipeline_mode = #tpu.pipeline_mode<synchronous>, transform_indices = @transform_6, window_bounds = array<i64: 1, 5>}, {pipeline_mode = #tpu.pipeline_mode<synchronous>, transform_indices = @transform_7, window_bounds = array<i64: 2, 5>}]} {
    %c0_i32 = arith.constant 0 : i32
    %0 = arith.cmpi eq, %arg0, %c0_i32 : i32
    %1 = arith.extui %0 : i1 to i32
    %c0_i32_0 = arith.constant 0 : i32
    %2 = arith.cmpi ne, %1, %c0_i32_0 : i32
    scf.if %2 {
      %cst_9 = arith.constant 0.000000e+00 : f32
      %13 = vector.broadcast %cst_9 : f32 to vector<2x100xf32>
      %c0_10 = arith.constant 0 : index
      %c0_11 = arith.constant 0 : index
      %14 = vector.load %arg9[%c0_10, %c0_11] : memref<2x100xf32, #tpu.memory_space<vmem>>, vector<2x100xf32>
      tpu.vector_store %arg9[%c0_10, %c0_11], %13 {strides = array<i32>} : memref<2x100xf32, #tpu.memory_space<vmem>>, vector<2x100xf32>,
    } else {
    }
    %c0 = arith.constant 0 : index
    %c0_1 = arith.constant 0 : index
    %3 = vector.load %arg9[%c0, %c0_1] : memref<2x100xf32, #tpu.memory_space<vmem>>, vector<2x100xf32>
    %c0_2 = arith.constant 0 : index
    %c0_3 = arith.constant 0 : index
    %4 = vector.load %arg1[%c0_2, %c0_3] : memref<2x2432xf32, #tpu.memory_space<vmem>>, vector<2x2432xf32>
    %5 = arith.truncf %4 : vector<2x2432xf32> to vector<2x2432xbf16>
    %c0_4 = arith.constant 0 : index
    %c0_5 = arith.constant 0 : index
    %6 = vector.load %arg2[%c0_4, %c0_5] : memref<2432x100xbf16, #tpu.memory_space<vmem>>, vector<2432x100xbf16>
    %cst = arith.constant dense<0.000000e+00> : vector<2x100xf32>
    %7 = tpu.matmul %5, %6, %cst {dimension_numbers = #tpu.dot_dimension_numbers<[1], [0], [0], [1], [0, 0, 1, 1], [], []>} : vector<2x2432xbf16>, vector<2432x100xbf16>, vector<2x100xf32> -> vector<2x100xf32>
    %8 = arith.addf %3, %7 : vector<2x100xf32>
    %c0_6 = arith.constant 0 : index
    %c0_7 = arith.constant 0 : index
    %9 = vector.load %arg9[%c0_6, %c0_7] : memref<2x100xf32, #tpu.memory_space<vmem>>, vector<2x100xf32>
    tpu.vector_store %arg9[%c0_6, %c0_7], %8 {strides = array<i32>} : memref<2x100xf32, #tpu.memory_space<vmem>>, vector<2x100xf32>,
    %c9_i32 = arith.constant 9 : i32
    %10 = arith.cmpi eq, %arg0, %c9_i32 : i32
    %11 = arith.extui %10 : i1 to i32
    %c0_i32_8 = arith.constant 0 : i32
    %12 = arith.cmpi ne, %11, %c0_i32_8 : i32
    scf.if %12 {
      %c0_9 = arith.constant 0 : index
      %c0_10 = arith.constant 0 : index
      %13 = vector.load %arg9[%c0_9, %c0_10] : memref<2x100xf32, #tpu.memory_space<vmem>>, vector<2x100xf32>
      %c0_11 = arith.constant 0 : index
      %c0_12 = arith.constant 0 : index
      %14 = vector.load %arg3[%c0_11, %c0_12] : memref<1x100xf32, #tpu.memory_space<vmem>>, vector<1x100xf32>
      %15 = vector.broadcast %14 : vector<1x100xf32> to vector<2x100xf32>
      %16 = arith.addf %13, %15 : vector<2x100xf32>
      %cst_13 = arith.constant 0.000000e+00 : f32
      %17 = vector.broadcast %cst_13 : f32 to vector<2x100xf32>
      %18 = arith.maximumf %16, %17 : vector<2x100xf32>
      %c0_14 = arith.constant 0 : index
      %c0_15 = arith.constant 0 : index
      %19 = vector.load %arg4[%c0_14, %c0_15] : memref<100x50xf32, #tpu.memory_space<vmem>>, vector<100x50xf32>
      %cst_16 = arith.constant dense<0.000000e+00> : vector<2x50xf32>
      %20 = tpu.matmul %18, %19, %cst_16 {dimension_numbers = #tpu.dot_dimension_numbers<[1], [0], [0], [1], [0, 0, 1, 1], [], []>} : vector<2x100xf32>, vector<100x50xf32>, vector<2x50xf32> -> vector<2x50xf32>
      %c0_17 = arith.constant 0 : index
      %c0_18 = arith.constant 0 : index
      %21 = vector.load %arg5[%c0_17, %c0_18] : memref<1x50xf32, #tpu.memory_space<vmem>>, vector<1x50xf32>
      %22 = vector.broadcast %21 : vector<1x50xf32> to vector<2x50xf32>
      %23 = arith.addf %20, %22 : vector<2x50xf32>
      %cst_19 = arith.constant 0.000000e+00 : f32
      %24 = vector.broadcast %cst_19 : f32 to vector<2x50xf32>
      %25 = arith.maximumf %23, %24 : vector<2x50xf32>
      %c0_20 = arith.constant 0 : index
      %c0_21 = arith.constant 0 : index
      %26 = vector.load %arg6[%c0_20, %c0_21] : memref<50x5xf32, #tpu.memory_space<vmem>>, vector<50x5xf32>
      %cst_22 = arith.constant dense<0.000000e+00> : vector<2x5xf32>
      %27 = tpu.matmul %25, %26, %cst_22 {dimension_numbers = #tpu.dot_dimension_numbers<[1], [0], [0], [1], [0, 0, 1, 1], [], []>} : vector<2x50xf32>, vector<50x5xf32>, vector<2x5xf32> -> vector<2x5xf32>
      %c0_23 = arith.constant 0 : index
      %c0_24 = arith.constant 0 : index
      %28 = vector.load %arg7[%c0_23, %c0_24] : memref<1x5xf32, #tpu.memory_space<vmem>>, vector<1x5xf32>
      %29 = vector.broadcast %28 : vector<1x5xf32> to vector<2x5xf32>
      %30 = arith.addf %27, %29 : vector<2x5xf32>
      %c0_25 = arith.constant 0 : index
      %c0_26 = arith.constant 0 : index
      %31 = vector.load %arg8[%c0_25, %c0_26] : memref<2x5xf32, #tpu.memory_space<vmem>>, vector<2x5xf32>
      tpu.vector_store %arg8[%c0_25, %c0_26], %30 {strides = array<i32>} : memref<2x5xf32, #tpu.memory_space<vmem>>, vector<2x5xf32>,
    } else {
    }
    return
  }
  func.func @transform_0(%arg0: i32) -> (i32, i32) {
    %c0_i32 = arith.constant 0 : i32
    %c0_i32_0 = arith.constant 0 : i32
    return %c0_i32, %arg0 : i32, i32
  }
  func.func @transform_1(%arg0: i32) -> (i32, i32) {
    %c0_i32 = arith.constant 0 : i32
    %c0_i32_0 = arith.constant 0 : i32
    return %arg0, %c0_i32 : i32, i32
  }
  func.func @transform_2(%arg0: i32) -> (i32, i32) {
    %c0_i32 = arith.constant 0 : i32
    %c0_i32_0 = arith.constant 0 : i32
    %c0_i32_1 = arith.constant 0 : i32
    return %c0_i32, %c0_i32_0 : i32, i32
  }
  func.func @transform_3(%arg0: i32) -> (i32, i32) {
    %c0_i32 = arith.constant 0 : i32
    %c0_i32_0 = arith.constant 0 : i32
    %c0_i32_1 = arith.constant 0 : i32
    return %c0_i32, %c0_i32_0 : i32, i32
  }
  func.func @transform_4(%arg0: i32) -> (i32, i32) {
    %c0_i32 = arith.constant 0 : i32
    %c0_i32_0 = arith.constant 0 : i32
    %c0_i32_1 = arith.constant 0 : i32
    return %c0_i32, %c0_i32_0 : i32, i32
  }
  func.func @transform_5(%arg0: i32) -> (i32, i32) {
    %c0_i32 = arith.constant 0 : i32
    %c0_i32_0 = arith.constant 0 : i32
    %c0_i32_1 = arith.constant 0 : i32
    return %c0_i32, %c0_i32_0 : i32, i32
  }
  func.func @transform_6(%arg0: i32) -> (i32, i32) {
    %c0_i32 = arith.constant 0 : i32
    %c0_i32_0 = arith.constant 0 : i32
    %c0_i32_1 = arith.constant 0 : i32
    return %c0_i32, %c0_i32_0 : i32, i32
  }
  func.func @transform_7(%arg0: i32) -> (i32, i32) {
    %c0_i32 = arith.constant 0 : i32
    %c0_i32_0 = arith.constant 0 : i32
    %c0_i32_1 = arith.constant 0 : i32
    return %c0_i32, %c0_i32_0 : i32, i32
  }
}

</mosaic_0001>

<bundles_post_ra>
// kernel: ecg_cnn_forward.2
= control target key start
LH: loop header
LB: loop body
LE: loop exit
PB: predicated region body
PF: predicated region fallthrough
CT: control target
= control target key end

     0   :  { %s3774_s0 = inlined_call_operand.hbm [shape: f32[2,1,200], index: 0, kind: input, shape index: {}]   ;;  %s3775_s1 = inlined_call_operand.vmem [shape: f32[16,3], index: 1, kind: input, shape index: {}]   ;;  %s3776_s2 = inlined_call_operand.vmem [shape: f32[16,1], index: 2, kind: input, shape index: {}]   ;;  %s3777_s3 = inlined_call_operand.hbm [shape: f32[32,48], index: 3, kind: input, shape index: {}]   ;;  %s3778_s4 = inlined_call_operand.vmem [shape: f32[32,1], index: 4, kind: input, shape index: {}]   ;;  %s3779_s5 = inlined_call_operand.vmem [shape: f32[32,1], index: 5, kind: input, shape index: {}]   ;;  %s3780_s6 = inlined_call_operand.vmem [shape: f32[32,1], index: 6, kind: input, shape index: {}]   ;;  %s3781_s7 = inlined_call_operand.hbm [shape: f32[64,96], index: 7, kind: input, shape index: {}]   ;;  %s3782_s8 = inlined_call_operand.vmem [shape: f32[64,1], index: 8, kind: input, shape index: {}]   ;;  %s3783_s9 = inlined_call_operand.vmem [shape: f32[128,192], index: 9, kind: input, shape index: {}]   ;;  %s3784_s10 = inlined_call_operand.vmem [shape: f32[128,1], index: 10, kind: input, shape index: {}]   ;;  %s3785_s11 = inlined_call_operand.vmem [shape: f32[128,1], index: 11, kind: input, shape index: {}]   ;;  %s3786_s12 = inlined_call_operand.vmem [shape: f32[128,1], index: 12, kind: input, shape index: {}]   ;;  %s3787_s13 = inlined_call_operand.vmem [shape: f32[2,128,190], index: 13, kind: output, shape index: {}]  }
   0x1   :  { %3833 = sst [smem:[#allocation20_spill]] %s3777_s3 }
   0x2   :  { %3834 = sst [smem:[#allocation21_spill]] %s3781_s7 }
   0x3   :  { %3835 = sst [smem:[#allocation22_spill]] %s3787_s13 }
   0x4   :  { %18 = vsyncpa [#allocation3], 0 }
   0x5   :  { %20 = vsyncpa [#allocation3 + $0x1], 0 }
   0x6   :  { %21 = vsyncpa [#allocation5], 0  ;;  %s2597_s25 = smov 0   ;;  %s2599_s26 = smov 0  }
   0x7   :  { %s2601_s27 = smov 0   ;;  %s2603_s28 = smov 0  }
   0x8 LB: > { %s2616_s29 = sadd.s32 4294967295, %s2516_s28   ;;  %p47_p0 = scmp.ne.s32.totalorder %s2508_s26, %s2504_s25  ;;  %s2516_s28 = sphi %s2603_s28, %s3904_s28   ;;  %s2512_s27 = sphi %s2601_s27, %s3903_s27   ;;  %s2508_s26 = sphi %s2599_s26, %s3902_s26   ;;  %s2504_s25 = sphi %s2597_s25, %s3901_s25  }
   0x9   : > { %p3788_p1 = scmp.eq.s32.totalorder %s2616_s29, 0  ;;  %p2233_p2 = scmp.ge.s32.totalorder %s2516_s28, 1 }
   0xa   : > { %p336_p3 = scmp.lt.s32.totalorder %s2516_s28, 3  ;;  %s2518_s15 = smov [#allocation4]  }
   0xb   : > { %p2624_p4 = por %p3788_p1, %p47_p0  ;;  %s354_s16 = sshll.u32 %s2518_s15, 4  ;;  %s355_s16 = int_to_ptr.vmem [resolvable:$true] %s354_s16 }
   0xc   : > { %p2628_p5 = pnand %p2233_p2, %p336_p3  ;;  %s2519_s18 = smov [#allocation6]  }
   0xd   : > { %s3836_s30 = scalar_select %p2624_p4, 1, 0 }
   0xe   : > { %s3837_s14 = scalar_select %p2628_p5, 1, 0 }
   0xf   : > { %p2340_p6 = pneg %p2628_p5  ;;  %s376_s19 = sshll.u32 %s2519_s18, 4  ;;  %s377_s19 = int_to_ptr.vmem [resolvable:$true] %s376_s19 }
  0x10   : > { %s2409_s20 = scalar_lea.vmem %s355_s16, 512  ;;  %p2417_p12 = scmp.lt.s32.totalorder %s355_s16, %s355_s16 }
  0x11   : > { %p2636_p7 = pnand %p2340_p6, %p3788_p1  ;;  %p2410_p9 = scmp.ne.s32.totalorder %s355_s16, %s2409_s20 }
  0x12   : > { %p2418_p13 = scmp.lt.s32.totalorder %s2409_s20, %s2409_s20 }
  0x13   : > { %p2400_p8 = pneg %p2636_p7 }
  0x14   : > { %p2419_p0 = por %p2418_p13, %p2417_p12 }
  0x15   : > { %p2412_p10 = pnand %p2410_p9, %p2400_p8 }
  0x17   : > { %p2413_p11 = pneg %p2412_p10 }
  0x19   : > { %p2420_p2 = pnand %p2419_p0, %p2413_p11 }
  0x1b   : > { %2423 = shalt.err (!%p2420_p2)
}
  0x1c   : > { %s2520_s21 = smov 128   ;;  %s2521_s22 = smov 8  }
  0x1d   : > { %s3839_s3 = sld [smem:[#allocation20_spill]]  ;;  %s2435_s25 = scalar_lea.vmem %s377_s19, 1024 }
  0x1e   : > { %p2436_p3 = scmp.ne.s32.totalorder %s377_s19, %s2435_s25  ;;  %p2443_p10 = scmp.lt.s32.totalorder %s377_s19, %s377_s19 }
  0x1f   : > { %p2444_p1 = scmp.lt.s32.totalorder %s2435_s25, %s2435_s25 }
  0x20   : > { %p2438_p6 = pnand %p2436_p3, %p2400_p8 }
  0x21   : > { %p2445_p12 = por %p2444_p1, %p2443_p10 }
  0x22   : > { %p2439_p9 = pneg %p2438_p6 }
  0x23   : > { %2343 = dma.hbm_to_vmem [thread:$0]  (!%p2636_p7), %s3839_s3, 512, %s355_s16, [#allocation5], %s2520_s21, %s2520_s21, %s2521_s22  }
  0x24   : > { %p2446_p11 = pnand %p2445_p12, %p2439_p9 }
  0x26   : > { %2449 = shalt.err (!%p2446_p11)
}
  0x27   : > { %s3840_s7 = sld [smem:[#allocation21_spill]]  ;;  %s2659_s16 = sadd.s32 1, %s2516_s28  }
  0x28   : > { %s34_s20 = sadd.s32 1, %s2512_s27  ;;  %s31_s23 = ssub.s32 %s2516_s28, %s2659_s16 }
  0x29   : > { %p41_p1 = scmp.ne.s32.totalorder %s2512_s27, %s2508_s26  ;;  %p32_p8 = scmp.eq.s32.totalorder %s31_s23, 0 }
  0x2a   : > { %p42_p13 = scmp.eq.s32.totalorder %s2516_s28, 0  ;;  %p2353_p0 = scmp.lt.s32.totalorder %s2516_s28, 2 }
  0x2b   : > { %s405_s17 = sand.u32 1, %s2512_s27   ;;  %s2280_s15 = sshll.u32 %s2516_s28, 5 }
  0x2c   : > { %s2670_s24 = scalar_select %p32_p8, %s2512_s27, %s34_s20  }
  0x2d   : > { %2346 = dma.hbm_to_vmem [thread:$0]  (!%p2636_p7), %s3840_s7, 1024, %s377_s19, [#allocation5], %s2520_s21, %s2520_s21, %s2521_s22  }
  0x2e   : > { %3841 = sst [smem:[#allocation9_spill]] %s2670_s24  ;;  %p43_p2 = por %p42_p13, %p41_p1 }
  0x2f   : > { %s2237_s25 = sshll.u32 %s405_s17, 1  ;;  %s2676_s13 = scalar_lea.hbm %s3774_s0, %s2280_s15 }
  0x30   : > { %s409_s19 = scalar_lea.vmem [#allocation2], %s2237_s25  ;;  %p2678_p7 = pnand %p2353_p0, %p43_p2 }
  0x31   : > { %s417_s21 = sshll.u32 %s409_s19, 4  ;;  %s406_s20 = scalar_lea.sflag [#allocation3], %s405_s17  ;;  %s418_s21 = int_to_ptr.vmem [resolvable:$true] %s417_s21 }
  0x32   : > { %s2450_s23 = scalar_lea.hbm %s2676_s13, 32  ;;  %p2452_p6 = pneg %p2678_p7 }
  0x33   : > { %p2451_p3 = scmp.ne.s32.totalorder %s2676_s13, %s2450_s23  ;;  %s2455_s15 = scalar_lea.hbm %s3774_s0, 64 }
  0x34   : > { %p2456_p12 = scmp.lt.s32.totalorder %s2676_s13, %s3774_s0  ;;  %p2457_p11 = scmp.lt.s32.totalorder %s2455_s15, %s2450_s23 }
  0x35   : > { %p2453_p9 = pnand %p2452_p6, %p2451_p3 }
  0x36   : > { %p2458_p1 = por %p2457_p11, %p2456_p12 }
  0x37   : > { %p2454_p10 = pneg %p2453_p9 }
  0x39   : > { %p2459_p8 = pnand %p2458_p1, %p2454_p10 }
  0x3b   : > { %2462 = shalt.err (!%p2459_p8)
}
  0x3c   : > { %s2463_s19 = scalar_lea.vmem %s418_s21, 32  ;;  %s2522_s17 = smov [#allocation2]  }
  0x3d   : > { %p2464_p13 = scmp.ne.s32.totalorder %s418_s21, %s2463_s19  ;;  %s2468_s7 = sshll.u32 %s2522_s17, 4  ;;  %s2469_s7 = int_to_ptr.vmem [resolvable:$false] %s2468_s7 }
  0x3e   : > { %s2470_s24 = scalar_lea.vmem %s2469_s7, 64  ;;  %p2471_p3 = scmp.lt.s32.totalorder %s418_s21, %s2469_s7 }
  0x3f   : > { %p2466_p0 = pnand %p2464_p13, %p2452_p6  ;;  %p2472_p9 = scmp.lt.s32.totalorder %s2470_s24, %s2463_s19 }
  0x41   : > { %p2467_p2 = pneg %p2466_p0  ;;  %p2473_p4 = por %p2472_p9, %p2471_p3 }
  0x43   : > { %p2474_p5 = pnand %p2473_p4, %p2467_p2 }
  0x45   : > { %2477 = shalt.err (!%p2474_p5)
}
  0x46   : > { %2350 = dma.hbm_to_vmem [thread:$0]  (!%p2678_p7), %s2676_s13, 32, %s418_s21, %s406_s20  }
  0x47   : > { %p3843_p10 = scmp.ne.s32.totalorder %s3837_s14, 0 }
  0x49   : > { %426 = sbr.rel (%p3843_p10) target bundleno = 1837 (0x72d), region = 72 }
  0x4e   : > { %s428_s23 = sand.u32 1, %s2508_s26   ;;  %p3844_p6 = scmp.ne.s32.totalorder %s3836_s30, 0 }
  0x4f   : > { %s2241_s3 = sshll.u32 %s428_s23, 1  ;;  %s429_s28 = scalar_lea.sflag [#allocation3], %s428_s23 }
  0x50   : > { %s432_s15 = scalar_lea.vmem [#allocation2], %s2241_s3 }
  0x51   : > { %2495 = dma.done.wait (%p3844_p6), %s429_s28, 32  }
  0x52   : > { %2497 = vsyncadd (%p3844_p6), %s429_s28, 4294967264  ;;  %p3845_p4 = scmp.eq.s32.totalorder %s2616_s29, 0 }
  0x54   : > { %2499 = dma.done.wait (%p3845_p4), [#allocation5], 1536   ;;  %p3846_p5 = pmov %p3845_p4 }
  0x55   : > { %v494_v0 = vlaneseq  ;;  %v2523_v3 = vmov 0.0   ;;  %v488_v5 = vld [vmem:[%s432_s15] sm:$0x3]  ;;  %s2524_s7 = smov 126   ;;  %s2525_s13 = smov 127   ;;  %v2526_v8 = vmov 0  }
  0x56   : > { %2501 = vsyncadd (%p3846_p5), [#allocation5], 4294965760  ;;  %614 = vmatprep.mubr.f32.mxu0 %v2523_v3  ;;  %768 = vmatprep.mubr.f32.mxu1 %v2523_v3  ;;  %v491_v9 = vld [vmem:[%s3776_s2] sm:$0xff]  ;;  %v492_v10 = vld [vmem:[%s3776_s2 + $0x8] sm:$0xff]  ;;  %vm516_vm0 = vcmask 1031168   ;;  %vm508_vm1 = vcmask 1039360  }
  0x57   : > { %v495_v1 = vshrl.u32 %v494_v0, 7  ;;  %2397 = vset.pattern.permute.xlu1 %v2526_v8  ;;  %2396 = vset.pattern.permute.xlu0 %v2526_v8  ;;  %vm520_vm2 = vcmask 1040384   ;;  %vm523_vm3 = vcmask 1041408   ;;  %vm543_vm4 = vcmask 1042432   ;;  %v489_v20 = vld [vmem:[%s3775_s1] sm:$0xff]  ;;  %v490_v22 = vld [vmem:[%s3775_s1 + $0x8] sm:$0xff] }
  0x58   : > { %vm536_vm5 = vcmask 23552   ;;  %v638_v37 = vld [vmem:[%s3778_s4 + $0x18] sm:$0xff]  ;;  %v637_v38 = vld [vmem:[%s3778_s4 + $0x10] sm:$0xff]  ;;  %v636_v39 = vld [vmem:[%s3778_s4 + $0x8] sm:$0xff]  ;;  %vm691_vm6 = vcmask 392192   ;;  %vm1029_vm7 = vcmask 785408  }
  0x59   : > { %v496_v2 = vsub.s32 0, %v495_v1  ;;  %v500_v4 = vsub.s32 1, %v495_v1  ;;  %v635_v40 = vld [vmem:[%s3778_s4] sm:$0xff]  ;;  %v804_v41 = vld [vmem:[%s3779_s5 + $0x18] sm:$0xff]  ;;  %v803_v42 = vld [vmem:[%s3779_s5 + $0x10] sm:$0xff]  ;;  %vm1439_vm8 = vcmask 523264  }
  0x5a   : > { %v808_v43 = vld [vmem:[%s3780_s6 + $0x18] sm:$0xff]  ;;  %v802_v44 = vld [vmem:[%s3779_s5 + $0x8] sm:$0xff]  ;;  %v807_v45 = vld [vmem:[%s3780_s6 + $0x10] sm:$0xff]  ;;  %p483_p7 = scmp.lt.s32.totalorder %s2616_s29, 1  ;;  %s3859_s22 = sld [smem:[#allocation22_spill]]  ;;  %vm2114_vm9 = vcmask 506880  }
  0x5b   : > { %v497_v6 = vrot.slane %v488_v5, %v496_v2  ;;  %v501_v7 = vrot.slane %v488_v5, %v500_v4  ;;  %v801_v46 = vld [vmem:[%s3779_s5] sm:$0xff]  ;;  %v632_v60 = vld [vmem:[#allocation4 + $0x8] sm:$0xff]  ;;  %v633_v61 = vld [vmem:[#allocation4 + $0x10] sm:$0xff] }
  0x5c   : > { %v631_v59 = vld [vmem:[#allocation4] sm:$0xff]  ;;  %v634_v62 = vld [vmem:[#allocation4 + $0x18] sm:$0xff]  ;;  %s3906_s29 = smov (!%p483_p7, %s2616_s29), 1 }
  0x5d   : > { %512 = vrot.lane.b32.xlu1 %v497_v6, %s2524_s7  ;;  %504 = vrot.lane.b32.xlu0 %v497_v6, %s2525_s13 }
  0x61   : > { %514 = vrot.lane.b32.xlu1 %v501_v7, %s2524_s7  ;;  %506 = vrot.lane.b32.xlu0 %v501_v7, %s2525_s13 }
  0x65   : > { %528 = vperm.xlu1 %2397, %v491_v9   ;;  %533 = vperm.xlu0 %2396, %v492_v10  }
  0xcf   : > { %v513_v11 = vpop.permute.xlu1 %512  ;;  %v505_v12 = vpop.permute.xlu0 %504 }
  0xd3   : > { %v515_v13 = vpop.permute.xlu1 %514  ;;  %v507_v14 = vpop.permute.xlu0 %506 }
  0xd4   : > { %v517_v15 = vsel %vm516_vm0, %v513_v11, %v515_v13  ;;  %v509_v16 = vsel %vm508_vm1, %v505_v12, %v507_v14  ;;  %v522_v17 = vsel %vm520_vm2, %v501_v7, %v507_v14 }
  0xd5   : > { %v525_v18 = vsel %vm523_vm3, %v522_v17, %v515_v13  ;;  %v521_v19 = vsel %vm520_vm2, %v497_v6, %v509_v16 }
  0xd6   : > { %2246 = vmatprep.subr.msk.mxu0 %vm543_vm4, %v525_v18  ;;  %v524_v21 = vsel %vm523_vm3, %v521_v19, %v517_v15 }
  0xd7   : > { %2247 = vmatpush1.msk.msra.mxu0 %vm543_vm4, %v524_v21 }
  0xd8   : > { %2248 = vmatmul.mubr.msk.f32.vlgmr.msra.gmra.mxu0 %vm536_vm5, %v489_v20 }
  0xd9   : > { %620 = vmatprep.mubr.f32.mxu0 %v2523_v3 }
  0xdc   : > { %2249 = vmatmul.mubr.msk.f32.gmra.mxu0 %vm536_vm5, %v490_v22 }
  0xdd   : > { %1118 = vmatprep.mubr.f32.mxu0 %v2523_v3 }
  0xe0   : > { %v529_v23 = vpop.permute.xlu1 %528  ;;  %v534_v27 = vpop.permute.xlu0 %533 }
 0x198   : > { %v616_v24 = vpop.f32.mrf.mxu0 }
 0x199   : > { %v617_v25 = vadd.f32 %v616_v24, %v529_v23 }
 0x19a   : > { %v618_v26 = vpop.f32.mrf.mxu0 }
 0x19b   : > { %v627_v28 = vmax.f32 %v617_v25, 0.0  ;;  %v619_v29 = vadd.f32 %v618_v26, %v529_v23  ;;  %v806_v26 = vld [vmem:[%s3780_s6 + $0x8] sm:$0xff] }
 0x19c   : > { %v622_v30 = vpop.f32.mrf.mxu0 }
 0x19d   : > { %v628_v31 = vmax.f32 %v619_v29, 0.0  ;;  %v623_v32 = vadd.f32 %v622_v30, %v534_v27  ;;  %657 = vrot.lane.b32.xlu1 %v627_v28, %s2524_s7 }
 0x19e   : > { %v624_v33 = vpop.f32.mrf.mxu0 }
 0x19f   : > { %v625_v34 = vadd.f32 %v624_v33, %v534_v27  ;;  %659 = vrot.lane.b32.xlu0 %v628_v31, %s2524_s7  ;;  %v629_v35 = vmax.f32 %v623_v32, 0.0 }
 0x1a1   : > { %v630_v36 = vmax.f32 %v625_v34, 0.0  ;;  %661 = vrot.lane.b32.xlu1 %v629_v35, %s2524_s7 }
 0x1a3   : > { %663 = vrot.lane.b32.xlu0 %v630_v36, %s2524_s7 }
 0x1a5   : > { %647 = vrot.lane.b32.xlu1 %v629_v35, %s2525_s13 }
 0x1a7   : > { %649 = vrot.lane.b32.xlu0 %v630_v36, %s2525_s13 }
 0x1a9   : > { %643 = vrot.lane.b32.xlu1 %v627_v28, %s2525_s13 }
 0x1ab   : > { %645 = vrot.lane.b32.xlu0 %v628_v31, %s2525_s13 }
 0x1ad   : > { %688 = vperm.xlu1 %2397, %v638_v37  }
 0x1af   : > { %683 = vperm.xlu0 %2396, %v637_v38  }
 0x1b1   : > { %678 = vperm.xlu1 %2397, %v636_v39  }
 0x1b3   : > { %673 = vperm.xlu0 %2396, %v635_v40  }
 0x1b5   : > { %870 = vperm.xlu1 %2397, %v804_v41  }
 0x1b7   : > { %865 = vperm.xlu0 %2396, %v803_v42  }
 0x1b9   : > { %898 = vperm.xlu1 %2397, %v808_v43  }
 0x1bb   : > { %860 = vperm.xlu0 %2396, %v802_v44  }
 0x1bd   : > { %893 = vperm.xlu1 %2397, %v807_v45  }
 0x1bf   : > { %855 = vperm.xlu0 %2396, %v801_v46  }
 0x20f   : > { %v658_v47 = vpop.permute.xlu1 %657 }
 0x211   : > { %v660_v48 = vpop.permute.xlu0 %659 }
 0x212   : > { %v665_v53 = vsel %vm516_vm0, %v658_v47, %v660_v48 }
 0x213   : > { %v662_v49 = vpop.permute.xlu1 %661 }
 0x215   : > { %v664_v50 = vpop.permute.xlu0 %663 }
 0x216   : > { %724 = vmatprep.subr.mxu1 %v664_v50  ;;  %v666_v51 = vsel %vm516_vm0, %v662_v49, %v664_v50 }
 0x217   : > { %v648_v52 = vpop.permute.xlu1 %647  ;;  %725 = vmatpush1.msra.mxu1 %v666_v51 }
 0x218   : > { %726 = vmatprep.subr.mxu1 %v660_v48 }
 0x219   : > { %727 = vmatpush1.msra.mxu1 %v665_v53  ;;  %v650_v54 = vpop.permute.xlu0 %649 }
 0x21a   : > { %728 = vmatprep.subr.mxu1 %v650_v54  ;;  %v652_v55 = vsel %vm508_vm1, %v648_v52, %v650_v54 }
 0x21b   : > { %729 = vmatpush1.msra.mxu1 %v652_v55  ;;  %v644_v56 = vpop.permute.xlu1 %643 }
 0x21d   : > { %v646_v57 = vpop.permute.xlu0 %645 }
 0x21e   : > { %730 = vmatprep.subr.mxu1 %v646_v57  ;;  %v651_v58 = vsel %vm508_vm1, %v644_v56, %v646_v57 }
 0x21f   : > { %731 = vmatpush1.msra.mxu1 %v651_v58 }
 0x220   : > { %732 = vmatprep.subr.mxu1 %v630_v36 }
 0x221   : > { %733 = vmatpush1.msra.mxu1 %v629_v35 }
 0x222   : > { %734 = vmatprep.subr.mxu1 %v628_v31 }
 0x223   : > { %735 = vmatpush1.msra.mxu1 %v627_v28  ;;  %v805_v28 = vld [vmem:[%s3780_s6] sm:$0xff] }
 0x224   : > { %2250 = vmatmul.mubr.msk.f32.vlgmr.msra.gmra.mxu1 %vm691_vm6, %v631_v59 }
 0x225   : > { %774 = vmatprep.mubr.f32.mxu1 %v2523_v3 }
 0x228   : > { %2251 = vmatmul.mubr.msk.f32.gmra.mxu1 %vm691_vm6, %v632_v60  ;;  %v689_v63 = vpop.permute.xlu1 %688 }
 0x229   : > { %780 = vmatprep.mubr.f32.mxu1 %v2523_v3 }
 0x22a   : > { %v684_v9 = vpop.permute.xlu0 %683 }
 0x22c   : > { %2252 = vmatmul.mubr.msk.f32.gmra.mxu1 %vm691_vm6, %v633_v61  ;;  %v679_v2 = vpop.permute.xlu1 %678 }
 0x22d   : > { %786 = vmatprep.mubr.f32.mxu1 %v2523_v3 }
 0x22e   : > { %v674_v19 = vpop.permute.xlu0 %673 }
 0x230   : > { %2253 = vmatmul.mubr.msk.f32.gmra.mxu1 %vm691_vm6, %v634_v62  ;;  %v871_v30 = vpop.permute.xlu1 %870 }
 0x232   : > { %v866_v31 = vpop.permute.xlu0 %865 }
 0x234   : > { %v899_v32 = vpop.permute.xlu1 %898 }
 0x236   : > { %v861_v33 = vpop.permute.xlu0 %860 }
 0x238   : > { %v894_v34 = vpop.permute.xlu1 %893 }
 0x23a   : > { %v856_v35 = vpop.permute.xlu0 %855 }
 0x2e4   : > { %v770_v0 = vpop.f32.mrf.mxu1 }
 0x2e5   : > { %v771_v21 = vadd.f32 %v770_v0, %v674_v19 }
 0x2e6   : > { %v772_v1 = vpop.f32.mrf.mxu1 }
 0x2e7   : > { %v793_v25 = vmax.f32 %v771_v21, 0.0  ;;  %v773_v27 = vadd.f32 %v772_v1, %v674_v19 }
 0x2e8   : > { %v776_v4 = vpop.f32.mrf.mxu1 }
 0x2e9   : > { %v777_v5 = vadd.f32 %v776_v4, %v679_v2  ;;  %v794_v29 = vmax.f32 %v773_v27, 0.0 }
 0x2ea   : > { %v778_v6 = vpop.f32.mrf.mxu1 }
 0x2eb   : > { %v795_v7 = vmax.f32 %v777_v5, 0.0  ;;  %v779_v8 = vadd.f32 %v778_v6, %v679_v2 }
 0x2ec   : > { %v782_v10 = vpop.f32.mrf.mxu1 }
 0x2ed   : > { %v796_v11 = vmax.f32 %v779_v8, 0.0  ;;  %v783_v12 = vadd.f32 %v782_v10, %v684_v9  ;;  %821 = vrot.lane.b32.xlu0 %v795_v7, %s2525_s13 }
 0x2ee   : > { %v784_v13 = vpop.f32.mrf.mxu1 }
 0x2ef   : > { %v797_v14 = vmax.f32 %v783_v12, 0.0  ;;  %v785_v15 = vadd.f32 %v784_v13, %v684_v9  ;;  %823 = vrot.lane.b32.xlu1 %v796_v11, %s2525_s13  ;;  %v924_v12 = vld [vmem:[%s3782_s8 + $0x38] sm:$0xff]  ;;  %v921_v13 = vld [vmem:[%s3782_s8 + $0x20] sm:$0xff] }
 0x2f0   : > { %v788_v16 = vpop.f32.mrf.mxu1 }
 0x2f1   : > { %v798_v17 = vmax.f32 %v785_v15, 0.0  ;;  %v789_v18 = vadd.f32 %v788_v16, %v689_v63  ;;  %825 = vrot.lane.b32.xlu0 %v797_v14, %s2525_s13  ;;  %v919_v15 = vld [vmem:[%s3782_s8 + $0x10] sm:$0xff]  ;;  %v920_v16 = vld [vmem:[%s3782_s8 + $0x18] sm:$0xff] }
 0x2f2   : > { %v790_v20 = vpop.f32.mrf.mxu1 }
 0x2f3   : > { %v799_v22 = vmax.f32 %v789_v18, 0.0  ;;  %v791_v23 = vadd.f32 %v790_v20, %v689_v63  ;;  %827 = vrot.lane.b32.xlu1 %v798_v17, %s2525_s13  ;;  %v918_v18 = vld [vmem:[%s3782_s8 + $0x8] sm:$0xff] }
 0x2f5   : > { %v800_v24 = vmax.f32 %v791_v23, 0.0  ;;  %829 = vrot.lane.b32.xlu0 %v799_v22, %s2525_s13 }
 0x2f7   : > { %831 = vrot.lane.b32.xlu1 %v800_v24, %s2525_s13 }
 0x2f9   : > { %817 = vrot.lane.b32.xlu0 %v793_v25, %s2525_s13 }
 0x2fb   : > { %888 = vperm.xlu1 %2397, %v806_v26  }
 0x2fd   : > { %883 = vperm.xlu0 %2396, %v805_v28  }
 0x2ff   : > { %819 = vrot.lane.b32.xlu1 %v794_v29, %s2525_s13 }
 0x35f   : > { %v822_v37 = vpop.permute.xlu0 %821 }
 0x361   : > { %v824_v36 = vpop.permute.xlu1 %823 }
 0x362   : > { %v834_v45 = vsel %vm508_vm1, %v822_v37, %v824_v36  ;;  %v848_v49 = vmax.f32 %v796_v11, %v824_v36  ;;  %v923_v11 = vld [vmem:[%s3782_s8 + $0x30] sm:$0xff] }
 0x363   : > { %v826_v39 = vpop.permute.xlu0 %825  ;;  %v847_v52 = vmax.f32 %v795_v7, %v834_v45  ;;  %v911_v45 = vld [vmem:[#allocation6 + $0x10] sm:$0xff] }
 0x364   : > { %v876_v60 = vmul.f32 %v861_v33, %v848_v49  ;;  %v915_v49 = vld [vmem:[#allocation6 + $0x30] sm:$0xff] }
 0x365   : > { %v828_v38 = vpop.permute.xlu1 %827  ;;  %v875_v61 = vmul.f32 %v861_v33, %v847_v52 }
 0x366   : > { %v835_v50 = vsel %vm508_vm1, %v826_v39, %v828_v38  ;;  %v850_v55 = vmax.f32 %v798_v17, %v828_v38  ;;  %v917_v17 = vld [vmem:[%s3782_s8] sm:$0xff] }
 0x367   : > { %v830_v41 = vpop.permute.xlu0 %829  ;;  %v849_v57 = vmax.f32 %v797_v14, %v835_v50  ;;  %v922_v14 = vld [vmem:[%s3782_s8 + $0x28] sm:$0xff]  ;;  %v916_v50 = vld [vmem:[#allocation6 + $0x38] sm:$0xff] }
 0x368   : > { %v878_v62 = vmul.f32 %v866_v31, %v850_v55 }
 0x369   : > { %v832_v40 = vpop.permute.xlu1 %831  ;;  %v877_v4 = vmul.f32 %v866_v31, %v849_v57 }
 0x36a   : > { %v836_v59 = vsel %vm508_vm1, %v830_v41, %v832_v40  ;;  %v852_v63 = vmax.f32 %v800_v24, %v832_v40  ;;  %v2808_v6 = vadd.f32 %v894_v34, %v878_v62 }
 0x36b   : > { %v818_v43 = vpop.permute.xlu0 %817  ;;  %v851_v1 = vmax.f32 %v799_v22, %v836_v59  ;;  %v2810_v7 = vadd.f32 %v894_v34, %v877_v4 }
 0x36c   : > { %v880_v5 = vmul.f32 %v871_v30, %v852_v63 }
 0x36d   : > { %v879_v8 = vmul.f32 %v871_v30, %v851_v1 }
 0x36e   : > { %v2816_v9 = vadd.f32 %v899_v32, %v880_v5 }
 0x36f   : > { %v2818_v10 = vadd.f32 %v899_v32, %v879_v8 }
 0x376   : > { %v889_v42 = vpop.permute.xlu1 %888 }
 0x377   : > { %v2800_v0 = vadd.f32 %v889_v42, %v876_v60  ;;  %v2802_v2 = vadd.f32 %v889_v42, %v875_v61 }
 0x378   : > { %v884_v53 = vpop.permute.xlu0 %883 }
 0x37a   : > { %v820_v44 = vpop.permute.xlu1 %819 }
 0x37b   : > { %v833_v46 = vsel %vm508_vm1, %v818_v43, %v820_v44  ;;  %v846_v47 = vmax.f32 %v794_v29, %v820_v44  ;;  %v909_v43 = vld [vmem:[#allocation6] sm:$0xff]  ;;  %v910_v44 = vld [vmem:[#allocation6 + $0x8] sm:$0xff] }
 0x37c   : > { %v845_v48 = vmax.f32 %v793_v25, %v833_v46  ;;  %v912_v46 = vld [vmem:[#allocation6 + $0x18] sm:$0xff] }
 0x37d   : > { %v874_v51 = vmul.f32 %v856_v35, %v846_v47  ;;  %v913_v47 = vld [vmem:[#allocation6 + $0x20] sm:$0xff] }
 0x37e   : > { %v873_v54 = vmul.f32 %v856_v35, %v845_v48  ;;  %v914_v48 = vld [vmem:[#allocation6 + $0x28] sm:$0xff] }
 0x37f   : > { %v2791_v56 = vadd.f32 %v884_v53, %v874_v51 }
 0x380   : > { %v2793_v58 = vadd.f32 %v884_v53, %v873_v54 }
 0x381   : > { %963 = vrot.lane.b32.xlu0 %v2791_v56, %s2524_s7 }
 0x382   : > { %961 = vrot.lane.b32.xlu1 %v2793_v58, %s2524_s7 }
 0x385   : > { %967 = vrot.lane.b32.xlu0 %v2800_v0, %s2524_s7 }
 0x386   : > { %965 = vrot.lane.b32.xlu1 %v2802_v2, %s2524_s7 }
 0x389   : > { %971 = vrot.lane.b32.xlu0 %v2808_v6, %s2524_s7 }
 0x38a   : > { %969 = vrot.lane.b32.xlu1 %v2810_v7, %s2524_s7 }
 0x38d   : > { %975 = vrot.lane.b32.xlu0 %v2816_v9, %s2524_s7 }
 0x38e   : > { %973 = vrot.lane.b32.xlu1 %v2818_v10, %s2524_s7 }
 0x391   : > { %947 = vrot.lane.b32.xlu0 %v2816_v9, %s2525_s13 }
 0x392   : > { %941 = vrot.lane.b32.xlu1 %v2810_v7, %s2525_s13 }
 0x395   : > { %943 = vrot.lane.b32.xlu0 %v2808_v6, %s2525_s13 }
 0x396   : > { %945 = vrot.lane.b32.xlu1 %v2818_v10, %s2525_s13 }
 0x399   : > { %939 = vrot.lane.b32.xlu0 %v2800_v0, %s2525_s13 }
 0x39a   : > { %937 = vrot.lane.b32.xlu1 %v2802_v2, %s2525_s13 }
 0x39d   : > { %935 = vrot.lane.b32.xlu0 %v2791_v56, %s2525_s13 }
 0x39e   : > { %933 = vrot.lane.b32.xlu1 %v2793_v58, %s2525_s13 }
 0x3a1   : > { %1021 = vperm.xlu0 %2396, %v923_v11  }
 0x3a2   : > { %1026 = vperm.xlu1 %2397, %v924_v12  }
 0x3a5   : > { %1011 = vperm.xlu0 %2396, %v921_v13  }
 0x3a6   : > { %1016 = vperm.xlu1 %2397, %v922_v14  }
 0x3a9   : > { %1001 = vperm.xlu0 %2396, %v919_v15  }
 0x3aa   : > { %1006 = vperm.xlu1 %2397, %v920_v16  }
 0x3ad   : > { %991 = vperm.xlu0 %2396, %v917_v17  }
 0x3ae   : > { %996 = vperm.xlu1 %2397, %v918_v18  }
 0x3f3   : > { %v964_v19 = vpop.permute.xlu0 %963 }
 0x3f4   : > { %v962_v20 = vpop.permute.xlu1 %961 }
 0x3f5   : > { %v977_v32 = vsel %vm516_vm0, %v962_v20, %v964_v19 }
 0x3f7   : > { %v968_v21 = vpop.permute.xlu0 %967 }
 0x3f8   : > { %v966_v22 = vpop.permute.xlu1 %965 }
 0x3f9   : > { %v978_v31 = vsel %vm516_vm0, %v966_v22, %v968_v21 }
 0x3fb   : > { %v972_v23 = vpop.permute.xlu0 %971 }
 0x3fc   : > { %v970_v24 = vpop.permute.xlu1 %969 }
 0x3fd   : > { %v979_v28 = vsel %vm516_vm0, %v970_v24, %v972_v23 }
 0x3ff   : > { %v976_v25 = vpop.permute.xlu0 %975 }
 0x400   : > { %1062 = vmatprep.subr.mxu0 %v976_v25  ;;  %v974_v26 = vpop.permute.xlu1 %973 }
 0x401   : > { %v980_v27 = vsel %vm516_vm0, %v974_v26, %v976_v25 }
 0x402   : > { %1063 = vmatpush1.msra.mxu0 %v980_v27 }
 0x403   : > { %v948_v29 = vpop.permute.xlu0 %947  ;;  %1064 = vmatprep.subr.mxu0 %v972_v23 }
 0x404   : > { %1065 = vmatpush1.msra.mxu0 %v979_v28  ;;  %v942_v30 = vpop.permute.xlu1 %941 }
 0x405   : > { %1066 = vmatprep.subr.mxu0 %v968_v21 }
 0x406   : > { %1067 = vmatpush1.msra.mxu0 %v978_v31 }
 0x407   : > { %v944_v33 = vpop.permute.xlu0 %943  ;;  %1068 = vmatprep.subr.mxu0 %v964_v19 }
 0x408   : > { %1069 = vmatpush1.msra.mxu0 %v977_v32  ;;  %v946_v34 = vpop.permute.xlu1 %945  ;;  %v951_v37 = vsel %vm508_vm1, %v942_v30, %v944_v33 }
 0x409   : > { %v952_v35 = vsel %vm508_vm1, %v946_v34, %v948_v29  ;;  %1070 = vmatprep.subr.mxu0 %v948_v29 }
 0x40a   : > { %1071 = vmatpush1.msra.mxu0 %v952_v35 }
 0x40b   : > { %v940_v36 = vpop.permute.xlu0 %939  ;;  %1072 = vmatprep.subr.mxu0 %v944_v33 }
 0x40c   : > { %1073 = vmatpush1.msra.mxu0 %v951_v37  ;;  %v938_v38 = vpop.permute.xlu1 %937 }
 0x40d   : > { %v950_v39 = vsel %vm508_vm1, %v938_v38, %v940_v36  ;;  %1074 = vmatprep.subr.mxu0 %v940_v36 }
 0x40e   : > { %1075 = vmatpush1.msra.mxu0 %v950_v39 }
 0x40f   : > { %v936_v40 = vpop.permute.xlu0 %935 }
 0x410   : > { %1076 = vmatprep.subr.mxu0 %v936_v40  ;;  %v934_v41 = vpop.permute.xlu1 %933 }
 0x411   : > { %v949_v42 = vsel %vm508_vm1, %v934_v41, %v936_v40 }
 0x412   : > { %1077 = vmatpush1.msra.mxu0 %v949_v42 }
 0x413   : > { %1078 = vmatprep.subr.mxu0 %v2816_v9 }
 0x414   : > { %1079 = vmatpush1.msra.mxu0 %v2818_v10 }
 0x415   : > { %1080 = vmatprep.subr.mxu0 %v2808_v6 }
 0x416   : > { %1081 = vmatpush1.msra.mxu0 %v2810_v7 }
 0x417   : > { %1082 = vmatprep.subr.mxu0 %v2800_v0 }
 0x418   : > { %1083 = vmatpush1.msra.mxu0 %v2802_v2 }
 0x419   : > { %1084 = vmatprep.subr.mxu0 %v2791_v56 }
 0x41a   : > { %1085 = vmatpush1.msra.mxu0 %v2793_v58 }
 0x41b   : > { %2254 = vmatmul.mubr.msk.f32.vlgmr.msra.gmra.mxu0 %vm1029_vm7, %v909_v43  ;;  %v1184_v43 = vld [vmem:[%s3783_s9 + $0x8] sm:$0xff] }
 0x41c   : > { %1124 = vmatprep.mubr.f32.mxu0 %v2523_v3  ;;  %v1022_v56 = vpop.permute.xlu0 %1021 }
 0x41d   : > { %v1027_v59 = vpop.permute.xlu1 %1026 }
 0x41f   : > { %2255 = vmatmul.mubr.msk.f32.gmra.mxu0 %vm1029_vm7, %v910_v44  ;;  %v1196_v44 = vld [vmem:[%s3783_s9 + $0x68] sm:$0xff] }
 0x420   : > { %1130 = vmatprep.mubr.f32.mxu0 %v2523_v3  ;;  %v1012_v61 = vpop.permute.xlu0 %1011  ;;  %2268 = vmatprep.mubr.msk.f32.mxu1 %vm1439_vm8, %v1196_v44  ;;  %v1700_v44 = vld [vmem:[%s3786_s12 + $0x18] sm:$0xff] }
 0x421   : > { %v1017_v2 = vpop.permute.xlu1 %1016 }
 0x423   : > { %2256 = vmatmul.mubr.msk.f32.gmra.mxu0 %vm1029_vm7, %v911_v45  ;;  %v1215_v45 = vld [vmem:[%s3784_s10] sm:$0xff] }
 0x424   : > { %1136 = vmatprep.mubr.f32.mxu0 %v2523_v3  ;;  %v1002_v26 = vpop.permute.xlu0 %1001 }
 0x425   : > { %v1007_v19 = vpop.permute.xlu1 %1006 }
 0x427   : > { %2257 = vmatmul.mubr.msk.f32.gmra.mxu0 %vm1029_vm7, %v912_v46  ;;  %v1216_v46 = vld [vmem:[%s3784_s10 + $0x8] sm:$0xff] }
 0x428   : > { %1142 = vmatprep.mubr.f32.mxu0 %v2523_v3  ;;  %v992_v36 = vpop.permute.xlu0 %991 }
 0x429   : > { %v997_v31 = vpop.permute.xlu1 %996 }
 0x42b   : > { %2258 = vmatmul.mubr.msk.f32.gmra.mxu0 %vm1029_vm7, %v913_v47  ;;  %v1217_v47 = vld [vmem:[%s3784_s10 + $0x10] sm:$0xff] }
 0x42c   : > { %1148 = vmatprep.mubr.f32.mxu0 %v2523_v3 }
 0x42f   : > { %2259 = vmatmul.mubr.msk.f32.gmra.mxu0 %vm1029_vm7, %v914_v48  ;;  %v1218_v48 = vld [vmem:[%s3784_s10 + $0x18] sm:$0xff] }
 0x430   : > { %1154 = vmatprep.mubr.f32.mxu0 %v2523_v3 }
 0x433   : > { %2260 = vmatmul.mubr.msk.f32.gmra.mxu0 %vm1029_vm7, %v915_v49  ;;  %v1219_v49 = vld [vmem:[%s3784_s10 + $0x20] sm:$0xff] }
 0x434   : > { %1160 = vmatprep.mubr.f32.mxu0 %v2523_v3 }
 0x437   : > { %2261 = vmatmul.mubr.msk.f32.gmra.mxu0 %vm1029_vm7, %v916_v50  ;;  %v1220_v50 = vld [vmem:[%s3784_s10 + $0x28] sm:$0xff] }
 0x438   : > { %2262 = vmatprep.mubr.msk.f32.mxu0 %vm1439_vm8, %v1184_v43 }
 0x4db   : > { %v1120_v51 = vpop.f32.mrf.mxu0 }
 0x4dc   : > { %v1121_v37 = vadd.f32 %v1120_v51, %v992_v36  ;;  %v1221_v51 = vld [vmem:[%s3784_s10 + $0x30] sm:$0xff] }
 0x4dd   : > { %v2895_v52 = vpop.f32.mrf.mxu0 }
 0x4de   : > { %v1123_v39 = vadd.f32 %v2895_v52, %v992_v36  ;;  %v2952_v41 = vmax.f32 %v1121_v37, 0.0  ;;  %v1222_v52 = vld [vmem:[%s3784_s10 + $0x38] sm:$0xff]  ;;  %v1699_v36 = vld [vmem:[%s3786_s12 + $0x10] sm:$0xff] }
 0x4df   : > { %v1126_v53 = vpop.f32.mrf.mxu0 }
 0x4e0   : > { %v1127_v32 = vadd.f32 %v1126_v53, %v997_v31  ;;  %v2956_v42 = vmax.f32 %v1123_v39, 0.0  ;;  %v1223_v53 = vld [vmem:[%s3784_s10 + $0x40] sm:$0xff] }
 0x4e1   : > { %v1128_v54 = vpop.f32.mrf.mxu0 }
 0x4e2   : > { %v1129_v34 = vadd.f32 %v1128_v54, %v997_v31  ;;  %v2943_v38 = vmax.f32 %v1127_v32, 0.0  ;;  %v1224_v54 = vld [vmem:[%s3784_s10 + $0x48] sm:$0xff] }
 0x4e3   : > { %v1132_v55 = vpop.f32.mrf.mxu0  ;;  %v1698_v31 = vld [vmem:[%s3786_s12 + $0x8] sm:$0xff] }
 0x4e4   : > { %v1133_v27 = vadd.f32 %v1132_v55, %v1002_v26  ;;  %v2948_v40 = vmax.f32 %v1129_v34, 0.0  ;;  %v1225_v55 = vld [vmem:[%s3784_s10 + $0x50] sm:$0xff] }
 0x4e5   : > { %v1134_v57 = vpop.f32.mrf.mxu0 }
 0x4e6   : > { %v1135_v29 = vadd.f32 %v1134_v57, %v1002_v26  ;;  %v2935_v33 = vmax.f32 %v1133_v27, 0.0  ;;  %v1227_v57 = vld [vmem:[%s3784_s10 + $0x60] sm:$0xff] }
 0x4e7   : > { %v1138_v58 = vpop.f32.mrf.mxu0  ;;  %v1697_v27 = vld [vmem:[%s3786_s12] sm:$0xff] }
 0x4e8   : > { %v1139_v21 = vadd.f32 %v1138_v58, %v1007_v19  ;;  %v2939_v35 = vmax.f32 %v1135_v29, 0.0  ;;  %v1228_v58 = vld [vmem:[%s3784_s10 + $0x68] sm:$0xff] }
 0x4e9   : > { %v1140_v60 = vpop.f32.mrf.mxu0 }
 0x4ea   : > { %v1141_v24 = vadd.f32 %v1140_v60, %v1007_v19  ;;  %v2927_v28 = vmax.f32 %v1139_v21, 0.0  ;;  %v1230_v60 = vld [vmem:[%s3784_s10 + $0x78] sm:$0xff]  ;;  %v1694_v19 = vld [vmem:[%s3785_s11 + $0x68] sm:$0xff]  ;;  %v1695_v21 = vld [vmem:[%s3785_s11 + $0x70] sm:$0xff] }
 0x4eb   : > { %v1144_v62 = vpop.f32.mrf.mxu0 }
 0x4ec   : > { %v1145_v63 = vadd.f32 %v1144_v62, %v1012_v61  ;;  %v2931_v30 = vmax.f32 %v1141_v24, 0.0  ;;  %v1682_v62 = vld [vmem:[%s3785_s11 + $0x8] sm:$0xff]  ;;  %v1696_v24 = vld [vmem:[%s3785_s11 + $0x78] sm:$0xff] }
 0x4ed   : > { %v1146_v0 = vpop.f32.mrf.mxu0 }
 0x4ee   : > { %v2897_v1 = vmax.f32 %v1145_v63, 0.0  ;;  %v1147_v3 = vadd.f32 %v1146_v0, %v1012_v61  ;;  %v1681_v61 = vld [vmem:[%s3785_s11] sm:$0xff]  ;;  %v1683_v63 = vld [vmem:[%s3785_s11 + $0x10] sm:$0xff]  ;;  %v1684_v0 = vld [vmem:[%s3785_s11 + $0x18] sm:$0xff] }
 0x4ef   : > { %v1150_v4 = vpop.f32.mrf.mxu0 }
 0x4f0   : > { %v2899_v5 = vmax.f32 %v1147_v3, 0.0  ;;  %v1151_v6 = vadd.f32 %v1150_v4, %v1017_v2  ;;  %1263 = vrot.lane.b32.xlu1 %v2897_v1, %s2525_s13  ;;  %v1685_v3 = vld [vmem:[%s3785_s11 + $0x20] sm:$0xff]  ;;  %v1687_v4 = vld [vmem:[%s3785_s11 + $0x30] sm:$0xff] }
 0x4f1   : > { %v1152_v7 = vpop.f32.mrf.mxu0 }
 0x4f2   : > { %v2903_v8 = vmax.f32 %v1151_v6, 0.0  ;;  %v1153_v9 = vadd.f32 %v1152_v7, %v1017_v2  ;;  %1265 = vrot.lane.b32.xlu0 %v2899_v5, %s2525_s13  ;;  %v1686_v2 = vld [vmem:[%s3785_s11 + $0x28] sm:$0xff]  ;;  %v1688_v6 = vld [vmem:[%s3785_s11 + $0x38] sm:$0xff]  ;;  %v1689_v7 = vld [vmem:[%s3785_s11 + $0x40] sm:$0xff] }
 0x4f3   : > { %v1156_v10 = vpop.f32.mrf.mxu0 }
 0x4f4   : > { %v2907_v11 = vmax.f32 %v1153_v9, 0.0  ;;  %v1157_v12 = vadd.f32 %v1156_v10, %v1022_v56  ;;  %1267 = vrot.lane.b32.xlu1 %v2903_v8, %s2525_s13  ;;  %v1690_v9 = vld [vmem:[%s3785_s11 + $0x48] sm:$0xff]  ;;  %v1691_v10 = vld [vmem:[%s3785_s11 + $0x50] sm:$0xff] }
 0x4f5   : > { %v1158_v13 = vpop.f32.mrf.mxu0 }
 0x4f6   : > { %v2911_v14 = vmax.f32 %v1157_v12, 0.0  ;;  %v1159_v15 = vadd.f32 %v1158_v13, %v1022_v56  ;;  %1269 = vrot.lane.b32.xlu0 %v2907_v11, %s2525_s13  ;;  %v1226_v56 = vld [vmem:[%s3784_s10 + $0x58] sm:$0xff] }
 0x4f7   : > { %v1162_v16 = vpop.f32.mrf.mxu0  ;;  %v1692_v13 = vld [vmem:[%s3785_s11 + $0x58] sm:$0xff] }
 0x4f8   : > { %v2915_v17 = vmax.f32 %v1159_v15, 0.0  ;;  %v1163_v18 = vadd.f32 %v1162_v16, %v1027_v59  ;;  %1271 = vrot.lane.b32.xlu1 %v2911_v14, %s2525_s13  ;;  %v1693_v16 = vld [vmem:[%s3785_s11 + $0x60] sm:$0xff] }
 0x4f9   : > { %v1164_v20 = vpop.f32.mrf.mxu0 }
 0x4fa   : > { %v2919_v22 = vmax.f32 %v1163_v18, 0.0  ;;  %v1165_v23 = vadd.f32 %v1164_v20, %v1027_v59  ;;  %1273 = vrot.lane.b32.xlu0 %v2915_v17, %s2525_s13  ;;  %v1229_v59 = vld [vmem:[%s3784_s10 + $0x70] sm:$0xff] }
 0x4fc   : > { %v2923_v25 = vmax.f32 %v1165_v23, 0.0  ;;  %1275 = vrot.lane.b32.xlu1 %v2919_v22, %s2525_s13 }
 0x4fe   : > { %1277 = vrot.lane.b32.xlu0 %v2923_v25, %s2525_s13 }
 0x500   : > { %1259 = vrot.lane.b32.xlu1 %v2927_v28, %s2525_s13 }
 0x502   : > { %1261 = vrot.lane.b32.xlu0 %v2931_v30, %s2525_s13 }
 0x504   : > { %1255 = vrot.lane.b32.xlu1 %v2935_v33, %s2525_s13 }
 0x506   : > { %1257 = vrot.lane.b32.xlu0 %v2939_v35, %s2525_s13 }
 0x508   : > { %1251 = vrot.lane.b32.xlu1 %v2943_v38, %s2525_s13 }
 0x50a   : > { %1253 = vrot.lane.b32.xlu0 %v2948_v40, %s2525_s13 }
 0x50c   : > { %1247 = vrot.lane.b32.xlu1 %v2952_v41, %s2525_s13 }
 0x50e   : > { %1249 = vrot.lane.b32.xlu0 %v2956_v42, %s2525_s13 }
 0x510   : > { %1331 = vrot.lane.b32.xlu1 %v2919_v22, %s2524_s7 }
 0x512   : > { %1329 = vrot.lane.b32.xlu0 %v2915_v17, %s2524_s7 }
 0x514   : > { %1327 = vrot.lane.b32.xlu1 %v2911_v14, %s2524_s7 }
 0x516   : > { %1325 = vrot.lane.b32.xlu0 %v2907_v11, %s2524_s7 }
 0x518   : > { %1323 = vrot.lane.b32.xlu1 %v2903_v8, %s2524_s7 }
 0x51a   : > { %1321 = vrot.lane.b32.xlu0 %v2899_v5, %s2524_s7 }
 0x51c   : > { %1319 = vrot.lane.b32.xlu1 %v2897_v1, %s2524_s7 }
 0x51e   : > { %1333 = vrot.lane.b32.xlu0 %v2923_v25, %s2524_s7 }
 0x520   : > { %1315 = vrot.lane.b32.xlu1 %v2927_v28, %s2524_s7 }
 0x522   : > { %1317 = vrot.lane.b32.xlu0 %v2931_v30, %s2524_s7 }
 0x524   : > { %1311 = vrot.lane.b32.xlu1 %v2935_v33, %s2524_s7 }
 0x526   : > { %1313 = vrot.lane.b32.xlu0 %v2939_v35, %s2524_s7 }
 0x528   : > { %1307 = vrot.lane.b32.xlu1 %v2943_v38, %s2524_s7 }
 0x52a   : > { %1309 = vrot.lane.b32.xlu0 %v2948_v40, %s2524_s7 }
 0x52c   : > { %1303 = vrot.lane.b32.xlu1 %v2952_v41, %s2524_s7 }
 0x52e   : > { %1305 = vrot.lane.b32.xlu0 %v2956_v42, %s2524_s7 }
 0x530   : > { %1361 = vperm.xlu1 %2397, %v1215_v45  }
 0x532   : > { %1366 = vperm.xlu0 %2396, %v1216_v46  }
 0x534   : > { %1371 = vperm.xlu1 %2397, %v1217_v47   ;;  %v1701_v47 = vld [vmem:[%s3786_s12 + $0x20] sm:$0xff] }
 0x536   : > { %1376 = vperm.xlu0 %2396, %v1218_v48  }
 0x538   : > { %1381 = vperm.xlu1 %2397, %v1219_v49  }
 0x53a   : > { %1386 = vperm.xlu0 %2396, %v1220_v50   ;;  %v1702_v50 = vld [vmem:[%s3786_s12 + $0x28] sm:$0xff] }
 0x53c   : > { %1391 = vperm.xlu1 %2397, %v1221_v51  }
 0x53e   : > { %1396 = vperm.xlu0 %2396, %v1222_v52  }
 0x540   : > { %1401 = vperm.xlu1 %2397, %v1223_v53   ;;  %v1703_v53 = vld [vmem:[%s3786_s12 + $0x30] sm:$0xff] }
 0x542   : > { %1406 = vperm.xlu0 %2396, %v1224_v54  }
 0x544   : > { %1411 = vperm.xlu1 %2397, %v1225_v55  }
 0x546   : > { %1416 = vperm.xlu0 %2396, %v1226_v56   ;;  %v1704_v56 = vld [vmem:[%s3786_s12 + $0x38] sm:$0xff] }
 0x548   : > { %1421 = vperm.xlu1 %2397, %v1227_v57  }
 0x54a   : > { %1426 = vperm.xlu0 %2396, %v1228_v58  }
 0x54c   : > { %1431 = vperm.xlu1 %2397, %v1229_v59   ;;  %v1705_v59 = vld [vmem:[%s3786_s12 + $0x40] sm:$0xff] }
 0x54e   : > { %1436 = vperm.xlu0 %2396, %v1230_v60  }
 0x550   : > { %1891 = vperm.xlu1 %2397, %v1681_v61  }
 0x552   : > { %1896 = vperm.xlu0 %2396, %v1682_v62   ;;  %v1706_v62 = vld [vmem:[%s3786_s12 + $0x48] sm:$0xff] }
 0x554   : > { %1901 = vperm.xlu1 %2397, %v1683_v63  }
 0x556   : > { %1906 = vperm.xlu0 %2396, %v1684_v0   ;;  %v1707_v0 = vld [vmem:[%s3786_s12 + $0x50] sm:$0xff] }
 0x558   : > { %1911 = vperm.xlu1 %2397, %v1685_v3  }
 0x55a   : > { %1916 = vperm.xlu0 %2396, %v1686_v2   ;;  %v1708_v2 = vld [vmem:[%s3786_s12 + $0x58] sm:$0xff] }
 0x55c   : > { %1921 = vperm.xlu1 %2397, %v1687_v4  }
 0x55e   : > { %1926 = vperm.xlu0 %2396, %v1688_v6  }
 0x560   : > { %1931 = vperm.xlu1 %2397, %v1689_v7   ;;  %v1709_v7 = vld [vmem:[%s3786_s12 + $0x60] sm:$0xff] }
 0x562   : > { %1936 = vperm.xlu0 %2396, %v1690_v9   ;;  %v1264_v12 = vpop.permute.xlu1 %1263 }
 0x564   : > { %v1266_v15 = vpop.permute.xlu0 %1265  ;;  %1941 = vperm.xlu1 %2397, %v1691_v10  }
 0x565   : > { %v1283_v49 = vsel %vm508_vm1, %v1264_v12, %v1266_v15 }
 0x566   : > { %1946 = vperm.xlu0 %2396, %v1692_v13   ;;  %v1268_v18 = vpop.permute.xlu1 %1267 }
 0x568   : > { %v1270_v20 = vpop.permute.xlu0 %1269  ;;  %1951 = vperm.xlu1 %2397, %v1693_v16   ;;  %v1183_v16 = vld [vmem:[%s3783_s9] sm:$0xff] }
 0x569   : > { %v1284_v45 = vsel %vm508_vm1, %v1268_v18, %v1270_v20  ;;  %v1195_v18 = vld [vmem:[%s3783_s9 + $0x60] sm:$0xff] }
 0x56a   : > { %1956 = vperm.xlu0 %2396, %v1694_v19   ;;  %v1272_v23 = vpop.permute.xlu1 %1271  ;;  %v1186_v19 = vld [vmem:[%s3783_s9 + $0x18] sm:$0xff] }
 0x56c   : > { %v1274_v26 = vpop.permute.xlu0 %1273  ;;  %1961 = vperm.xlu1 %2397, %v1695_v21   ;;  %v1185_v21 = vld [vmem:[%s3783_s9 + $0x10] sm:$0xff] }
 0x56d   : > { %v1285_v43 = vsel %vm508_vm1, %v1272_v23, %v1274_v26  ;;  %v1197_v23 = vld [vmem:[%s3783_s9 + $0x70] sm:$0xff] }
 0x56e   : > { %1966 = vperm.xlu0 %2396, %v1696_v24   ;;  %v1276_v29 = vpop.permute.xlu1 %1275  ;;  %v1188_v24 = vld [vmem:[%s3783_s9 + $0x28] sm:$0xff] }
 0x570   : > { %v1278_v32 = vpop.permute.xlu0 %1277  ;;  %2003 = vperm.xlu1 %2397, %v1697_v27   ;;  %v1187_v27 = vld [vmem:[%s3783_s9 + $0x20] sm:$0xff] }
 0x571   : > { %1488 = vmatprep.subr.mxu0 %v1278_v32  ;;  %2282 = vmatprep.subr.mxu1 %v1278_v32  ;;  %v1286_v34 = vsel %vm508_vm1, %v1276_v29, %v1278_v32  ;;  %v1199_v29 = vld [vmem:[%s3783_s9 + $0x80] sm:$0xff]  ;;  %v1202_v32 = vld [vmem:[%s3783_s9 + $0x98] sm:$0xff] }
 0x572   : > { %2008 = vperm.xlu0 %2396, %v1698_v31   ;;  %1489 = vmatpush1.msra.mxu0 %v1286_v34  ;;  %v1260_v37 = vpop.permute.xlu1 %1259  ;;  %v1190_v31 = vld [vmem:[%s3783_s9 + $0x38] sm:$0xff] }
 0x573   : > { %2306 = vmatpush1.msra.mxu1 %v1286_v34  ;;  %1490 = vmatprep.subr.mxu0 %v1274_v26  ;;  %v1189_v34 = vld [vmem:[%s3783_s9 + $0x30] sm:$0xff] }
 0x574   : > { %2283 = vmatprep.subr.mxu1 %v1274_v26  ;;  %v1262_v39 = vpop.permute.xlu0 %1261  ;;  %2013 = vperm.xlu1 %2397, %v1699_v36   ;;  %v1200_v26 = vld [vmem:[%s3783_s9 + $0x88] sm:$0xff]  ;;  %v1201_v36 = vld [vmem:[%s3783_s9 + $0x90] sm:$0xff] }
 0x575   : > { %1491 = vmatpush1.msra.mxu0 %v1285_v43  ;;  %2307 = vmatpush1.msra.mxu1 %v1285_v43  ;;  %v1282_v52 = vsel %vm508_vm1, %v1260_v37, %v1262_v39  ;;  %v1192_v37 = vld [vmem:[%s3783_s9 + $0x48] sm:$0xff]  ;;  %v1191_v43 = vld [vmem:[%s3783_s9 + $0x40] sm:$0xff] }
 0x576   : > { %1492 = vmatprep.subr.mxu0 %v1270_v20  ;;  %2284 = vmatprep.subr.mxu1 %v1270_v20  ;;  %v1256_v46 = vpop.permute.xlu1 %1255  ;;  %v1198_v20 = vld [vmem:[%s3783_s9 + $0x78] sm:$0xff] }
 0x577   : > { %2018 = vperm.xlu0 %2396, %v1700_v44   ;;  %1493 = vmatpush1.msra.mxu0 %v1284_v45  ;;  %v1203_v44 = vld [vmem:[%s3783_s9 + $0xa0] sm:$0xff] }
 0x578   : > { %2308 = vmatpush1.msra.mxu1 %v1284_v45  ;;  %1494 = vmatprep.subr.mxu0 %v1266_v15  ;;  %v1258_v48 = vpop.permute.xlu0 %1257  ;;  %v1194_v45 = vld [vmem:[%s3783_s9 + $0x58] sm:$0xff] }
 0x579   : > { %2285 = vmatprep.subr.mxu1 %v1266_v15  ;;  %2023 = vperm.xlu1 %2397, %v1701_v47   ;;  %v1281_v55 = vsel %vm508_vm1, %v1256_v46, %v1258_v48  ;;  %v1206_v46 = vld [vmem:[%s3783_s9 + $0xb8] sm:$0xff]  ;;  %v1193_v47 = vld [vmem:[%s3783_s9 + $0x50] sm:$0xff] }
 0x57a   : > { %1495 = vmatpush1.msra.mxu0 %v1283_v49  ;;  %2309 = vmatpush1.msra.mxu1 %v1283_v49  ;;  %v1252_v51 = vpop.permute.xlu1 %1251  ;;  %v1208_v49 = vld [vmem:[%s3783_s9 + $0xc8] sm:$0xff] }
 0x57b   : > { %1496 = vmatprep.subr.mxu0 %v1262_v39  ;;  %2286 = vmatprep.subr.mxu1 %v1262_v39  ;;  %v1204_v39 = vld [vmem:[%s3783_s9 + $0xa8] sm:$0xff] }
 0x57c   : > { %2028 = vperm.xlu0 %2396, %v1702_v50   ;;  %1497 = vmatpush1.msra.mxu0 %v1282_v52  ;;  %v1254_v54 = vpop.permute.xlu0 %1253  ;;  %v1207_v50 = vld [vmem:[%s3783_s9 + $0xc0] sm:$0xff] }
 0x57d   : > { %2310 = vmatpush1.msra.mxu1 %v1282_v52  ;;  %1498 = vmatprep.subr.mxu0 %v1258_v48  ;;  %v1280_v57 = vsel %vm508_vm1, %v1252_v51, %v1254_v54  ;;  %v1210_v51 = vld [vmem:[%s3783_s9 + $0xd8] sm:$0xff]  ;;  %v1209_v52 = vld [vmem:[%s3783_s9 + $0xd0] sm:$0xff] }
 0x57e   : > { %2287 = vmatprep.subr.mxu1 %v1258_v48  ;;  %2033 = vperm.xlu1 %2397, %v1703_v53   ;;  %v1248_v58 = vpop.permute.xlu1 %1247  ;;  %v1205_v48 = vld [vmem:[%s3783_s9 + $0xb0] sm:$0xff]  ;;  %v1212_v53 = vld [vmem:[%s3783_s9 + $0xe8] sm:$0xff] }
 0x57f   : > { %1499 = vmatpush1.msra.mxu0 %v1281_v55  ;;  %2311 = vmatpush1.msra.mxu1 %v1281_v55  ;;  %v1214_v55 = vld [vmem:[%s3783_s9 + $0xf8] sm:$0xff] }
 0x580   : > { %1500 = vmatprep.subr.mxu0 %v1254_v54  ;;  %2288 = vmatprep.subr.mxu1 %v1254_v54  ;;  %v1250_v60 = vpop.permute.xlu0 %1249  ;;  %v1211_v54 = vld [vmem:[%s3783_s9 + $0xe0] sm:$0xff] }
 0x581   : > { %2038 = vperm.xlu0 %2396, %v1704_v56   ;;  %1501 = vmatpush1.msra.mxu0 %v1280_v57  ;;  %v1279_v61 = vsel %vm508_vm1, %v1248_v58, %v1250_v60  ;;  %v1213_v56 = vld [vmem:[%s3783_s9 + $0xf0] sm:$0xff] }
 0x582   : > { %2312 = vmatpush1.msra.mxu1 %v1280_v57  ;;  %2043 = vperm.xlu1 %2397, %v1705_v59   ;;  %v1332_v63 = vpop.permute.xlu1 %1331 }
 0x583   : > { %1502 = vmatprep.subr.mxu0 %v1250_v60  ;;  %2289 = vmatprep.subr.mxu1 %v1250_v60 }
 0x584   : > { %1503 = vmatpush1.msra.mxu0 %v1279_v61  ;;  %2313 = vmatpush1.msra.mxu1 %v1279_v61  ;;  %v1330_v3 = vpop.permute.xlu0 %1329 }
 0x585   : > { %2048 = vperm.xlu0 %2396, %v1706_v62   ;;  %1504 = vmatprep.subr.mxu0 %v2923_v25 }
 0x586   : > { %2290 = vmatprep.subr.mxu1 %v2923_v25  ;;  %2053 = vperm.xlu1 %2397, %v1707_v0   ;;  %v1328_v4 = vpop.permute.xlu1 %1327 }
 0x587   : > { %1505 = vmatpush1.msra.mxu0 %v2919_v22  ;;  %2314 = vmatpush1.msra.mxu1 %v2919_v22 }
 0x588   : > { %1506 = vmatprep.subr.mxu0 %v2915_v17  ;;  %2291 = vmatprep.subr.mxu1 %v2915_v17  ;;  %v1326_v6 = vpop.permute.xlu0 %1325  ;;  %v1710_v17 = vld [vmem:[%s3786_s12 + $0x68] sm:$0xff] }
 0x589   : > { %2058 = vperm.xlu0 %2396, %v1708_v2   ;;  %1507 = vmatpush1.msra.mxu0 %v2911_v14 }
 0x58a   : > { %2315 = vmatpush1.msra.mxu1 %v2911_v14  ;;  %1508 = vmatprep.subr.mxu0 %v2907_v11  ;;  %v1324_v25 = vpop.permute.xlu1 %1323 }
 0x58b   : > { %2292 = vmatprep.subr.mxu1 %v2907_v11  ;;  %2063 = vperm.xlu1 %2397, %v1709_v7  }
 0x58c   : > { %1509 = vmatpush1.msra.mxu0 %v2903_v8  ;;  %2316 = vmatpush1.msra.mxu1 %v2903_v8  ;;  %v1322_v22 = vpop.permute.xlu0 %1321 }
 0x58d   : > { %1510 = vmatprep.subr.mxu0 %v2899_v5  ;;  %2293 = vmatprep.subr.mxu1 %v2899_v5 }
 0x58e   : > { %2068 = vperm.xlu0 %2396, %v1710_v17   ;;  %1511 = vmatpush1.msra.mxu0 %v2897_v1  ;;  %v1320_v14 = vpop.permute.xlu1 %1319 }
 0x58f   : > { %2317 = vmatpush1.msra.mxu1 %v2897_v1  ;;  %1512 = vmatprep.subr.mxu0 %v2931_v30 }
 0x590   : > { %2294 = vmatprep.subr.mxu1 %v2931_v30  ;;  %1513 = vmatpush1.msra.mxu0 %v2927_v28  ;;  %v1334_v11 = vpop.permute.xlu0 %1333 }
 0x591   : > { %2318 = vmatpush1.msra.mxu1 %v2927_v28  ;;  %1514 = vmatprep.subr.mxu0 %v2939_v35  ;;  %v1342_v28 = vsel %vm516_vm0, %v1332_v63, %v1334_v11 }
 0x592   : > { %2295 = vmatprep.subr.mxu1 %v2939_v35  ;;  %1515 = vmatpush1.msra.mxu0 %v2935_v33  ;;  %v1316_v5 = vpop.permute.xlu1 %1315  ;;  %v1340_v35 = vsel %vm516_vm0, %v1324_v25, %v1326_v6 }
 0x593   : > { %2319 = vmatpush1.msra.mxu1 %v2935_v33  ;;  %1516 = vmatprep.subr.mxu0 %v2948_v40  ;;  %v1341_v33 = vsel %vm516_vm0, %v1328_v4, %v1330_v3 }
 0x594   : > { %2296 = vmatprep.subr.mxu1 %v2948_v40  ;;  %1517 = vmatpush1.msra.mxu0 %v2943_v38  ;;  %v1318_v1 = vpop.permute.xlu0 %1317 }
 0x595   : > { %2320 = vmatpush1.msra.mxu1 %v2943_v38  ;;  %1518 = vmatprep.subr.mxu0 %v2956_v42 }
 0x596   : > { %2297 = vmatprep.subr.mxu1 %v2956_v42  ;;  %1519 = vmatpush1.msra.mxu0 %v2952_v41  ;;  %v1312_v8 = vpop.permute.xlu1 %1311  ;;  %v1338_v42 = vsel %vm516_vm0, %v1316_v5, %v1318_v1 }
 0x597   : > { %2321 = vmatpush1.msra.mxu1 %v2952_v41  ;;  %1536 = vmatprep.subr.mxu0 %v1334_v11  ;;  %v1339_v41 = vsel %vm516_vm0, %v1320_v14, %v1322_v22 }
 0x598   : > { %2298 = vmatprep.subr.mxu1 %v1334_v11  ;;  %1537 = vmatpush2.msra.mxu0 %v1342_v28  ;;  %v1314_v30 = vpop.permute.xlu0 %1313 }
 0x599   : > { %2322 = vmatpush2.msra.mxu1 %v1342_v28  ;;  %1538 = vmatprep.subr.mxu0 %v1330_v3  ;;  %v1337_v10 = vsel %vm516_vm0, %v1312_v8, %v1314_v30 }
 0x59a   : > { %2299 = vmatprep.subr.mxu1 %v1330_v3  ;;  %1539 = vmatpush2.msra.mxu0 %v1341_v33  ;;  %v1308_v38 = vpop.permute.xlu1 %1307 }
 0x59b   : > { %2323 = vmatpush2.msra.mxu1 %v1341_v33  ;;  %1540 = vmatprep.subr.mxu0 %v1326_v6 }
 0x59c   : > { %2300 = vmatprep.subr.mxu1 %v1326_v6  ;;  %1541 = vmatpush2.msra.mxu0 %v1340_v35  ;;  %v1310_v40 = vpop.permute.xlu0 %1309 }
 0x59d   : > { %2324 = vmatpush2.msra.mxu1 %v1340_v35  ;;  %1542 = vmatprep.subr.mxu0 %v1322_v22  ;;  %v1336_v13 = vsel %vm516_vm0, %v1308_v38, %v1310_v40 }
 0x59e   : > { %2301 = vmatprep.subr.mxu1 %v1322_v22  ;;  %1543 = vmatpush2.msra.mxu0 %v1339_v41  ;;  %v1304_v12 = vpop.permute.xlu1 %1303 }
 0x59f   : > { %2325 = vmatpush2.msra.mxu1 %v1339_v41  ;;  %1544 = vmatprep.subr.mxu0 %v1318_v1 }
 0x5a0   : > { %2302 = vmatprep.subr.mxu1 %v1318_v1  ;;  %1545 = vmatpush2.msra.mxu0 %v1338_v42  ;;  %v1306_v9 = vpop.permute.xlu0 %1305 }
 0x5a1   : > { %2326 = vmatpush2.msra.mxu1 %v1338_v42  ;;  %1546 = vmatprep.subr.mxu0 %v1314_v30  ;;  %v1335_v15 = vsel %vm516_vm0, %v1304_v12, %v1306_v9 }
 0x5a2   : > { %2303 = vmatprep.subr.mxu1 %v1314_v30  ;;  %1547 = vmatpush2.msra.mxu0 %v1337_v10 }
 0x5a3   : > { %2327 = vmatpush2.msra.mxu1 %v1337_v10  ;;  %1548 = vmatprep.subr.mxu0 %v1310_v40 }
 0x5a4   : > { %2304 = vmatprep.subr.mxu1 %v1310_v40  ;;  %1549 = vmatpush2.msra.mxu0 %v1336_v13 }
 0x5a5   : > { %2328 = vmatpush2.msra.mxu1 %v1336_v13  ;;  %1550 = vmatprep.subr.mxu0 %v1306_v9 }
 0x5a6   : > { %2305 = vmatprep.subr.mxu1 %v1306_v9  ;;  %1551 = vmatpush2.msra.mxu0 %v1335_v15 }
 0x5a7   : > { %2329 = vmatpush2.msra.mxu1 %v1335_v15  ;;  %1553 = vmatmul.mubr.f32.vlgmr.msra.gmra.mxu0 %v1183_v16 }
 0x5a8   : > { %1589 = vmatmul.mubr.f32.vlgmr.msra.gmra.mxu1 %v1195_v18  ;;  %2263 = vmatprep.mubr.msk.f32.mxu0 %vm1439_vm8, %v1186_v19 }
 0x5a9   : > { %2269 = vmatprep.mubr.msk.f32.mxu1 %vm1439_vm8, %v1198_v20 }
 0x5ab   : > { %1559 = vmatmul.mubr.f32.gmra.mxu0 %v1185_v21  ;;  %v1362_v57 = vpop.permute.xlu1 %1361 }
 0x5ac   : > { %1595 = vmatmul.mubr.f32.gmra.mxu1 %v1197_v23  ;;  %2264 = vmatprep.mubr.msk.f32.mxu0 %vm1439_vm8, %v1188_v24 }
 0x5ad   : > { %2270 = vmatprep.mubr.msk.f32.mxu1 %vm1439_vm8, %v1200_v26  ;;  %v1367_v58 = vpop.permute.xlu0 %1366 }
 0x5af   : > { %1565 = vmatmul.mubr.f32.gmra.mxu0 %v1187_v27  ;;  %v1372_v59 = vpop.permute.xlu1 %1371 }
 0x5b0   : > { %1601 = vmatmul.mubr.f32.gmra.mxu1 %v1199_v29  ;;  %2265 = vmatprep.mubr.msk.f32.mxu0 %vm1439_vm8, %v1190_v31 }
 0x5b1   : > { %2271 = vmatprep.mubr.msk.f32.mxu1 %vm1439_vm8, %v1202_v32  ;;  %v3292_v60 = vpop.permute.xlu0 %1376 }
 0x5b3   : > { %1571 = vmatmul.mubr.f32.gmra.mxu0 %v1189_v34  ;;  %v3294_v61 = vpop.permute.xlu1 %1381 }
 0x5b4   : > { %1607 = vmatmul.mubr.f32.gmra.mxu1 %v1201_v36  ;;  %2266 = vmatprep.mubr.msk.f32.mxu0 %vm1439_vm8, %v1192_v37 }
 0x5b5   : > { %2272 = vmatprep.mubr.msk.f32.mxu1 %vm1439_vm8, %v1204_v39  ;;  %v3296_v62 = vpop.permute.xlu0 %1386 }
 0x5b7   : > { %1577 = vmatmul.mubr.f32.gmra.mxu0 %v1191_v43  ;;  %v1392_v0 = vpop.permute.xlu1 %1391 }
 0x5b8   : > { %1613 = vmatmul.mubr.f32.gmra.mxu1 %v1203_v44  ;;  %2267 = vmatprep.mubr.msk.f32.mxu0 %vm1439_vm8, %v1194_v45 }
 0x5b9   : > { %2273 = vmatprep.mubr.msk.f32.mxu1 %vm1439_vm8, %v1206_v46  ;;  %v1397_v6 = vpop.permute.xlu0 %1396 }
 0x5bb   : > { %1583 = vmatmul.mubr.f32.gmra.mxu0 %v1193_v47  ;;  %v1402_v28 = vpop.permute.xlu1 %1401 }
 0x5bc   : > { %1619 = vmatmul.mubr.f32.gmra.mxu1 %v1205_v48 }
 0x5bd   : > { %2274 = vmatprep.mubr.msk.f32.mxu1 %vm1439_vm8, %v1208_v49  ;;  %v1407_v38 = vpop.permute.xlu0 %1406 }
 0x5bf   : > { %v1412_v15 = vpop.permute.xlu1 %1411 }
 0x5c0   : > { %1625 = vmatmul.mubr.f32.gmra.mxu1 %v1207_v50 }
 0x5c1   : > { %2275 = vmatprep.mubr.msk.f32.mxu1 %vm1439_vm8, %v1210_v51  ;;  %v3335_v21 = vpop.permute.xlu0 %1416 }
 0x5c3   : > { %v3349_v34 = vpop.permute.xlu1 %1421 }
 0x5c4   : > { %1631 = vmatmul.mubr.f32.gmra.mxu1 %v1209_v52 }
 0x5c5   : > { %2276 = vmatprep.mubr.msk.f32.mxu1 %vm1439_vm8, %v1212_v53  ;;  %v3357_v43 = vpop.permute.xlu0 %1426 }
 0x5c7   : > { %v3372_v50 = vpop.permute.xlu1 %1431 }
 0x5c8   : > { %1637 = vmatmul.mubr.f32.gmra.mxu1 %v1211_v54 }
 0x5c9   : > { %2277 = vmatprep.mubr.msk.f32.mxu1 %vm1439_vm8, %v1214_v55  ;;  %v3381_v55 = vpop.permute.xlu0 %1436 }
 0x5cc   : > { %1643 = vmatmul.mubr.f32.gmra.mxu1 %v1213_v56 }
 0x667   : > { %v1554_v63 = vpop.f32.mrf.mxu0 }
 0x668   : > { %v3298_v3 = vadd.f32 %v1554_v63, %v1362_v57  ;;  %v1590_v2 = vpop.f32.mrf.mxu1 }
 0x669   : > { %v1556_v4 = vpop.f32.mrf.mxu0  ;;  %v3301_v25 = vadd.f32 %v1590_v2, %v1392_v0 }
 0x66a   : > { %v3821_v7 = vmax.f32 %v3298_v3, 0.0  ;;  %v3303_v17 = vadd.f32 %v1556_v4, %v1362_v57  ;;  %v1592_v22 = vpop.f32.mrf.mxu1 }
 0x66b   : > { %v1560_v14 = vpop.f32.mrf.mxu0  ;;  %v3306_v5 = vadd.f32 %v1592_v22, %v1392_v0  ;;  %v3819_v30 = vmax.f32 %v3301_v25, 0.0  ;;  %v3395_v0 = vpop.permute.xlu1 %1891 }
 0x66c   : > { %v3822_v11 = vmax.f32 %v3303_v17, 0.0  ;;  %v1596_v1 = vpop.f32.mrf.mxu1  ;;  %1745 = vrot.lane.b32.xlu1 %v3821_v7, %s2525_s13  ;;  %v3312_v33 = vadd.f32 %v1560_v14, %v1367_v58 }
 0x66d   : > { %v1562_v8 = vpop.f32.mrf.mxu0  ;;  %v3820_v40 = vmax.f32 %v3306_v5, 0.0  ;;  %v3324_v12 = vadd.f32 %v1596_v1, %v1397_v6 }
 0x66e   : > { %v1598_v35 = vpop.f32.mrf.mxu1  ;;  %1747 = vrot.lane.b32.xlu0 %v3822_v11, %s2525_s13  ;;  %v3318_v41 = vadd.f32 %v1562_v8, %v1367_v58  ;;  %v3817_v10 = vmax.f32 %v3312_v33, 0.0 }
 0x66f   : > { %v1566_v9 = vpop.f32.mrf.mxu0  ;;  %v3330_v18 = vadd.f32 %v1598_v35, %v1397_v6  ;;  %v3815_v23 = vmax.f32 %v3324_v12, 0.0  ;;  %v3404_v6 = vpop.permute.xlu0 %1896 }
 0x670   : > { %v1602_v42 = vpop.f32.mrf.mxu1  ;;  %1769 = vrot.lane.b32.xlu1 %v3819_v30, %s2525_s13  ;;  %v3818_v16 = vmax.f32 %v3318_v41, 0.0  ;;  %v3338_v24 = vadd.f32 %v1566_v9, %v1372_v59 }
 0x671   : > { %v1568_v20 = vpop.f32.mrf.mxu0  ;;  %v3816_v27 = vmax.f32 %v3330_v18, 0.0  ;;  %v3352_v37 = vadd.f32 %v1602_v42, %v1402_v28 }
 0x672   : > { %v1604_v13 = vpop.f32.mrf.mxu1  ;;  %1771 = vrot.lane.b32.xlu0 %v3820_v40, %s2525_s13  ;;  %v3344_v29 = vadd.f32 %v1568_v20, %v1372_v59  ;;  %v3812_v36 = vmax.f32 %v3338_v24, 0.0 }
 0x673   : > { %v1572_v32 = vpop.f32.mrf.mxu0  ;;  %v3360_v45 = vadd.f32 %v1604_v13, %v1402_v28  ;;  %v3810_v48 = vmax.f32 %v3352_v37, 0.0 }
 0x674   : > { %v1608_v19 = vpop.f32.mrf.mxu1  ;;  %1749 = vrot.lane.b32.xlu1 %v3817_v10, %s2525_s13  ;;  %v3814_v44 = vmax.f32 %v3344_v29, 0.0  ;;  %v3367_v49 = vadd.f32 %v1572_v32, %v3292_v60 }
 0x675   : > { %v1574_v46 = vpop.f32.mrf.mxu0  ;;  %v3811_v51 = vmax.f32 %v3360_v45, 0.0  ;;  %v3384_v57 = vadd.f32 %v1608_v19, %v1407_v38  ;;  %v3427_v19 = vpop.permute.xlu0 %1906 }
 0x676   : > { %v1610_v26 = vpop.f32.mrf.mxu1  ;;  %1751 = vrot.lane.b32.xlu0 %v3818_v16, %s2525_s13  ;;  %v3376_v52 = vadd.f32 %v1574_v46, %v3292_v60  ;;  %v3803_v56 = vmax.f32 %v3367_v49, 0.0 }
 0x677   : > { %v1578_v53 = vpop.f32.mrf.mxu0  ;;  %v3390_v59 = vadd.f32 %v1610_v26, %v1407_v38  ;;  %v3798_v2 = vmax.f32 %v3384_v57, 0.0  ;;  %v3419_v38 = vpop.permute.xlu1 %1901 }
 0x678   : > { %v1614_v31 = vpop.f32.mrf.mxu1  ;;  %1773 = vrot.lane.b32.xlu1 %v3815_v23, %s2525_s13  ;;  %v3809_v58 = vmax.f32 %v3376_v52, 0.0  ;;  %v3399_v4 = vadd.f32 %v1578_v53, %v3294_v61 }
 0x679   : > { %v1580_v60 = vpop.f32.mrf.mxu0  ;;  %v3801_v22 = vmax.f32 %v3390_v59, 0.0  ;;  %v3414_v35 = vadd.f32 %v1614_v31, %v1412_v15 }
 0x67a   : > { %v1616_v39 = vpop.f32.mrf.mxu1  ;;  %1775 = vrot.lane.b32.xlu0 %v3816_v27, %s2525_s13  ;;  %v3408_v14 = vadd.f32 %v1580_v60, %v3294_v61  ;;  %v3793_v28 = vmax.f32 %v3399_v4, 0.0  ;;  %v3452_v60 = vpop.permute.xlu0 %1916 }
 0x67b   : > { %v1584_v1 = vpop.f32.mrf.mxu0  ;;  %v3422_v61 = vadd.f32 %v1616_v39, %v1412_v15  ;;  %v3791_v20 = vmax.f32 %v3414_v35, 0.0  ;;  %v3443_v39 = vpop.permute.xlu1 %1911 }
 0x67c   : > { %1753 = vrot.lane.b32.xlu1 %v3812_v36, %s2525_s13  ;;  %v1620_v47 = vpop.f32.mrf.mxu1  ;;  %v3795_v42 = vmax.f32 %v3408_v14, 0.0  ;;  %v3431_v26 = vadd.f32 %v1584_v1, %v3296_v62 }
 0x67d   : > { %v1586_v9 = vpop.f32.mrf.mxu0  ;;  %v3792_v15 = vmax.f32 %v3422_v61, 0.0  ;;  %v3447_v53 = vadd.f32 %v1620_v47, %v3335_v21 }
 0x67e   : > { %1755 = vrot.lane.b32.xlu0 %v3814_v44, %s2525_s13  ;;  %v1622_v54 = vpop.f32.mrf.mxu1  ;;  %v3438_v31 = vadd.f32 %v1586_v9, %v3296_v62  ;;  %v3794_v46 = vmax.f32 %v3431_v26, 0.0 }
 0x67f   : > { %v3456_v1 = vadd.f32 %v1622_v54, %v3335_v21 }
 0x680   : > { %1777 = vrot.lane.b32.xlu1 %v3810_v48, %s2525_s13  ;;  %v1626_v63 = vpop.f32.mrf.mxu1  ;;  %v3796_v62 = vmax.f32 %v3438_v31, 0.0 }
 0x681   : > { %v3463_v47 = vadd.f32 %v1626_v63, %v3349_v34 }
 0x682   : > { %1779 = vrot.lane.b32.xlu0 %v3811_v51, %s2525_s13  ;;  %v1628_v8 = vpop.f32.mrf.mxu1 }
 0x683   : > { %v3472_v21 = vadd.f32 %v1628_v8, %v3349_v34  ;;  %v3800_v63 = vmax.f32 %v3463_v47, 0.0 }
 0x684   : > { %1757 = vrot.lane.b32.xlu1 %v3803_v56, %s2525_s13  ;;  %v1632_v13 = vpop.f32.mrf.mxu1 }
 0x686   : > { %1759 = vrot.lane.b32.xlu0 %v3809_v58, %s2525_s13  ;;  %v1634_v32 = vpop.f32.mrf.mxu1 }
 0x687   : > { %v3488_v34 = vadd.f32 %v1634_v32, %v3357_v43 }
 0x688   : > { %1781 = vrot.lane.b32.xlu1 %v3798_v2, %s2525_s13  ;;  %v1638_v9 = vpop.f32.mrf.mxu1 }
 0x689   : > { %3848 = vst [vmem:[#allocation11_spill] sm:$0xff] %v3488_v34 }
 0x68a   : > { %1783 = vrot.lane.b32.xlu0 %v3801_v22, %s2525_s13  ;;  %v1640_v54 = vpop.f32.mrf.mxu1 }
 0x68b   : > { %v3506_v32 = vadd.f32 %v1640_v54, %v3372_v50 }
 0x68c   : > { %1761 = vrot.lane.b32.xlu1 %v3793_v28, %s2525_s13  ;;  %v3799_v28 = vmax.f32 %v3456_v1, 0.0  ;;  %v1644_v8 = vpop.f32.mrf.mxu1 }
 0x68d   : > { %3850 = vst [vmem:[#allocation13_spill] sm:$0xff] %v3506_v32  ;;  %v3805_v56 = vmax.f32 %v3506_v32, 0.0 }
 0x68e   : > { %1763 = vrot.lane.b32.xlu0 %v3795_v42, %s2525_s13  ;;  %v3481_v42 = vadd.f32 %v1632_v13, %v3357_v43  ;;  %v3497_v13 = vadd.f32 %v1638_v9, %v3372_v50  ;;  %v3808_v43 = vmax.f32 %v3488_v34, 0.0  ;;  %v3513_v9 = vadd.f32 %v1644_v8, %v3381_v55 }
 0x690   : > { %1785 = vrot.lane.b32.xlu1 %v3791_v20, %s2525_s13  ;;  %v3797_v20 = vmax.f32 %v3447_v53, 0.0  ;;  %3847 = vst [vmem:[#allocation10_spill] sm:$0xff] %v3481_v42  ;;  %v3804_v2 = vmax.f32 %v3481_v42, 0.0  ;;  %3849 = vst [vmem:[#allocation12_spill] sm:$0xff] %v3497_v13  ;;  %v3806_v22 = vmax.f32 %v3497_v13, 0.0  ;;  %v3807_v8 = vmax.f32 %v3513_v9, 0.0 }
 0x691   : > { %3851 = vst [vmem:[#allocation14_spill] sm:$0xff] %v3513_v9  ;;  %v3858_v9 = vmax.f32 %v3298_v3, 0.0  ;;  %v3860_v3 = vmax.f32 %v3306_v5, 0.0  ;;  %v3862_v5 = vmax.f32 %v3318_v41, 0.0  ;;  %v3864_v41 = vmax.f32 %v3330_v18, 0.0 }
 0x692   : > { %1787 = vrot.lane.b32.xlu0 %v3792_v15, %s2525_s13  ;;  %v3468_v15 = vpop.permute.xlu1 %1921  ;;  %v3866_v18 = vmax.f32 %v3344_v29, 0.0 }
 0x694   : > { %1765 = vrot.lane.b32.xlu1 %v3794_v46, %s2525_s13  ;;  %v3477_v46 = vpop.permute.xlu0 %1926 }
 0x696   : > { %1767 = vrot.lane.b32.xlu0 %v3796_v62, %s2525_s13  ;;  %v3802_v62 = vmax.f32 %v3472_v21, 0.0 }
 0x698   : > { %1789 = vrot.lane.b32.xlu1 %v3797_v20, %s2525_s13  ;;  %v3493_v20 = vpop.permute.xlu1 %1931 }
 0x69a   : > { %1791 = vrot.lane.b32.xlu0 %v3799_v28, %s2525_s13  ;;  %v3502_v28 = vpop.permute.xlu0 %1936 }
 0x69c   : > { %1793 = vrot.lane.b32.xlu1 %v3800_v63, %s2525_s13  ;;  %v1646_v63 = vpop.f32.mrf.mxu1 }
 0x69d   : > { %v3522_v50 = vadd.f32 %v1646_v63, %v3381_v55  ;;  %v1711_v55 = vld [vmem:[%s3786_s12 + $0x70] sm:$0xff] }
 0x69e   : > { %1795 = vrot.lane.b32.xlu0 %v3802_v62, %s2525_s13  ;;  %v3518_v62 = vpop.permute.xlu1 %1941  ;;  %v3527_v54 = vpop.permute.xlu0 %1946 }
 0x69f   : > { %3852 = vst [vmem:[#allocation15_spill] sm:$0xff] %v3522_v50 }
 0x6a0   : > { %1797 = vrot.lane.b32.xlu1 %v3804_v2, %s2525_s13  ;;  %v3813_v2 = vmax.f32 %v3522_v50, 0.0 }
 0x6a2   : > { %1799 = vrot.lane.b32.xlu0 %v3808_v43, %s2525_s13  ;;  %v3540_v63 = vpop.permute.xlu1 %1951 }
 0x6a4   : > { %1801 = vrot.lane.b32.xlu1 %v3806_v22, %s2525_s13  ;;  %v3548_v22 = vpop.permute.xlu0 %1956 }
 0x6a5   : > { %3853 = vst [vmem:[#allocation16_spill] sm:$0xff] %v3548_v22 }
 0x6a6   : > { %1803 = vrot.lane.b32.xlu0 %v3805_v56, %s2525_s13  ;;  %v1712_v56 = vld [vmem:[%s3786_s12 + $0x78] sm:$0xff] }
 0x6a8   : > { %1805 = vrot.lane.b32.xlu1 %v3807_v8, %s2525_s13  ;;  %v3550_v8 = vpop.permute.xlu1 %1961  ;;  %v3552_v43 = vpop.permute.xlu0 %1966 }
 0x6a9   : > { %3854 = vst [vmem:[#allocation17_spill] sm:$0xff] %v3550_v8  ;;  %3855 = vst [vmem:[#allocation18_spill] sm:$0xff] %v3552_v43  ;;  %v3857_v8 = vmax.f32 %v3303_v17, 0.0 }
 0x6aa   : > { %1807 = vrot.lane.b32.xlu0 %v3813_v2, %s2525_s13  ;;  %s2281_s13 = sshll.u32 %s3906_s29, 8 }
 0x6ab   : > { %s3585_s20 = scalar_lea.vmem %s3859_s22, %s2281_s13 }
 0x6ac   : > { %2073 = vperm.xlu1 %2397, %v1711_v55   ;;  %v2004_v58 = vpop.permute.xlu1 %2003  ;;  %v2009_v48 = vpop.permute.xlu0 %2008 }
 0x6ae   : > { %2078 = vperm.xlu0 %2396, %v1712_v56  }
 0x6b0   : > { %v3554_v51 = vpop.permute.xlu1 %2013  ;;  %v3556_v36 = vpop.permute.xlu0 %2018 }
 0x6b4   : > { %v3558_v2 = vpop.permute.xlu1 %2023  ;;  %v3560_v44 = vpop.permute.xlu0 %2028 }
 0x6b8   : > { %v2034_v23 = vpop.permute.xlu1 %2033  ;;  %v2039_v27 = vpop.permute.xlu0 %2038 }
 0x6bc   : > { %v3562_v55 = vpop.permute.xlu1 %2043  ;;  %v3564_v56 = vpop.permute.xlu0 %2048 }
 0x6c0   : > { %v3566_v10 = vpop.permute.xlu1 %2053  ;;  %v3568_v16 = vpop.permute.xlu0 %2058 }
 0x6c4   : > { %v3571_v30 = vpop.permute.xlu1 %2063  ;;  %v3573_v40 = vpop.permute.xlu0 %2068 }
 0x6c5   : > { %3856 = vst [vmem:[#allocation19_spill] sm:$0xff] %v3573_v40 }
 0x6de   : > { %v1746_v7 = vpop.permute.xlu1 %1745 }
 0x6e0   : > { %v1748_v11 = vpop.permute.xlu0 %1747 }
 0x6e1   : > { %v1809_v43 = vsel %vm508_vm1, %v1746_v7, %v1748_v11  ;;  %v1858_v50 = vmax.f32 %v3857_v8, %v1748_v11 }
 0x6e2   : > { %v1857_v32 = vmax.f32 %v3858_v9, %v1809_v43  ;;  %v1770_v13 = vpop.permute.xlu1 %1769  ;;  %v3861_v9 = vmax.f32 %v3301_v25, 0.0  ;;  %v3863_v25 = vmax.f32 %v3312_v33, 0.0  ;;  %v3865_v33 = vmax.f32 %v3324_v12, 0.0 }
 0x6e3   : > { %v1970_v22 = vmul.f32 %v3395_v0, %v1858_v50  ;;  %v3867_v12 = vmax.f32 %v3338_v24, 0.0 }
 0x6e4   : > { %v1969_v40 = vmul.f32 %v3395_v0, %v1857_v32  ;;  %v1772_v7 = vpop.permute.xlu0 %1771 }
 0x6e5   : > { %v2082_v42 = vadd.f32 %v2004_v58, %v1970_v22  ;;  %v1815_v17 = vsel %vm508_vm1, %v1770_v13, %v1772_v7  ;;  %v1870_v11 = vmax.f32 %v3860_v3, %v1772_v7 }
 0x6e6   : > { %v2081_v43 = vadd.f32 %v2004_v58, %v1969_v40  ;;  %v1869_v50 = vmax.f32 %v3861_v9, %v1815_v17  ;;  %v1750_v8 = vpop.permute.xlu1 %1749 }
 0x6e7   : > { %2115 = vst.msk [vmem:[%s3585_s20 + $0x8] sm:$0xff] %vm2114_vm9, %v2082_v42  ;;  %v1982_v34 = vmul.f32 %v3468_v15, %v1870_v11 }
 0x6e8   : > { %2113 = vst [vmem:[%s3585_s20] sm:$0xff] %v2081_v43  ;;  %v1981_v0 = vmul.f32 %v3468_v15, %v1869_v50  ;;  %v1752_v22 = vpop.permute.xlu0 %1751 }
 0x6e9   : > { %v2094_v32 = vadd.f32 %v2034_v23, %v1982_v34  ;;  %v1810_v13 = vsel %vm508_vm1, %v1750_v8, %v1752_v22  ;;  %v1860_v40 = vmax.f32 %v3862_v5, %v1752_v22 }
 0x6ea   : > { %v2093_v58 = vadd.f32 %v2034_v23, %v1981_v0  ;;  %v1859_v7 = vmax.f32 %v3863_v25, %v1810_v13  ;;  %v1774_v17 = vpop.permute.xlu1 %1773 }
 0x6eb   : > { %2127 = vst.msk [vmem:[%s3585_s20 + $0x68] sm:$0xff] %vm2114_vm9, %v2094_v32  ;;  %v1972_v42 = vmul.f32 %v3404_v6, %v1860_v40 }
 0x6ec   : > { %2126 = vst [vmem:[%s3585_s20 + $0x60] sm:$0xff] %v2093_v58  ;;  %v1971_v15 = vmul.f32 %v3404_v6, %v1859_v7  ;;  %v1776_v34 = vpop.permute.xlu0 %1775 }
 0x6ed   : > { %v2084_v3 = vadd.f32 %v2009_v48, %v1972_v42  ;;  %v1816_v11 = vsel %vm508_vm1, %v1774_v17, %v1776_v34  ;;  %v1872_v23 = vmax.f32 %v3864_v41, %v1776_v34  ;;  %v3868_v17 = vmax.f32 %v3360_v45, 0.0 }
 0x6ee   : > { %v2083_v43 = vadd.f32 %v2009_v48, %v1971_v15  ;;  %v1871_v9 = vmax.f32 %v3865_v33, %v1816_v11  ;;  %v1754_v50 = vpop.permute.xlu1 %1753  ;;  %v3869_v42 = vmax.f32 %v3352_v37, 0.0 }
 0x6ef   : > { %2117 = vst.msk [vmem:[%s3585_s20 + $0x18] sm:$0xff] %vm2114_vm9, %v2084_v3  ;;  %v1984_v8 = vmul.f32 %v3477_v46, %v1872_v23  ;;  %v3870_v23 = vmax.f32 %v3376_v52, 0.0 }
 0x6f0   : > { %2116 = vst [vmem:[%s3585_s20 + $0x10] sm:$0xff] %v2083_v43  ;;  %v1983_v6 = vmul.f32 %v3477_v46, %v1871_v9  ;;  %v1756_v0 = vpop.permute.xlu0 %1755  ;;  %v3871_v43 = vmax.f32 %v3367_v49, 0.0 }
 0x6f1   : > { %v2096_v22 = vadd.f32 %v2039_v27, %v1984_v8  ;;  %v1811_v32 = vsel %vm508_vm1, %v1754_v50, %v1756_v0  ;;  %v1862_v48 = vmax.f32 %v3866_v18, %v1756_v0  ;;  %v3872_v0 = vmax.f32 %v3390_v59, 0.0 }
 0x6f2   : > { %v2095_v13 = vadd.f32 %v2039_v27, %v1983_v6  ;;  %v1861_v5 = vmax.f32 %v3867_v12, %v1811_v32  ;;  %v1778_v40 = vpop.permute.xlu1 %1777 }
 0x6f3   : > { %2129 = vst.msk [vmem:[%s3585_s20 + $0x78] sm:$0xff] %vm2114_vm9, %v2096_v22  ;;  %v1974_v58 = vmul.f32 %v3419_v38, %v1862_v48  ;;  %v3873_v22 = vmax.f32 %v3384_v57, 0.0 }
 0x6f4   : > { %2128 = vst [vmem:[%s3585_s20 + $0x70] sm:$0xff] %v2095_v13  ;;  %v1973_v46 = vmul.f32 %v3419_v38, %v1861_v5  ;;  %v1780_v25 = vpop.permute.xlu0 %1779  ;;  %v3874_v5 = vmax.f32 %v3408_v14, 0.0 }
 0x6f5   : > { %v2086_v7 = vadd.f32 %v3554_v51, %v1974_v58  ;;  %v1817_v29 = vsel %vm508_vm1, %v1778_v40, %v1780_v25  ;;  %v1874_v27 = vmax.f32 %v3868_v17, %v1780_v25  ;;  %v3875_v40 = vmax.f32 %v3399_v4, 0.0 }
 0x6f6   : > { %v2085_v24 = vadd.f32 %v3554_v51, %v1973_v46  ;;  %v1873_v15 = vmax.f32 %v3869_v42, %v1817_v29  ;;  %v1758_v34 = vpop.permute.xlu1 %1757  ;;  %v3876_v17 = vmax.f32 %v3422_v61, 0.0 }
 0x6f7   : > { %2119 = vst.msk [vmem:[%s3585_s20 + $0x28] sm:$0xff] %vm2114_vm9, %v2086_v7  ;;  %v1986_v38 = vmul.f32 %v3493_v20, %v1874_v27  ;;  %v3877_v27 = vmax.f32 %v3414_v35, 0.0 }
 0x6f8   : > { %2118 = vst [vmem:[%s3585_s20 + $0x20] sm:$0xff] %v2085_v24  ;;  %v1985_v3 = vmul.f32 %v3493_v20, %v1873_v15  ;;  %v1760_v11 = vpop.permute.xlu0 %1759 }
 0x6f9   : > { %v2098_v41 = vadd.f32 %v3562_v55, %v1986_v38  ;;  %v1812_v45 = vsel %vm508_vm1, %v1758_v34, %v1760_v11  ;;  %v1864_v51 = vmax.f32 %v3870_v23, %v1760_v11  ;;  %v3879_v11 = vmax.f32 %v3431_v26, 0.0 }
 0x6fa   : > { %v2097_v37 = vadd.f32 %v3562_v55, %v1985_v3  ;;  %v1863_v33 = vmax.f32 %v3871_v43, %v1812_v45  ;;  %v1782_v9 = vpop.permute.xlu1 %1781  ;;  %v3878_v3 = vmax.f32 %v3438_v31, 0.0 }
 0x6fb   : > { %2131 = vst.msk [vmem:[%s3585_s20 + $0x88] sm:$0xff] %vm2114_vm9, %v2098_v41  ;;  %v1976_v20 = vmul.f32 %v3427_v19, %v1864_v51 }
 0x6fc   : > { %2130 = vst [vmem:[%s3585_s20 + $0x80] sm:$0xff] %v2097_v37  ;;  %v1975_v50 = vmul.f32 %v3427_v19, %v1863_v33  ;;  %v1784_v8 = vpop.permute.xlu0 %1783  ;;  %v3881_v33 = vmax.f32 %v3447_v53, 0.0 }
 0x6fd   : > { %v2088_v6 = vadd.f32 %v3556_v36, %v1976_v20  ;;  %v1818_v52 = vsel %vm508_vm1, %v1782_v9, %v1784_v8  ;;  %v1876_v55 = vmax.f32 %v3872_v0, %v1784_v8  ;;  %v3883_v0 = vmax.f32 %v3463_v47, 0.0 }
 0x6fe   : > { %v2087_v49 = vadd.f32 %v3556_v36, %v1975_v50  ;;  %v1875_v32 = vmax.f32 %v3873_v22, %v1818_v52  ;;  %v1762_v18 = vpop.permute.xlu1 %1761  ;;  %v3882_v52 = vmax.f32 %v3472_v21, 0.0 }
 0x6ff   : > { %2121 = vst.msk [vmem:[%s3585_s20 + $0x38] sm:$0xff] %vm2114_vm9, %v2088_v6  ;;  %v1988_v19 = vmul.f32 %v3502_v28, %v1876_v55 }
 0x700   : > { %2120 = vst [vmem:[%s3585_s20 + $0x30] sm:$0xff] %v2087_v49  ;;  %v1987_v48 = vmul.f32 %v3502_v28, %v1875_v32  ;;  %v1764_v13 = vpop.permute.xlu0 %1763 }
 0x701   : > { %v2100_v12 = vadd.f32 %v3564_v56, %v1988_v19  ;;  %v1813_v59 = vsel %vm508_vm1, %v1762_v18, %v1764_v13  ;;  %v1866_v36 = vmax.f32 %v3874_v5, %v1764_v13  ;;  %v3884_v19 = vld [vmem:[#allocation11_spill] sm:$0xff]  ;;  %v3886_v13 = vld [vmem:[#allocation10_spill] sm:$0xff]  ;;  %v3888_v5 = vld [vmem:[#allocation16_spill] sm:$0xff] }
 0x702   : > { %v2099_v57 = vadd.f32 %v3564_v56, %v1987_v48  ;;  %v1865_v58 = vmax.f32 %v3875_v40, %v1813_v59  ;;  %v1786_v46 = vpop.permute.xlu1 %1785  ;;  %v3889_v40 = vld [vmem:[#allocation19_spill] sm:$0xff] }
 0x703   : > { %2133 = vst.msk [vmem:[%s3585_s20 + $0x98] sm:$0xff] %vm2114_vm9, %v2100_v12  ;;  %v1978_v28 = vmul.f32 %v3443_v39, %v1866_v36  ;;  %v3887_v12 = vmax.f32 %v3886_v13, 0.0 }
 0x704   : > { %2132 = vst [vmem:[%s3585_s20 + $0x90] sm:$0xff] %v2099_v57  ;;  %v1977_v25 = vmul.f32 %v3443_v39, %v1865_v58  ;;  %v1788_v7 = vpop.permute.xlu0 %1787 }
 0x705   : > { %v2090_v29 = vadd.f32 %v3558_v2, %v1978_v28  ;;  %v1819_v14 = vsel %vm508_vm1, %v1786_v46, %v1788_v7  ;;  %v1878_v56 = vmax.f32 %v3876_v17, %v1788_v7 }
 0x706   : > { %v2089_v4 = vadd.f32 %v3558_v2, %v1977_v25  ;;  %v1877_v24 = vmax.f32 %v3877_v27, %v1819_v14  ;;  %v1766_v42 = vpop.permute.xlu1 %1765  ;;  %v3890_v14 = vld [vmem:[#allocation12_spill] sm:$0xff] }
 0x707   : > { %2123 = vst.msk [vmem:[%s3585_s20 + $0x48] sm:$0xff] %vm2114_vm9, %v2090_v29  ;;  %v1990_v39 = vmul.f32 %v3518_v62, %v1878_v56  ;;  %v3891_v17 = vmax.f32 %v3890_v14, 0.0 }
 0x708   : > { %2122 = vst [vmem:[%s3585_s20 + $0x40] sm:$0xff] %v2089_v4  ;;  %v1989_v15 = vmul.f32 %v3518_v62, %v1877_v24  ;;  %v1768_v34 = vpop.permute.xlu0 %1767  ;;  %v3892_v4 = vld [vmem:[#allocation13_spill] sm:$0xff] }
 0x709   : > { %v2102_v38 = vadd.f32 %v3566_v10, %v1990_v39  ;;  %v1814_v61 = vsel %vm508_vm1, %v1766_v42, %v1768_v34  ;;  %v1868_v2 = vmax.f32 %v3878_v3, %v1768_v34  ;;  %v3893_v27 = vmax.f32 %v3892_v4, 0.0  ;;  %v3894_v42 = vld [vmem:[#allocation14_spill] sm:$0xff]  ;;  %v3896_v34 = vld [vmem:[#allocation15_spill] sm:$0xff]  ;;  %v3898_v3 = vld [vmem:[#allocation17_spill] sm:$0xff] }
 0x70a   : > { %v2101_v35 = vadd.f32 %v3566_v10, %v1989_v15  ;;  %v1867_v41 = vmax.f32 %v3879_v11, %v1814_v61  ;;  %v1790_v45 = vpop.permute.xlu1 %1789  ;;  %v3880_v10 = vmax.f32 %v3456_v1, 0.0  ;;  %v3895_v39 = vmax.f32 %v3894_v42, 0.0 }
 0x70b   : > { %2135 = vst.msk [vmem:[%s3585_s20 + $0xa8] sm:$0xff] %vm2114_vm9, %v2102_v38  ;;  %v1980_v62 = vmul.f32 %v3452_v60, %v1868_v2  ;;  %v3897_v38 = vmax.f32 %v3896_v34, 0.0 }
 0x70c   : > { %2134 = vst [vmem:[%s3585_s20 + $0xa0] sm:$0xff] %v2101_v35  ;;  %v1979_v23 = vmul.f32 %v3452_v60, %v1867_v41  ;;  %v1792_v51 = vpop.permute.xlu0 %1791 }
 0x70d   : > { %v2092_v37 = vadd.f32 %v3560_v44, %v1980_v62  ;;  %v1820_v31 = vsel %vm508_vm1, %v1790_v45, %v1792_v51  ;;  %v1880_v43 = vmax.f32 %v3880_v10, %v1792_v51  ;;  %v3899_v62 = vld [vmem:[#allocation18_spill] sm:$0xff] }
 0x70e   : > { %v2091_v26 = vadd.f32 %v3560_v44, %v1979_v23  ;;  %v1879_v9 = vmax.f32 %v3881_v33, %v1820_v31  ;;  %v1794_v20 = vpop.permute.xlu1 %1793 }
 0x70f   : > { %2125 = vst.msk [vmem:[%s3585_s20 + $0x58] sm:$0xff] %vm2114_vm9, %v2092_v37  ;;  %v1992_v60 = vmul.f32 %v3527_v54, %v1880_v43 }
 0x710   : > { %2124 = vst [vmem:[%s3585_s20 + $0x50] sm:$0xff] %v2091_v26  ;;  %v1991_v50 = vmul.f32 %v3527_v54, %v1879_v9  ;;  %v1796_v8 = vpop.permute.xlu0 %1795 }
 0x711   : > { %v2104_v6 = vadd.f32 %v3568_v16, %v1992_v60  ;;  %v1821_v1 = vsel %vm508_vm1, %v1794_v20, %v1796_v8  ;;  %v1882_v44 = vmax.f32 %v3882_v52, %v1796_v8 }
 0x712   : > { %v2103_v53 = vadd.f32 %v3568_v16, %v1991_v50  ;;  %v1881_v55 = vmax.f32 %v3883_v0, %v1821_v1  ;;  %v1798_v22 = vpop.permute.xlu1 %1797  ;;  %v3885_v16 = vmax.f32 %v3884_v19, 0.0 }
 0x713   : > { %2137 = vst.msk [vmem:[%s3585_s20 + $0xb8] sm:$0xff] %vm2114_vm9, %v2104_v6  ;;  %v1994_v49 = vmul.f32 %v3540_v63, %v1882_v44 }
 0x714   : > { %2136 = vst [vmem:[%s3585_s20 + $0xb0] sm:$0xff] %v2103_v53  ;;  %v1993_v54 = vmul.f32 %v3540_v63, %v1881_v55  ;;  %v1800_v32 = vpop.permute.xlu0 %1799 }
 0x715   : > { %v2106_v21 = vadd.f32 %v3571_v30, %v1994_v49  ;;  %v1822_v18 = vsel %vm508_vm1, %v1798_v22, %v1800_v32  ;;  %v1884_v48 = vmax.f32 %v3885_v16, %v1800_v32 }
 0x716   : > { %v2105_v47 = vadd.f32 %v3571_v30, %v1993_v54  ;;  %v1883_v59 = vmax.f32 %v3887_v12, %v1822_v18  ;;  %v1802_v28 = vpop.permute.xlu1 %1801 }
 0x717   : > { %2139 = vst.msk [vmem:[%s3585_s20 + $0xc8] sm:$0xff] %vm2114_vm9, %v2106_v21  ;;  %v1996_v63 = vmul.f32 %v3888_v5, %v1884_v48 }
 0x718   : > { %2138 = vst [vmem:[%s3585_s20 + $0xc0] sm:$0xff] %v2105_v47  ;;  %v1995_v36 = vmul.f32 %v3888_v5, %v1883_v59  ;;  %v1804_v57 = vpop.permute.xlu0 %1803 }
 0x719   : > { %v2108_v58 = vadd.f32 %v3889_v40, %v1996_v63  ;;  %v1823_v25 = vsel %vm508_vm1, %v1802_v28, %v1804_v57  ;;  %v1886_v24 = vmax.f32 %v3893_v27, %v1804_v57 }
 0x71a   : > { %v2107_v46 = vadd.f32 %v3889_v40, %v1995_v36  ;;  %v1806_v7 = vpop.permute.xlu1 %1805  ;;  %v1885_v56 = vmax.f32 %v3891_v17, %v1823_v25 }
 0x71b   : > { %2141 = vst.msk [vmem:[%s3585_s20 + $0xd8] sm:$0xff] %vm2114_vm9, %v2108_v58  ;;  %v1998_v35 = vmul.f32 %v3898_v3, %v1886_v24 }
 0x71c   : > { %2140 = vst [vmem:[%s3585_s20 + $0xd0] sm:$0xff] %v2107_v46  ;;  %v1808_v30 = vpop.permute.xlu0 %1807  ;;  %v1997_v2 = vmul.f32 %v3898_v3, %v1885_v56 }
 0x71d   : > { %v1824_v29 = vsel %vm508_vm1, %v1806_v7, %v1808_v30  ;;  %v1888_v61 = vmax.f32 %v3897_v38, %v1808_v30 }
 0x71e   : > { %v1887_v15 = vmax.f32 %v3895_v39, %v1824_v29 }
 0x71f   : > { %v2000_v23 = vmul.f32 %v3899_v62, %v1888_v61 }
 0x720   : > { %v1999_v51 = vmul.f32 %v3899_v62, %v1887_v15 }
 0x727   : > { %v2074_v11 = vpop.permute.xlu1 %2073 }
 0x728   : > { %v2109_v41 = vadd.f32 %v2074_v11, %v1997_v2  ;;  %v2110_v45 = vadd.f32 %v2074_v11, %v1998_v35 }
 0x729   : > { %v2079_v37 = vpop.permute.xlu0 %2078 }
 0x72a   : > { %2142 = vst [vmem:[%s3585_s20 + $0xe0] sm:$0xff] %v2109_v41  ;;  %2143 = vst.msk [vmem:[%s3585_s20 + $0xe8] sm:$0xff] %vm2114_vm9, %v2110_v45  ;;  %v2111_v31 = vadd.f32 %v2079_v37, %v1999_v51  ;;  %v2112_v10 = vadd.f32 %v2079_v37, %v2000_v23 }
 0x72c   : > { %2144 = vst [vmem:[%s3585_s20 + $0xf0] sm:$0xff] %v2111_v31  ;;  %2145 = vst.msk [vmem:[%s3585_s20 + $0xf8] sm:$0xff] %vm2114_vm9, %v2112_v10 }
 0x72d PF: > { %s3900_s29 = sld [smem:[#allocation9_spill]]  ;;  %p24_p12 = scmp.ge.s32.totalorder %s2659_s16, 4  }
 0x72e   : > { %s3901_s25 = smov %s2508_s26  ;;  %s3902_s26 = smov %s2512_s27 }
 0x72f   : > { %s3904_s28 = smov %s2659_s16  ;;  %26 = sbr.rel (!%p24_p12) target bundleno = 8 (0x8), region = 120 }
 0x733   : > { %s3903_s27 = smov %s3900_s29 }
 0x734   :  { %2167 = vsyncpa [#allocation3], 1 }
 0x735   :  { %2169 = vsyncpa [#allocation3 + $0x1], 1 }
 0x736   :  { %2170 = vsyncpa [#allocation5], 1 }

// kernel: ecg_cnn_forward.3
= control target key start
LH: loop header
LB: loop body
LE: loop exit
PB: predicated region body
PF: predicated region fallthrough
CT: control target
= control target key end

     0   :  { %12 = vsyncpa [#allocation4], 0  ;;  %s3040_s24 = smov 0   ;;  %s3339_s0 = inlined_call_operand.vmem [shape: f32[2,24320], index: 0, kind: input, shape index: {}]   ;;  %s3340_s1 = inlined_call_operand.vmem [shape: bf16[24320,100], index: 1, kind: input, shape index: {}]   ;;  %s3341_s2 = inlined_call_operand.vmem [shape: f32[1,100], index: 2, kind: input, shape index: {}]   ;;  %s3342_s3 = inlined_call_operand.vmem [shape: f32[100,50], index: 3, kind: input, shape index: {}]   ;;  %s3343_s4 = inlined_call_operand.vmem [shape: f32[1,50], index: 4, kind: input, shape index: {}]   ;;  %s3344_s5 = inlined_call_operand.vmem [shape: f32[50,5], index: 5, kind: input, shape index: {}]   ;;  %s3345_s6 = inlined_call_operand.vmem [shape: f32[1,5], index: 6, kind: input, shape index: {}]   ;;  %s3346_s7 = inlined_call_operand.hbm [shape: f32[2,5], index: 7, kind: output, shape index: {}]  }
   0x1 LB: > { %s3046_s25 = sadd.s32 4294967295, %s2991_s24   ;;  %p2316_p0 = scmp.ge.s32.totalorder %s2991_s24, 1  ;;  %s2991_s24 = sphi %s3040_s24, %s18_s24  }
   0x2   : > { %p245_p1 = scmp.lt.s32.totalorder %s2991_s24, 11 }
   0x4   : > { %p246_p2 = pnand %p2316_p0, %p245_p1 }
   0x5   : > { %s277_s26 = smul.u32 (!%p246_p2), 19, %s3046_s25  ;;  %p2319_p5 = scmp.ne.s32.totalorder (!%p246_p2), %s3046_s25, 0 }
   0x6   : > { %249 = sbr.rel (%p246_p2) target bundleno = 822 (0x336), region = 48 }
   0x7   : > { %s283_s27 = smul.u32 (!%p246_p2), 304, %s3046_s25  ;;  %p278_p3 = scmp.lt.s32.totalorder (!%p246_p2), %s277_s26, 189 }
   0x9   : > { %p284_p4 = scmp.lt.s32.totalorder (!%p246_p2), %s283_s27, 3039 }
   0xb   : > { %s3348_s26 = smov (!%p278_p3, %s277_s26), 189  ;;  %s3350_s27 = smov (!%p284_p4, %s283_s27), 3039 }
   0xc   : > { %s2317_s28 = sshll.u32 %s3348_s26, 1  ;;  %s2318_s9 = sshll.u32 %s3350_s27, 2 }
   0xd   : > { %s3055_s8 = scalar_lea.vmem %s3339_s0, %s2317_s28  ;;  %s3060_s12 = scalar_lea.vmem %s3340_s1, %s2318_s9 }
   0xe   : > { %293 = sbr.rel (%p2319_p5) target bundleno = 21 (0x15), region = 52 }
  0x13   : > { %vm294_vm0 = vcmask 812032   ;;  %v2993_v0 = vmov 0.0  }
  0x14   : > { %295 = vst.msk [vmem:[#allocation2] sm:$0x3] %vm294_vm0, %v2993_v0 }
  0x15 PF: > { %v2800_v1 = vld [vmem:[%s3060_s12 + $0x78] sm:$0xff]   ;;  %v2804_v5 = vld [vmem:[%s3060_s12 + $0x70] sm:$0xff]   ;;  %v2808_v9 = vld [vmem:[%s3060_s12 + $0x68] sm:$0xff]   ;;  %v311_v29 = vlaneseq  ;;  %v2994_v37 = vmov 1983009808   ;;  %vm2996_vm1 = vmmov 0  }
  0x16   : > { %v2801_v2 = vld [vmem:[%s3060_s12 + $0xf8] sm:$0xff]   ;;  %2484 = vmatprep.subr.bf16.mxu0 %v2800_v1  ;;  %v2805_v6 = vld [vmem:[%s3060_s12 + $0xf0] sm:$0xff]   ;;  %v2809_v10 = vld [vmem:[%s3060_s12 + $0xe8] sm:$0xff]   ;;  %v309_v38 = vunpack.c.l.s4 %v2994_v37  ;;  %vm2046_vm2 = vcmask 812032   ;;  %p2472_p6 = scmp.ne.s32.totalorder %s3046_s25, 9 }
  0x17   : > { %v2802_v3 = vld [vmem:[%s3060_s12 + $0x38] sm:$0xff]   ;;  %2506 = vmatprep.subr.bf16.mxu1 %v2801_v2  ;;  %v2806_v7 = vld [vmem:[%s3060_s12 + $0x30] sm:$0xff]   ;;  %v2810_v11 = vld [vmem:[%s3060_s12 + $0x28] sm:$0xff]   ;;  %v312_v34 = vshrl.u32 %v311_v29, 7 }
  0x18   : > { %v2803_v4 = vld [vmem:[%s3060_s12 + $0xb8] sm:$0xff]   ;;  %2485 = vmatpush3.bf16.msra.mxu0 %v2802_v3  ;;  %v2807_v8 = vld [vmem:[%s3060_s12 + $0xb0] sm:$0xff]   ;;  %v2811_v12 = vld [vmem:[%s3060_s12 + $0xa8] sm:$0xff]   ;;  %v310_v40 = vunpack.c.0.s8 %v309_v38 }
  0x19   : > { %2507 = vmatpush3.bf16.msra.mxu1 %v2803_v4  ;;  %2486 = vmatprep.subr.bf16.mxu0 %v2804_v5  ;;  %v2812_v13 = vld [vmem:[%s3060_s12 + $0x60] sm:$0xff]   ;;  %v2816_v17 = vld [vmem:[%s3060_s12 + $0x58] sm:$0xff]   ;;  %v2820_v21 = vld [vmem:[%s3060_s12 + $0x50] sm:$0xff]  }
  0x1a   : > { %2508 = vmatprep.subr.bf16.mxu1 %v2805_v6  ;;  %v2813_v14 = vld [vmem:[%s3060_s12 + $0xe0] sm:$0xff]   ;;  %v2817_v18 = vld [vmem:[%s3060_s12 + $0xd8] sm:$0xff]   ;;  %v2821_v22 = vld [vmem:[%s3060_s12 + $0xd0] sm:$0xff]   ;;  %v3098_v42 = vsub.s32 %v310_v40, %v312_v34 }
  0x1b   : > { %v2814_v15 = vld [vmem:[%s3060_s12 + $0x20] sm:$0xff]   ;;  %v2818_v19 = vld [vmem:[%s3060_s12 + $0x18] sm:$0xff]   ;;  %v2822_v23 = vld [vmem:[%s3060_s12 + $0x10] sm:$0xff]  }
  0x1c   : > { %2487 = vmatpush3.bf16.msra.mxu0 %v2806_v7  ;;  %v2815_v16 = vld [vmem:[%s3060_s12 + $0xa0] sm:$0xff]   ;;  %v2819_v20 = vld [vmem:[%s3060_s12 + $0x98] sm:$0xff]   ;;  %v2823_v24 = vld [vmem:[%s3060_s12 + $0x90] sm:$0xff]  }
  0x1d   : > { %2509 = vmatpush3.bf16.msra.mxu1 %v2807_v8  ;;  %2488 = vmatprep.subr.bf16.mxu0 %v2808_v9  ;;  %v2824_v25 = vld [vmem:[%s3060_s12 + $0x48] sm:$0xff]   ;;  %v2828_v30 = vld [vmem:[%s3060_s12 + $0x40] sm:$0xff]   ;;  %v2833_v36 = vld [vmem:[%s3060_s12 + $0x178] sm:$0xff]  }
  0x1e   : > { %2510 = vmatprep.subr.bf16.mxu1 %v2809_v10  ;;  %v2825_v26 = vld [vmem:[%s3060_s12 + $0xc8] sm:$0xff]   ;;  %v2829_v31 = vld [vmem:[%s3060_s12 + $0xc0] sm:$0xff]   ;;  %v2834_v39 = vld [vmem:[%s3060_s12 + $0x1f8] sm:$0xff]  }
  0x1f   : > { %v2826_v27 = vld [vmem:[%s3060_s12 + $0x8] sm:$0xff]   ;;  %v2830_v32 = vld [vmem:[%s3060_s12] sm:$0xff]   ;;  %v2835_v47 = vld [vmem:[%s3060_s12 + $0x138] sm:$0xff]  }
  0x20   : > { %2489 = vmatpush3.bf16.msra.mxu0 %v2810_v11  ;;  %v2827_v28 = vld [vmem:[%s3060_s12 + $0x88] sm:$0xff]   ;;  %v2831_v33 = vld [vmem:[%s3060_s12 + $0x80] sm:$0xff]   ;;  %v2836_v50 = vld [vmem:[%s3060_s12 + $0x1b8] sm:$0xff]  }
  0x21   : > { %2511 = vmatpush3.bf16.msra.mxu1 %v2811_v12  ;;  %2490 = vmatprep.subr.bf16.mxu0 %v2812_v13  ;;  %v297_v35 = vld [vmem:[%s3055_s8] sm:$0xff]  ;;  %v2837_v53 = vld [vmem:[%s3060_s12 + $0x170] sm:$0xff]   ;;  %v2841_v57 = vld [vmem:[%s3060_s12 + $0x168] sm:$0xff]  }
  0x22   : > { %2512 = vmatprep.subr.bf16.mxu1 %v2813_v14  ;;  %v307_v41 = vcombine.high %v297_v35, %v297_v35  ;;  %v314_v43 = vrot.slane %v297_v35, %v3098_v42  ;;  %v2838_v54 = vld [vmem:[%s3060_s12 + $0x1f0] sm:$0xff]   ;;  %v2842_v58 = vld [vmem:[%s3060_s12 + $0x1e8] sm:$0xff]   ;;  %v2845_v61 = vld [vmem:[%s3060_s12 + $0x160] sm:$0xff]  }
  0x23   : > { %v2839_v55 = vld [vmem:[%s3060_s12 + $0x130] sm:$0xff]   ;;  %v2843_v59 = vld [vmem:[%s3060_s12 + $0x128] sm:$0xff]   ;;  %v2846_v62 = vld [vmem:[%s3060_s12 + $0x1e0] sm:$0xff]  }
  0x24   : > { %2491 = vmatpush3.bf16.msra.mxu0 %v2814_v15  ;;  %v321_v44 = vrot.slane %v307_v41, %v3098_v42  ;;  %v322_v45 = vcombine.high %v314_v43, %v314_v43  ;;  %v410_v48 = vpack.c.bf16 %v314_v43, %v314_v43  ;;  %v2840_v56 = vld [vmem:[%s3060_s12 + $0x1b0] sm:$0xff]   ;;  %v2844_v60 = vld [vmem:[%s3060_s12 + $0x1a8] sm:$0xff]   ;;  %v2847_v63 = vld [vmem:[%s3060_s12 + $0x120] sm:$0xff]  }
  0x25   : > { %2513 = vmatpush3.bf16.msra.mxu1 %v2815_v16  ;;  %2492 = vmatprep.subr.bf16.mxu0 %v2816_v17  ;;  %v2848_v0 = vld [vmem:[%s3060_s12 + $0x1a0] sm:$0xff]   ;;  %v2849_v1 = vld [vmem:[%s3060_s12 + $0x158] sm:$0xff]   ;;  %v2853_v5 = vld [vmem:[%s3060_s12 + $0x150] sm:$0xff]  }
  0x26   : > { %2514 = vmatprep.subr.bf16.mxu1 %v2817_v18  ;;  %v323_v46 = vcombine.high %v321_v44, %v321_v44  ;;  %v412_v49 = vpack.c.bf16 %v321_v44, %v321_v44  ;;  %v411_v51 = vpack.c.bf16 %v322_v45, %v322_v45  ;;  %v2850_v2 = vld [vmem:[%s3060_s12 + $0x1d8] sm:$0xff]   ;;  %v2854_v6 = vld [vmem:[%s3060_s12 + $0x1d0] sm:$0xff]   ;;  %v2857_v9 = vld [vmem:[%s3060_s12 + $0x148] sm:$0xff]  }
  0x27   : > { %v2851_v3 = vld [vmem:[%s3060_s12 + $0x118] sm:$0xff]   ;;  %v2855_v7 = vld [vmem:[%s3060_s12 + $0x110] sm:$0xff]   ;;  %v2858_v10 = vld [vmem:[%s3060_s12 + $0x1c8] sm:$0xff]  }
  0x28   : > { %2493 = vmatpush3.bf16.msra.mxu0 %v2818_v19  ;;  %v413_v52 = vpack.c.bf16 %v323_v46, %v323_v46  ;;  %1677 = vmatprep.mubr.bf16.mxu0 %v411_v51  ;;  %v2852_v4 = vld [vmem:[%s3060_s12 + $0x198] sm:$0xff]   ;;  %v2856_v8 = vld [vmem:[%s3060_s12 + $0x190] sm:$0xff]   ;;  %v298_v11 = vld [vmem:[%s3055_s8 + $0x8] sm:$0xff] }
  0x29   : > { %2515 = vmatpush3.bf16.msra.mxu1 %v2819_v20  ;;  %2494 = vmatprep.subr.bf16.mxu0 %v2820_v21  ;;  %v2859_v12 = vld [vmem:[%s3060_s12 + $0x108] sm:$0xff]   ;;  %v331_v13 = vrot.slane %v298_v11, %v3098_v42  ;;  %v324_v14 = vcombine.high %v298_v11, %v298_v11  ;;  %v2861_v16 = vld [vmem:[%s3060_s12 + $0x140] sm:$0xff]   ;;  %v2873_v34 = vld [vmem:[%s3060_s12 + $0x2b0] sm:$0xff]  }
  0x2a   : > { %2516 = vmatprep.subr.bf16.mxu1 %v2821_v22  ;;  %1717 = vmatprep.mubr.bf16.mxu1 %v413_v52  ;;  %v2860_v15 = vld [vmem:[%s3060_s12 + $0x188] sm:$0xff]   ;;  %v2862_v19 = vld [vmem:[%s3060_s12 + $0x1c0] sm:$0xff]   ;;  %v2882_v44 = vld [vmem:[%s3060_s12 + $0x258] sm:$0xff]  }
  0x2b   : > { %v339_v17 = vcombine.high %v331_v13, %v331_v13  ;;  %v338_v18 = vrot.slane %v324_v14, %v3098_v42  ;;  %v2863_v20 = vld [vmem:[%s3060_s12 + $0x100] sm:$0xff]   ;;  %v2874_v35 = vld [vmem:[%s3060_s12 + $0x268] sm:$0xff]   ;;  %v2883_v45 = vld [vmem:[%s3060_s12 + $0x2d8] sm:$0xff]  }
  0x2c   : > { %2495 = vmatpush3.bf16.msra.mxu0 %v2822_v23  ;;  %v2864_v23 = vld [vmem:[%s3060_s12 + $0x180] sm:$0xff]   ;;  %v2876_v37 = vld [vmem:[%s3060_s12 + $0x228] sm:$0xff]   ;;  %v2884_v46 = vld [vmem:[%s3060_s12 + $0x218] sm:$0xff]  }
  0x2d   : > { %2517 = vmatpush3.bf16.msra.mxu1 %v2823_v24  ;;  %2496 = vmatprep.subr.bf16.mxu0 %v2824_v25  ;;  %v415_v21 = vpack.c.bf16 %v339_v17, %v339_v17  ;;  %v340_v22 = vcombine.high %v338_v18, %v338_v18  ;;  %v2866_v25 = vld [vmem:[%s3060_s12 + $0x278] sm:$0xff]   ;;  %v416_v29 = vpack.c.bf16 %v338_v18, %v338_v18  ;;  %v2877_v38 = vld [vmem:[%s3060_s12 + $0x2a8] sm:$0xff]   ;;  %v2879_v40 = vld [vmem:[%s3060_s12 + $0x2e0] sm:$0xff]  }
  0x2e   : > { %2518 = vmatprep.subr.bf16.mxu1 %v2825_v26  ;;  %v2867_v26 = vld [vmem:[%s3060_s12 + $0x2f8] sm:$0xff]   ;;  %v2880_v41 = vld [vmem:[%s3060_s12 + $0x220] sm:$0xff]   ;;  %v2889_v51 = vld [vmem:[%s3060_s12 + $0x290] sm:$0xff]  }
  0x2f   : > { %v417_v24 = vpack.c.bf16 %v340_v22, %v340_v22  ;;  %v2881_v43 = vld [vmem:[%s3060_s12 + $0x2a0] sm:$0xff]   ;;  %v2890_v52 = vld [vmem:[%s3060_s12 + $0x248] sm:$0xff]   ;;  %v2904_v11 = vld [vmem:[%s3060_s12 + $0x3f0] sm:$0xff]  }
  0x30   : > { %2497 = vmatpush3.bf16.msra.mxu0 %v2826_v27  ;;  %v2868_v27 = vld [vmem:[%s3060_s12 + $0x238] sm:$0xff]   ;;  %v2907_v14 = vld [vmem:[%s3060_s12 + $0x368] sm:$0xff]   ;;  %v2911_v18 = vld [vmem:[%s3060_s12 + $0x360] sm:$0xff]  }
  0x31   : > { %2519 = vmatpush3.bf16.msra.mxu1 %v2827_v28  ;;  %2498 = vmatprep.subr.bf16.mxu0 %v2828_v30  ;;  %v414_v28 = vpack.c.bf16 %v331_v13, %v331_v13  ;;  %v2869_v30 = vld [vmem:[%s3060_s12 + $0x2b8] sm:$0xff]   ;;  %v2906_v13 = vld [vmem:[%s3060_s12 + $0x3b0] sm:$0xff]   ;;  %v2910_v17 = vld [vmem:[%s3060_s12 + $0x3a8] sm:$0xff]  }
  0x32   : > { %2520 = vmatprep.subr.bf16.mxu1 %v2829_v31  ;;  %v2870_v31 = vld [vmem:[%s3060_s12 + $0x270] sm:$0xff]   ;;  %v2915_v22 = vld [vmem:[%s3060_s12 + $0x358] sm:$0xff]  }
  0x34   : > { %2499 = vmatpush3.bf16.msra.mxu0 %v2830_v32  ;;  %v2871_v32 = vld [vmem:[%s3060_s12 + $0x2f0] sm:$0xff]  }
  0x35   : > { %2521 = vmatpush3.bf16.msra.mxu1 %v2831_v33  ;;  %2528 = vmatprep.subr.bf16.mxu0 %v2833_v36  ;;  %v2872_v33 = vld [vmem:[%s3060_s12 + $0x230] sm:$0xff]   ;;  %v2875_v36 = vld [vmem:[%s3060_s12 + $0x2e8] sm:$0xff]  }
  0x36   : > { %2550 = vmatprep.subr.bf16.mxu1 %v2834_v39  ;;  %v2878_v39 = vld [vmem:[%s3060_s12 + $0x260] sm:$0xff]  }
  0x37   : > { %1678 = vmatmul.mubr.bf16.vlgmr.msra.gmra.mxu0 %v410_v48  ;;  %v2886_v48 = vld [vmem:[%s3060_s12 + $0x250] sm:$0xff]  }
  0x38   : > { %1718 = vmatmul.mubr.bf16.vlgmr.msra.gmra.mxu1 %v412_v49  ;;  %2529 = vmatpush3.bf16.msra.mxu0 %v2835_v47  ;;  %v2885_v47 = vld [vmem:[%s3060_s12 + $0x298] sm:$0xff]   ;;  %v2887_v49 = vld [vmem:[%s3060_s12 + $0x2d0] sm:$0xff]  }
  0x39   : > { %2551 = vmatpush3.bf16.msra.mxu1 %v2836_v50  ;;  %2530 = vmatprep.subr.bf16.mxu0 %v2837_v53  ;;  %v2888_v50 = vld [vmem:[%s3060_s12 + $0x210] sm:$0xff]   ;;  %v2891_v53 = vld [vmem:[%s3060_s12 + $0x2c8] sm:$0xff]  }
  0x3a   : > { %2552 = vmatprep.subr.bf16.mxu1 %v2838_v54  ;;  %1757 = vmatprep.mubr.bf16.mxu0 %v415_v21  ;;  %v299_v54 = vld [vmem:[%s3055_s8 + $0x10] sm:$0xff]  ;;  %v2914_v21 = vld [vmem:[%s3060_s12 + $0x3a0] sm:$0xff]  }
  0x3b   : > { %1797 = vmatprep.mubr.bf16.mxu1 %v417_v24  ;;  %v2917_v24 = vld [vmem:[%s3060_s12 + $0x318] sm:$0xff]  }
  0x3c   : > { %2531 = vmatpush3.bf16.msra.mxu0 %v2839_v55  ;;  %v2892_v55 = vld [vmem:[%s3060_s12 + $0x208] sm:$0xff]  }
  0x3d   : > { %2553 = vmatpush3.bf16.msra.mxu1 %v2840_v56  ;;  %2532 = vmatprep.subr.bf16.mxu0 %v2841_v57  ;;  %v348_v56 = vrot.slane %v299_v54, %v3098_v42  ;;  %v341_v57 = vcombine.high %v299_v54, %v299_v54  ;;  %v2936_v54 = vld [vmem:[%s3060_s12 + $0x430] sm:$0xff]  }
  0x3e   : > { %2554 = vmatprep.subr.bf16.mxu1 %v2842_v58  ;;  %v2893_v58 = vld [vmem:[%s3060_s12 + $0x288] sm:$0xff]  }
  0x40   : > { %2533 = vmatpush3.bf16.msra.mxu0 %v2843_v59  ;;  %v2894_v59 = vld [vmem:[%s3060_s12 + $0x240] sm:$0xff]  }
  0x41   : > { %2555 = vmatpush3.bf16.msra.mxu1 %v2844_v60  ;;  %2534 = vmatprep.subr.bf16.mxu0 %v2845_v61  ;;  %v356_v60 = vcombine.high %v348_v56, %v348_v56  ;;  %v355_v61 = vrot.slane %v341_v57, %v3098_v42  ;;  %v2939_v57 = vld [vmem:[%s3060_s12 + $0x428] sm:$0xff]  }
  0x42   : > { %2556 = vmatprep.subr.bf16.mxu1 %v2846_v62  ;;  %v2895_v62 = vld [vmem:[%s3060_s12 + $0x2c0] sm:$0xff]  }
  0x44   : > { %2535 = vmatpush3.bf16.msra.mxu0 %v2847_v63  ;;  %v2896_v63 = vld [vmem:[%s3060_s12 + $0x200] sm:$0xff]  }
  0x45   : > { %2557 = vmatpush3.bf16.msra.mxu1 %v2848_v0  ;;  %2536 = vmatprep.subr.bf16.mxu0 %v2849_v1  ;;  %v419_v0 = vpack.c.bf16 %v356_v60, %v356_v60  ;;  %v357_v1 = vcombine.high %v355_v61, %v355_v61  ;;  %v2942_v60 = vld [vmem:[%s3060_s12 + $0x420] sm:$0xff]  }
  0x46   : > { %2558 = vmatprep.subr.bf16.mxu1 %v2850_v2  ;;  %v2897_v2 = vld [vmem:[%s3060_s12 + $0x280] sm:$0xff]  }
  0x48   : > { %2537 = vmatpush3.bf16.msra.mxu0 %v2851_v3  ;;  %v421_v3 = vpack.c.bf16 %v357_v1, %v357_v1  ;;  %v2945_v1 = vld [vmem:[%s3060_s12 + $0x418] sm:$0xff]  }
  0x49   : > { %2559 = vmatpush3.bf16.msra.mxu1 %v2852_v4  ;;  %2538 = vmatprep.subr.bf16.mxu0 %v2853_v5  ;;  %v2899_v4 = vld [vmem:[%s3060_s12 + $0x378] sm:$0xff]  }
  0x4a   : > { %2560 = vmatprep.subr.bf16.mxu1 %v2854_v6  ;;  %v2900_v5 = vld [vmem:[%s3060_s12 + $0x3f8] sm:$0xff]  }
  0x4b   : > { %v2901_v6 = vld [vmem:[%s3060_s12 + $0x338] sm:$0xff]  }
  0x4c   : > { %2539 = vmatpush3.bf16.msra.mxu0 %v2855_v7  ;;  %v418_v7 = vpack.c.bf16 %v348_v56, %v348_v56  ;;  %v2938_v56 = vld [vmem:[%s3060_s12 + $0x468] sm:$0xff]  }
  0x4d   : > { %2561 = vmatpush3.bf16.msra.mxu1 %v2856_v8  ;;  %2540 = vmatprep.subr.bf16.mxu0 %v2857_v9  ;;  %v420_v8 = vpack.c.bf16 %v355_v61, %v355_v61  ;;  %v2902_v9 = vld [vmem:[%s3060_s12 + $0x3b8] sm:$0xff]   ;;  %v2943_v61 = vld [vmem:[%s3060_s12 + $0x4a0] sm:$0xff]  }
  0x4e   : > { %2562 = vmatprep.subr.bf16.mxu1 %v2858_v10  ;;  %v2903_v10 = vld [vmem:[%s3060_s12 + $0x370] sm:$0xff]  }
  0x50   : > { %2541 = vmatpush3.bf16.msra.mxu0 %v2859_v12  ;;  %v2905_v12 = vld [vmem:[%s3060_s12 + $0x330] sm:$0xff]  }
  0x51   : > { %2563 = vmatpush3.bf16.msra.mxu1 %v2860_v15  ;;  %2542 = vmatprep.subr.bf16.mxu0 %v2861_v16  ;;  %v2908_v15 = vld [vmem:[%s3060_s12 + $0x3e8] sm:$0xff]  }
  0x52   : > { %2564 = vmatprep.subr.bf16.mxu1 %v2862_v19  ;;  %v2909_v16 = vld [vmem:[%s3060_s12 + $0x328] sm:$0xff]   ;;  %v2912_v19 = vld [vmem:[%s3060_s12 + $0x3e0] sm:$0xff]  }
  0x54   : > { %2543 = vmatpush3.bf16.msra.mxu0 %v2863_v20  ;;  %v2913_v20 = vld [vmem:[%s3060_s12 + $0x320] sm:$0xff]  }
  0x55   : > { %2565 = vmatpush3.bf16.msra.mxu1 %v2864_v23  ;;  %2572 = vmatprep.subr.bf16.mxu0 %v2866_v25  ;;  %v2916_v23 = vld [vmem:[%s3060_s12 + $0x3d8] sm:$0xff]  }
  0x56   : > { %2594 = vmatprep.subr.bf16.mxu1 %v2867_v26  ;;  %v2918_v25 = vld [vmem:[%s3060_s12 + $0x398] sm:$0xff]   ;;  %v2919_v26 = vld [vmem:[%s3060_s12 + $0x350] sm:$0xff]  }
  0x57   : > { %1758 = vmatmul.mubr.bf16.vlgmr.msra.gmra.mxu0 %v414_v28  ;;  %v2921_v28 = vld [vmem:[%s3060_s12 + $0x310] sm:$0xff]  }
  0x58   : > { %1798 = vmatmul.mubr.bf16.vlgmr.msra.gmra.mxu1 %v416_v29  ;;  %2573 = vmatpush3.bf16.msra.mxu0 %v2868_v27  ;;  %v2920_v27 = vld [vmem:[%s3060_s12 + $0x3d0] sm:$0xff]  }
  0x59   : > { %2595 = vmatpush3.bf16.msra.mxu1 %v2869_v30  ;;  %2574 = vmatprep.subr.bf16.mxu0 %v2870_v31  ;;  %v2922_v29 = vld [vmem:[%s3060_s12 + $0x390] sm:$0xff]   ;;  %v2923_v30 = vld [vmem:[%s3060_s12 + $0x348] sm:$0xff]  }
  0x5a   : > { %2596 = vmatprep.subr.bf16.mxu1 %v2871_v32  ;;  %1837 = vmatprep.mubr.bf16.mxu0 %v419_v0  ;;  %v2924_v31 = vld [vmem:[%s3060_s12 + $0x3c8] sm:$0xff]  }
  0x5b   : > { %1877 = vmatprep.mubr.bf16.mxu1 %v421_v3  ;;  %v2925_v32 = vld [vmem:[%s3060_s12 + $0x308] sm:$0xff]   ;;  %v2947_v3 = vld [vmem:[%s3060_s12 + $0x450] sm:$0xff]  }
  0x5c   : > { %2575 = vmatpush3.bf16.msra.mxu0 %v2872_v33  ;;  %v300_v33 = vld [vmem:[%s3055_s8 + $0x18] sm:$0xff] }
  0x5d   : > { %2597 = vmatpush3.bf16.msra.mxu1 %v2873_v34  ;;  %2576 = vmatprep.subr.bf16.mxu0 %v2874_v35  ;;  %v2926_v34 = vld [vmem:[%s3060_s12 + $0x388] sm:$0xff]   ;;  %v365_v35 = vrot.slane %v300_v33, %v3098_v42 }
  0x5e   : > { %2598 = vmatprep.subr.bf16.mxu1 %v2875_v36  ;;  %v358_v36 = vcombine.high %v300_v33, %v300_v33 }
  0x60   : > { %2577 = vmatpush3.bf16.msra.mxu0 %v2876_v37  ;;  %v2927_v37 = vld [vmem:[%s3060_s12 + $0x340] sm:$0xff]  }
  0x61   : > { %2599 = vmatpush3.bf16.msra.mxu1 %v2877_v38  ;;  %2578 = vmatprep.subr.bf16.mxu0 %v2878_v39  ;;  %v2928_v38 = vld [vmem:[%s3060_s12 + $0x3c0] sm:$0xff]   ;;  %v373_v39 = vcombine.high %v365_v35, %v365_v35 }
  0x62   : > { %2600 = vmatprep.subr.bf16.mxu1 %v2879_v40  ;;  %v372_v40 = vrot.slane %v358_v36, %v3098_v42 }
  0x64   : > { %2579 = vmatpush3.bf16.msra.mxu0 %v2880_v41  ;;  %v2929_v41 = vld [vmem:[%s3060_s12 + $0x300] sm:$0xff]  }
  0x65   : > { %2601 = vmatpush3.bf16.msra.mxu1 %v2881_v43  ;;  %2580 = vmatprep.subr.bf16.mxu0 %v2882_v44  ;;  %v423_v43 = vpack.c.bf16 %v373_v39, %v373_v39  ;;  %v374_v44 = vcombine.high %v372_v40, %v372_v40 }
  0x66   : > { %2602 = vmatprep.subr.bf16.mxu1 %v2883_v45  ;;  %v2930_v45 = vld [vmem:[%s3060_s12 + $0x380] sm:$0xff]  }
  0x68   : > { %2581 = vmatpush3.bf16.msra.mxu0 %v2884_v46  ;;  %v425_v46 = vpack.c.bf16 %v374_v44, %v374_v44 }
  0x69   : > { %2603 = vmatpush3.bf16.msra.mxu1 %v2885_v47  ;;  %2582 = vmatprep.subr.bf16.mxu0 %v2886_v48  ;;  %v2932_v47 = vld [vmem:[%s3060_s12 + $0x478] sm:$0xff]   ;;  %v422_v48 = vpack.c.bf16 %v365_v35, %v365_v35 }
  0x6a   : > { %2604 = vmatprep.subr.bf16.mxu1 %v2887_v49  ;;  %v424_v49 = vpack.c.bf16 %v372_v40, %v372_v40 }
  0x6c   : > { %2583 = vmatpush3.bf16.msra.mxu0 %v2888_v50  ;;  %v2933_v50 = vld [vmem:[%s3060_s12 + $0x438] sm:$0xff]  }
  0x6d   : > { %2605 = vmatpush3.bf16.msra.mxu1 %v2889_v51  ;;  %2584 = vmatprep.subr.bf16.mxu0 %v2890_v52  ;;  %v2934_v51 = vld [vmem:[%s3060_s12 + $0x4b8] sm:$0xff]   ;;  %v2995_v52 = vmov 0.0  }
  0x6e   : > { %2606 = vmatprep.subr.bf16.mxu1 %v2891_v53  ;;  %v2935_v53 = vld [vmem:[%s3060_s12 + $0x470] sm:$0xff]  }
  0x70   : > { %2585 = vmatpush3.bf16.msra.mxu0 %v2892_v55  ;;  %v2937_v55 = vld [vmem:[%s3060_s12 + $0x4b0] sm:$0xff]  }
  0x71   : > { %2607 = vmatpush3.bf16.msra.mxu1 %v2893_v58  ;;  %2586 = vmatprep.subr.bf16.mxu0 %v2894_v59  ;;  %v2940_v58 = vld [vmem:[%s3060_s12 + $0x4a8] sm:$0xff]   ;;  %v2941_v59 = vld [vmem:[%s3060_s12 + $0x460] sm:$0xff]  }
  0x72   : > { %2608 = vmatprep.subr.bf16.mxu1 %v2895_v62  ;;  %v2944_v62 = vld [vmem:[%s3060_s12 + $0x458] sm:$0xff]  }
  0x74   : > { %2587 = vmatpush3.bf16.msra.mxu0 %v2896_v63  ;;  %v301_v63 = vld [vmem:[%s3055_s8 + $0x20] sm:$0x3f] }
  0x75   : > { %2609 = vmatpush3.bf16.msra.mxu1 %v2897_v2  ;;  %2616 = vmatprep.subr.bf16.mxu0 %v2899_v4  ;;  %v382_v0 = vrot.slane %v301_v63, %v3098_v42  ;;  %v2946_v2 = vld [vmem:[%s3060_s12 + $0x498] sm:$0xff]  }
  0x76   : > { %2638 = vmatprep.subr.bf16.mxu1 %v2900_v5 }
  0x77   : > { %1838 = vmatmul.mubr.bf16.vlgmr.msra.gmra.mxu0 %v418_v7  ;;  %v390_v4 = vcombine.high %v382_v0, %v382_v0  ;;  %v2949_v7 = vld [vmem:[%s3060_s12 + $0x490] sm:$0xff]  }
  0x78   : > { %1878 = vmatmul.mubr.bf16.vlgmr.msra.gmra.mxu1 %v420_v8  ;;  %2617 = vmatpush3.bf16.msra.mxu0 %v2901_v6  ;;  %v2948_v6 = vld [vmem:[%s3060_s12 + $0x410] sm:$0xff]   ;;  %v2950_v8 = vld [vmem:[%s3060_s12 + $0x448] sm:$0xff]  }
  0x79   : > { %2639 = vmatpush3.bf16.msra.mxu1 %v2902_v9  ;;  %2618 = vmatprep.subr.bf16.mxu0 %v2903_v10  ;;  %v427_v5 = vpack.c.bf16 %v390_v4, %v390_v4  ;;  %v375_v9 = vcombine.high %v301_v63, %v301_v63  ;;  %v2951_v10 = vld [vmem:[%s3060_s12 + $0x408] sm:$0xff]  }
  0x7a   : > { %2640 = vmatprep.subr.bf16.mxu1 %v2904_v11  ;;  %1917 = vmatprep.mubr.bf16.mxu0 %v423_v43  ;;  %v2952_v11 = vld [vmem:[%s3060_s12 + $0x488] sm:$0xff]  }
  0x7b   : > { %1957 = vmatprep.mubr.bf16.mxu1 %v425_v46 }
  0x7c   : > { %2619 = vmatpush3.bf16.msra.mxu0 %v2905_v12  ;;  %v2953_v12 = vld [vmem:[%s3060_s12 + $0x440] sm:$0xff]  }
  0x7d   : > { %2641 = vmatpush3.bf16.msra.mxu1 %v2906_v13  ;;  %2620 = vmatprep.subr.bf16.mxu0 %v2907_v14  ;;  %v389_v13 = vrot.slane %v375_v9, %v3098_v42  ;;  %v2954_v14 = vld [vmem:[%s3060_s12 + $0x400] sm:$0xff]  }
  0x7e   : > { %2642 = vmatprep.subr.bf16.mxu1 %v2908_v15  ;;  %v2955_v15 = vld [vmem:[%s3060_s12 + $0x480] sm:$0xff]  }
  0x7f   : > { %v296_v9 = vld [vmem:[#allocation2] sm:$0x3] }
  0x80   : > { %2621 = vmatpush3.bf16.msra.mxu0 %v2909_v16  ;;  %v426_v16 = vpack.c.bf16 %v382_v0, %v382_v0 }
  0x81   : > { %2643 = vmatpush3.bf16.msra.mxu1 %v2910_v17  ;;  %2622 = vmatprep.subr.bf16.mxu0 %v2911_v18  ;;  %v428_v17 = vpack.c.bf16 %v389_v13, %v389_v13 }
  0x82   : > { %2644 = vmatprep.subr.bf16.mxu1 %v2912_v19 }
  0x84   : > { %2623 = vmatpush3.bf16.msra.mxu0 %v2913_v20 }
  0x85   : > { %2645 = vmatpush3.bf16.msra.mxu1 %v2914_v21  ;;  %2624 = vmatprep.subr.bf16.mxu0 %v2915_v22 }
  0x86   : > { %2646 = vmatprep.subr.bf16.mxu1 %v2916_v23 }
  0x88   : > { %2625 = vmatpush3.bf16.msra.mxu0 %v2917_v24 }
  0x89   : > { %2647 = vmatpush3.bf16.msra.mxu1 %v2918_v25  ;;  %2626 = vmatprep.subr.bf16.mxu0 %v2919_v26 }
  0x8a   : > { %2648 = vmatprep.subr.bf16.mxu1 %v2920_v27 }
  0x8c   : > { %2627 = vmatpush3.bf16.msra.mxu0 %v2921_v28 }
  0x8d   : > { %2649 = vmatpush3.bf16.msra.mxu1 %v2922_v29  ;;  %2628 = vmatprep.subr.bf16.mxu0 %v2923_v30 }
  0x8e   : > { %2650 = vmatprep.subr.bf16.mxu1 %v2924_v31 }
  0x90   : > { %2629 = vmatpush3.bf16.msra.mxu0 %v2925_v32 }
  0x91   : > { %2651 = vmatpush3.bf16.msra.mxu1 %v2926_v34  ;;  %2630 = vmatprep.subr.bf16.mxu0 %v2927_v37 }
  0x92   : > { %2652 = vmatprep.subr.bf16.mxu1 %v2928_v38 }
  0x94   : > { %2631 = vmatpush3.bf16.msra.mxu0 %v2929_v41 }
  0x95   : > { %2653 = vmatpush3.bf16.msra.mxu1 %v2930_v45  ;;  %2660 = vmatprep.subr.bf16.mxu0 %v2932_v47 }
  0x96   : > { %2713 = vmatprep.subr.bf16.mxu1 %v2995_v52 }
  0x97   : > { %1918 = vmatmul.mubr.bf16.vlgmr.msra.gmra.mxu0 %v422_v48 }
  0x98   : > { %1958 = vmatmul.mubr.bf16.vlgmr.msra.gmra.mxu1 %v424_v49  ;;  %2661 = vmatpush3.bf16.msra.mxu0 %v2933_v50 }
  0x99   : > { %2714 = vmatpush3.bf16.msra.mxu1 %v2934_v51  ;;  %2662 = vmatprep.subr.bf16.mxu0 %v2935_v53 }
  0x9a   : > { %2715 = vmatprep.subr.bf16.mxu1 %v2995_v52  ;;  %2729 = vmatprep.mubr.msk.bf16.mxu1 %vm2996_vm1, %v2995_v52 }
  0x9b   : > { %1997 = vmatprep.mubr.bf16.mxu0 %v427_v5 }
  0x9c   : > { %2663 = vmatpush3.bf16.msra.mxu0 %v2936_v54 }
  0x9d   : > { %2716 = vmatpush3.bf16.msra.mxu1 %v2937_v55  ;;  %2664 = vmatprep.subr.bf16.mxu0 %v2938_v56 }
  0x9e   : > { %2717 = vmatprep.subr.bf16.mxu1 %v2995_v52 }
  0xa0   : > { %2665 = vmatpush3.bf16.msra.mxu0 %v2939_v57 }
  0xa1   : > { %2718 = vmatpush3.bf16.msra.mxu1 %v2940_v58  ;;  %2666 = vmatprep.subr.bf16.mxu0 %v2941_v59 }
  0xa2   : > { %2719 = vmatprep.subr.bf16.mxu1 %v2995_v52 }
  0xa4   : > { %2667 = vmatpush3.bf16.msra.mxu0 %v2942_v60 }
  0xa5   : > { %2720 = vmatpush3.bf16.msra.mxu1 %v2943_v61  ;;  %2668 = vmatprep.subr.bf16.mxu0 %v2944_v62 }
  0xa6   : > { %2721 = vmatprep.subr.bf16.mxu1 %v2995_v52 }
  0xa8   : > { %2669 = vmatpush3.bf16.msra.mxu0 %v2945_v1 }
  0xa9   : > { %2722 = vmatpush3.bf16.msra.mxu1 %v2946_v2  ;;  %2670 = vmatprep.subr.bf16.mxu0 %v2947_v3 }
  0xaa   : > { %2723 = vmatprep.subr.bf16.mxu1 %v2995_v52 }
  0xac   : > { %2671 = vmatpush3.bf16.msra.mxu0 %v2948_v6 }
  0xad   : > { %2724 = vmatpush3.bf16.msra.mxu1 %v2949_v7  ;;  %2672 = vmatprep.subr.bf16.mxu0 %v2950_v8 }
  0xae   : > { %2725 = vmatprep.subr.bf16.mxu1 %v2995_v52 }
  0xb0   : > { %2673 = vmatpush3.bf16.msra.mxu0 %v2951_v10 }
  0xb1   : > { %2726 = vmatpush3.bf16.msra.mxu1 %v2952_v11  ;;  %2674 = vmatprep.subr.bf16.mxu0 %v2953_v12 }
  0xb2   : > { %2727 = vmatprep.subr.bf16.mxu1 %v2995_v52 }
  0xb4   : > { %2675 = vmatpush3.bf16.msra.mxu0 %v2954_v14 }
  0xb5   : > { %2728 = vmatpush3.bf16.msra.mxu1 %v2955_v15 }
  0xb7   : > { %1998 = vmatmul.mubr.bf16.vlgmr.msra.gmra.mxu0 %v426_v16 }
  0xb8   : > { %2730 = vmatmul.mubr.bf16.vlgmr.msra.gmra.mxu1 %v428_v17 }
  0xf7   : > { %v2500_v18 = vpop.f32.mrf.mxu0 }
  0xf8   : > { %v2522_v19 = vpop.f32.mrf.mxu1 }
  0xf9   : > { %v2501_v20 = vpop.f32.mrf.mxu0 }
  0xfa   : > { %v2523_v21 = vpop.f32.mrf.mxu1  ;;  %v2502_v22 = vadd.f32 %v2501_v20, %v2500_v18 }
  0xfb   : > { %v2524_v23 = vadd.f32 %v2523_v21, %v2522_v19  ;;  %v2503_v24 = vpop.f32.mrf.mxu0 }
  0xfc   : > { %v2525_v42 = vpop.f32.mrf.mxu1 }
  0xfd   : > { %v1720_v25 = vadd.f32 %v2524_v23, %v2502_v22  ;;  %v2504_v26 = vpop.f32.mrf.mxu0 }
  0xfe   : > { %v2526_v27 = vpop.f32.mrf.mxu1 }
 0x117   : > { %v2544_v28 = vpop.f32.mrf.mxu0 }
 0x118   : > { %v2566_v29 = vpop.f32.mrf.mxu1 }
 0x119   : > { %v2545_v30 = vpop.f32.mrf.mxu0 }
 0x11a   : > { %v2567_v31 = vpop.f32.mrf.mxu1  ;;  %v2546_v32 = vadd.f32 %v2545_v30, %v2544_v28 }
 0x11b   : > { %v2568_v33 = vadd.f32 %v2567_v31, %v2566_v29  ;;  %v2547_v34 = vpop.f32.mrf.mxu0 }
 0x11c   : > { %v2569_v35 = vpop.f32.mrf.mxu1  ;;  %v1760_v36 = vadd.f32 %v2546_v32, %v1720_v25 }
 0x11d   : > { %v2548_v37 = vpop.f32.mrf.mxu0 }
 0x11e   : > { %v2570_v38 = vpop.f32.mrf.mxu1  ;;  %v1800_v39 = vadd.f32 %v2568_v33, %v1760_v36 }
 0x137   : > { %v2588_v40 = vpop.f32.mrf.mxu0 }
 0x138   : > { %v2610_v41 = vpop.f32.mrf.mxu1 }
 0x139   : > { %v2589_v43 = vpop.f32.mrf.mxu0 }
 0x13a   : > { %v2611_v44 = vpop.f32.mrf.mxu1  ;;  %v2590_v57 = vadd.f32 %v2589_v43, %v2588_v40 }
 0x13b   : > { %v2591_v45 = vpop.f32.mrf.mxu0  ;;  %v2612_v59 = vadd.f32 %v2611_v44, %v2610_v41 }
 0x13c   : > { %v2613_v46 = vpop.f32.mrf.mxu1  ;;  %v1840_v58 = vadd.f32 %v2590_v57, %v1800_v39 }
 0x13d   : > { %v2592_v47 = vpop.f32.mrf.mxu0 }
 0x13e   : > { %v2614_v48 = vpop.f32.mrf.mxu1  ;;  %v1880_v61 = vadd.f32 %v2612_v59, %v1840_v58 }
 0x157   : > { %v2632_v49 = vpop.f32.mrf.mxu0 }
 0x158   : > { %v2654_v50 = vpop.f32.mrf.mxu1 }
 0x159   : > { %v2633_v51 = vpop.f32.mrf.mxu0 }
 0x15a   : > { %v2655_v52 = vpop.f32.mrf.mxu1  ;;  %v2634_v60 = vadd.f32 %v2633_v51, %v2632_v49 }
 0x15b   : > { %v2635_v53 = vpop.f32.mrf.mxu0  ;;  %v2656_v63 = vadd.f32 %v2655_v52, %v2654_v50 }
 0x15c   : > { %v2657_v54 = vpop.f32.mrf.mxu1  ;;  %v1920_v62 = vadd.f32 %v2634_v60, %v1880_v61 }
 0x15d   : > { %v2636_v55 = vpop.f32.mrf.mxu0 }
 0x15e   : > { %v2658_v56 = vpop.f32.mrf.mxu1  ;;  %v1960_v4 = vadd.f32 %v2656_v63, %v1920_v62 }
 0x177   : > { %v2676_v0 = vpop.f32.mrf.mxu0 }
 0x178   : > { %v2039_v1 = vpop.f32.mrf.mxu1 }
 0x179   : > { %v2677_v2 = vpop.f32.mrf.mxu0 }
 0x17a   : > { %v2731_v3 = vpop.f32.mrf.mxu1  ;;  %v2678_v5 = vadd.f32 %v2677_v2, %v2676_v0 }
 0x17b   : > { %v2679_v6 = vpop.f32.mrf.mxu0 }
 0x17c   : > { %v2042_v7 = vpop.f32.mrf.mxu1  ;;  %v2000_v8 = vadd.f32 %v2678_v5, %v1960_v4 }
 0x17d   : > { %v2680_v10 = vpop.f32.mrf.mxu0 }
 0x17e   : > { %v2732_v11 = vpop.f32.mrf.mxu1  ;;  %v2040_v12 = vadd.f32 %v2039_v1, %v2000_v8  ;;  %2051 = sbr.rel (%p2472_p6) target bundleno = 807 (0x327), region = 56 }
 0x180   : > { %v2045_v13 = vadd.f32 %v2040_v12, %v296_v9 }
 0x182   : > { %2047 = vst.msk [vmem:[#allocation2] sm:$0x3] %vm2046_vm2, %v2045_v13 }
 0x183   : > { %v2074_v14 = vld [vmem:[%s3342_s3 + $0x60] sm:$0xf]  ;;  %vm2086_vm3 = vcmask 1043456   ;;  %v2997_v15 = vmov 0.0   ;;  %v2073_v16 = vld [vmem:[%s3342_s3 + $0x58] sm:$0xff]  ;;  %vm2998_vm4 = vmmov 0  }
 0x184   : > { %2733 = vmatprep.subr.mxu0 %v2997_v15  ;;  %2762 = vmatprep.subr.mxu1 %v2997_v15  ;;  %v2072_v17 = vld [vmem:[%s3342_s3 + $0x50] sm:$0xff]  ;;  %vm2179_vm5 = vcmask 1041408   ;;  %v2071_v18 = vld [vmem:[%s3342_s3 + $0x48] sm:$0xff]  ;;  %v2070_v21 = vld [vmem:[%s3342_s3 + $0x40] sm:$0xff]  ;;  %vm2082_vm6 = vcmask 818176   ;;  %vm2175_vm7 = vcmask 408576  }
 0x185   : > { %2734 = vmatpush3.msk.msra.mxu0 %vm2086_vm3, %v2074_v14  ;;  %2759 = vmatprep.mubr.msk.f32.mxu0 %vm2998_vm4, %v2997_v15  ;;  %v2167_v19 = vld [vmem:[%s3344_s5 + $0x30] sm:$0x3]  ;;  %v2166_v20 = vld [vmem:[%s3344_s5 + $0x28] sm:$0xff]  ;;  %v2165_v22 = vld [vmem:[%s3344_s5 + $0x20] sm:$0xff]  ;;  %vm2253_vm8 = vcmask 33792  }
 0x186   : > { %2735 = vmatprep.subr.mxu0 %v2997_v15  ;;  %2776 = vmatprep.mubr.msk.f32.mxu1 %vm2998_vm4, %v2997_v15  ;;  %v2069_v23 = vld [vmem:[%s3342_s3 + $0x38] sm:$0xff]  ;;  %v2068_v42 = vld [vmem:[%s3342_s3 + $0x30] sm:$0xff]  ;;  %v2067_v25 = vld [vmem:[%s3342_s3 + $0x28] sm:$0xff] }
 0x187   : > { %2736 = vmatpush3.msra.mxu0 %v2073_v16  ;;  %2763 = vmatpush3.msk.msra.mxu1 %vm2179_vm5, %v2167_v19  ;;  %v2164_v24 = vld [vmem:[%s3344_s5 + $0x18] sm:$0xff]  ;;  %v2066_v26 = vld [vmem:[%s3342_s3 + $0x20] sm:$0xff]  ;;  %v2064_v30 = vld [vmem:[%s3342_s3 + $0x10] sm:$0xff] }
 0x188   : > { %2737 = vmatprep.subr.mxu0 %v2997_v15  ;;  %2764 = vmatprep.subr.mxu1 %v2997_v15  ;;  %v2473_v28 = vld [vmem:[%s3341_s2] ss:$0 sm:$0xff]  ;;  %v2065_v29 = vld [vmem:[%s3342_s3 + $0x18] sm:$0xff]  ;;  %v2063_v32 = vld [vmem:[%s3342_s3 + $0x8] sm:$0xff] }
 0x189   : > { %2738 = vmatpush3.msra.mxu0 %v2072_v17  ;;  %2765 = vmatpush3.msra.mxu1 %v2166_v20  ;;  %v2052_v27 = vld [vmem:[#allocation2] sm:$0x3]  ;;  %v2163_v35 = vld [vmem:[%s3344_s5 + $0x10] sm:$0xff]  ;;  %v2162_v36 = vld [vmem:[%s3344_s5 + $0x8] sm:$0xff] }
 0x18a   : > { %2739 = vmatprep.subr.mxu0 %v2997_v15  ;;  %2766 = vmatprep.subr.mxu1 %v2997_v15  ;;  %v2060_v31 = vadd.f32 %v2473_v28, %v2052_v27  ;;  %v2062_v33 = vld [vmem:[%s3342_s3] sm:$0xff] }
 0x18b   : > { %2740 = vmatpush3.msra.mxu0 %v2071_v18  ;;  %2767 = vmatpush3.msra.mxu1 %v2165_v22  ;;  %v2161_v37 = vld [vmem:[%s3344_s5] sm:$0xff] }
 0x18c   : > { %2741 = vmatprep.subr.mxu0 %v2997_v15  ;;  %2768 = vmatprep.subr.mxu1 %v2997_v15  ;;  %v2061_v34 = vmax.f32 %v2060_v31, 0.0  ;;  %v2474_v38 = vld [vmem:[%s3343_s4] ss:$0 sm:$0xff] }
 0x18d   : > { %2742 = vmatpush3.msra.mxu0 %v2070_v21  ;;  %2769 = vmatpush3.msra.mxu1 %v2164_v24  ;;  %v2477_v44 = vld [vmem:[%s3345_s6] ss:$0 sm:$0xff] }
 0x18e   : > { %2743 = vmatprep.subr.mxu0 %v2997_v15  ;;  %2770 = vmatprep.subr.mxu1 %v2997_v15 }
 0x18f   : > { %2744 = vmatpush3.msra.mxu0 %v2069_v23  ;;  %2771 = vmatpush3.msra.mxu1 %v2163_v35 }
 0x190   : > { %2745 = vmatprep.subr.mxu0 %v2997_v15  ;;  %2772 = vmatprep.subr.mxu1 %v2997_v15 }
 0x191   : > { %2746 = vmatpush3.msra.mxu0 %v2068_v42  ;;  %2773 = vmatpush3.msra.mxu1 %v2162_v36 }
 0x192   : > { %2747 = vmatprep.subr.mxu0 %v2997_v15  ;;  %2774 = vmatprep.subr.mxu1 %v2997_v15 }
 0x193   : > { %2748 = vmatpush3.msra.mxu0 %v2067_v25  ;;  %2775 = vmatpush3.msra.mxu1 %v2161_v37 }
 0x194   : > { %2749 = vmatprep.subr.mxu0 %v2997_v15 }
 0x195   : > { %2750 = vmatpush3.msra.mxu0 %v2066_v26 }
 0x196   : > { %2751 = vmatprep.subr.mxu0 %v2997_v15 }
 0x197   : > { %2752 = vmatpush3.msra.mxu0 %v2065_v29 }
 0x198   : > { %2753 = vmatprep.subr.mxu0 %v2997_v15 }
 0x199   : > { %2754 = vmatpush3.msra.mxu0 %v2064_v30 }
 0x19a   : > { %2755 = vmatprep.subr.mxu0 %v2997_v15 }
 0x19b   : > { %2756 = vmatpush3.msra.mxu0 %v2063_v32 }
 0x19c   : > { %2757 = vmatprep.subr.mxu0 %v2997_v15 }
 0x19d   : > { %2758 = vmatpush3.msra.mxu0 %v2062_v33 }
 0x19e   : > { %2760 = vmatmul.mubr.msk.f32.vlgmr.msra.gmra.mxu0 %vm2082_vm6, %v2061_v34 }
 0x25e   : > { %v2156_v39 = vpop.f32.mrf.mxu0 }
 0x25f   : > { %v2157_v40 = vadd.f32 %v2474_v38, %v2156_v39 }
 0x260   : > { %v2761_v41 = vpop.f32.mrf.mxu0 }
 0x261   : > { %v2160_v43 = vmax.f32 %v2157_v40, 0.0 }
 0x263   : > { %2777 = vmatmul.mubr.msk.f32.vlgmr.msra.gmra.mxu1 %vm2175_vm7, %v2160_v43 }
 0x323   : > { %v2249_v45 = vpop.f32.mrf.mxu1 }
 0x324   : > { %v2250_v46 = vadd.f32 %v2477_v44, %v2249_v45 }
 0x325   : > { %v2778_v47 = vpop.f32.mrf.mxu1 }
 0x326   : > { %2254 = vst.msk [vmem:[#allocation3] sm:$0x3] %vm2253_vm8, %v2250_v46 }
 0x327 PF: > { %p2783_p7 = scmp.eq.s32.totalorder %s3046_s25, 9  ;;  %s2999_s17 = smov [#allocation3]  }
 0x328   : > { %s2262_s18 = sshll.u32 %s2999_s17, 4  ;;  %s2263_s18 = int_to_ptr.vmem [resolvable:$true] %s2262_s18 }
 0x329   : > { %s2957_s19 = scalar_lea.vmem %s2263_s18, 32  ;;  %p2964_p11 = scmp.lt.s32.totalorder %s2263_s18, %s2263_s18 }
 0x32a   : > { %p2958_p8 = scmp.ne.s32.totalorder %s2263_s18, %s2957_s19  ;;  %p2965_p12 = scmp.lt.s32.totalorder %s2957_s19, %s2957_s19 }
 0x32c   : > { %p2959_p9 = pnand %p2958_p8, %p2783_p7  ;;  %p2966_p13 = por %p2965_p12, %p2964_p11 }
 0x32e   : > { %p2960_p10 = pneg %p2959_p9 }
 0x330   : > { %p2967_p0 = pnand %p2966_p13, %p2960_p10 }
 0x332   : > { %2970 = shalt.err (!%p2967_p0)
}
 0x333   : > { %2780 = dma.vmem_to_hbm [thread:$0]  (%p2783_p7), %s2263_s18, 32, %s3346_s7, [#allocation4]  }
 0x334   : > { %2986 = dma.done.wait (%p2783_p7), [#allocation4], 32  }
 0x335   : > { %2988 = vsyncadd (%p2783_p7), [#allocation4], 4294967264 }
 0x336 PF: > { %s18_s24 = sadd.s32 1, %s2991_s24  }
 0x337   : > { %p15_p1 = scmp.ge.s32.totalorder %s18_s24, 12  }
 0x339   :  { %17 = sbr.rel (!%p15_p1) target bundleno = 1 (0x1), region = 86 }
 0x33e   :  { %2275 = vsyncpa [#allocation4], 1 }
 0x33f   :  { %2277 = vsyncpa [#allocation4 + $0x1], 1 }

</bundles_post_ra>
